<compile_context>
chip_gen: v6e
topology: v6e:2x2x1
jax: 0.10.0
libtpu: 0.0.40
codegen_flags: <defaults>
</compile_context>

<pallas_src>
import functools
import math
import warnings

import jax
import jax.numpy as jnp
from jax import lax
from jax.experimental import pallas as pl
from jax.experimental.pallas import tpu as pltpu


def _layer_norm(v, w, b, eps=1e-6):
    mu = jnp.mean(v, axis=-1, keepdims=True)
    var = jnp.mean((v - mu) ** 2, axis=-1, keepdims=True)
    return (v - mu) * lax.rsqrt(var + eps) * w + b


def _gelu(x):
    # PreSumm's tanh-approximation gelu (src/models/neural.py)
    c = math.sqrt(2.0 / math.pi)
    return 0.5 * x * (1.0 + jnp.tanh(c * (x + 0.044715 * x * x * x)))


def encoder_layer_kernel(
    x_q_ref,                # (Tq, D) f32  -- query tile of raw inputs
    x_full_ref,             # (S,  D) f32  -- full sequence of raw inputs (K/V source)
    mask_ref,               # (1,  S) f32  -- 1.0 == masked (padded) key position
    ln_ref,                 # (4,  D) f32: [attn_ln_w, attn_ln_b, ffn_ln_w, ffn_ln_b]
    qkvo_w_ref,             # (D, 4D) bf16: [Wq | Wk | Wv | Wo]
    qkvo_b_ref,             # (1, 4D) f32 : [bq | bk | bv | bo]
    w1_w_ref, w1_b_ref,     # (D, d_ff) bf16, (1, d_ff) f32
    w2_w_ref, w2_b_ref,     # (d_ff, D) bf16, (1, D) f32
    out_ref,                # (Tq, D) f32
    kT_ref,                 # scratch (H, dh, S) bf16 -- K^T cache (lives across q tiles)
    v_ref,                  # scratch (H, S, dh) bf16 -- V cache
    *, heads, iter_nonzero):
    f32 = jnp.float32
    bf16 = jnp.bfloat16

    Tq, D = x_q_ref.shape
    S = x_full_ref.shape[0]
    dh = D // heads
    qi = pl.program_id(1)

    def pre_ln(v):
        # iter_nonzero is a static Python bool (baked at trace time).
        return _layer_norm(v, ln_ref[0:1, :], ln_ref[1:2, :]) if iter_nonzero else v

    # ---- K/V projection once per batch element (first q tile), cached in VMEM
    # ---- scratch and reused by every subsequent q tile of this batch element.
    @pl.when(qi == 0)
    def _():
        xf = pre_ln(x_full_ref[...]).astype(bf16)                         # (S, D)
        kv = jnp.dot(xf, qkvo_w_ref[:, D:3 * D],
                     preferred_element_type=f32) + qkvo_b_ref[:, D:3 * D]  # (S, 2D) f32
        # Single relayout per operand (no per-head column slices):
        #   K: (S, D) -> (D, S) -> (H, dh, S)   (pre-transposed for QK^T)
        #   V: (S, D) -> (S, H, dh) -> (H, S, dh)
        kT_ref[...] = jnp.transpose(kv[:, :D]).reshape(heads, dh, S).astype(bf16)
        v_ref[...] = jnp.transpose(kv[:, D:].reshape(S, heads, dh),
                                   (1, 0, 2)).astype(bf16)

    # ---- Q projection for this query tile ----
    x_q = x_q_ref[...]                                                    # (Tq, D) f32
    q = jnp.dot(pre_ln(x_q).astype(bf16), qkvo_w_ref[:, :D],
                preferred_element_type=f32) + qkvo_b_ref[:, :D]           # (Tq, D) f32
    scale = 1.0 / math.sqrt(dh)
    qh = jnp.transpose((q * scale).reshape(Tq, heads, dh),
                       (1, 0, 2)).astype(bf16)                            # (H, Tq, dh)

    # ---- head-batched attention against cached K^T / V ----
    mask_bias = jnp.where(mask_ref[...] > 0.5, f32(-1e18), f32(0.0))      # (1, S)
    scores = jnp.einsum('hqd,hdk->hqk', qh, kT_ref[...],
                        preferred_element_type=f32)                       # (H, Tq, S)
    scores = scores + mask_bias[None]
    m = jnp.max(scores, axis=-1, keepdims=True)
    e = jnp.exp(scores - m)
    denom = jnp.sum(e, axis=-1, keepdims=True)
    p = e * pl.reciprocal(denom, approx=True)   # EUP approx recip (~1e-3 rel err)
    # TODO(synk): flash-style K tiling with online softmax so the (H, Tq, S)
    #             scores tile stays bounded for S >= 1024 on v7x (64 MiB VMEM).

    ctx = jnp.einsum('hqk,hkd->hqd', p.astype(bf16), v_ref[...],
                     preferred_element_type=f32)                          # (H, Tq, dh)
    context = jnp.transpose(ctx, (1, 0, 2)).reshape(Tq, D)                # (Tq, D)
    attn_out = jnp.dot(context.astype(bf16), qkvo_w_ref[:, 3 * D:],
                       preferred_element_type=f32) + qkvo_b_ref[:, 3 * D:]

    # attention / residual dropout are identity (module in eval mode)
    out = attn_out + x_q

    # ---- PositionwiseFeedForward: w2(gelu(w1(LN(out)))) + out ----
    # TODO(synk): chunk the FFN over d_ff (accumulate w2 partials) for d_ff >= 2048.
    y = _layer_norm(out, ln_ref[2:3, :], ln_ref[3:4, :])
    inter = _gelu(jnp.dot(y.astype(bf16), w1_w_ref[...],
                          preferred_element_type=f32) + w1_b_ref[...])
    ff = jnp.dot(inter.astype(bf16), w2_w_ref[...],
                 preferred_element_type=f32) + w2_b_ref[...]
    out_ref[...] = ff + out


def _vmem_limit_bytes(S, Tq, D, d_ff, heads, single_buffer_weights):
    f32, bf16 = 4, 2
    wbuf = 1 if single_buffer_weights else 2
    weights = (4 * D * D + 2 * D * d_ff) * bf16 + (8 * D + d_ff + D) * f32
    io_blocks = (Tq * D + S * D + S + Tq * D) * f32        # x tile, x full, mask, out
    kv_cache = 2 * S * D * bf16                            # K^T / V scratch
    temps = (2 * heads * Tq * S + 6 * Tq * D + 2 * Tq * d_ff + 4 * S * D) * f32
    total = wbuf * weights + 2 * io_blocks + kv_cache + temps   # io double-buffered
    try:
        # Generation-aware cap: ~51 MiB on v7x (64 MiB physical), ~102 MiB on
        # v5e/v6e (128 MiB physical); always leave compiler scratch headroom.
        cap = int(pltpu.get_tpu_info().vmem_capacity_bytes * 0.8)
    except Exception:
        cap = 48 * 1024 * 1024                              # conservative fallback
    return int(min(max(int(total * 1.25), 24 * 1024 * 1024), cap))


def fuse_encoder_params(params):
    """One-time parameter fusion / bf16 cast (call at model init, not per layer call)."""
    bf16 = jnp.bfloat16
    return dict(
        ln=jnp.concatenate([params['ln_w'], params['ln_b'],
                            params['ff_ln_w'], params['ff_ln_b']], axis=0),
        qkvo_w=jnp.concatenate([params['lq_w'], params['lk_w'],
                                params['lv_w'], params['fo_w']], axis=1).astype(bf16),
        qkvo_b=jnp.concatenate([params['lq_b'], params['lk_b'],
                                params['lv_b'], params['fo_b']], axis=1),
        w1_w=params['w1_w'].astype(bf16), w1_b=params['w1_b'],
        w2_w=params['w2_w'].astype(bf16), w2_b=params['w2_b'],
    )


def transformer_encoder_layer(iter_, query, inputs, mask, fused, heads, *,
                              q_tile=None, single_buffer_weights=True):
    """Pallas wrapper.

    `query` is unused (matches the PyTorch forward).  `iter_` must be a static
    Python int: it selects the pre-LayerNorm branch at trace time.
    """
    del query
    B, S, D = inputs.shape
    d_ff = fused['w1_w'].shape[1]

    if q_tile is None:
        q_tile = S if S <= 128 else 128
    if S % q_tile != 0:
        q_tile = S                               # fall back to one tile per sequence
    n_q = S // q_tile

    kernel = functools.partial(encoder_layer_kernel, heads=heads,
                               iter_nonzero=(iter_ != 0))

    def wspec(shape):
        # Whole-array weight block with a constant index map; single-buffered
        # so the resident weight footprint is not doubled by the pipeliner.
        if single_buffer_weights:
            return pl.BlockSpec(shape, lambda b, qi: (0,) * len(shape),
                                pipeline_mode=pl.Buffered(1))
        return pl.BlockSpec(shape, lambda b, qi: (0,) * len(shape))

    in_specs = [
        pl.BlockSpec((None, q_tile, D), lambda b, qi: (b, qi, 0)),   # x (query tile)
        pl.BlockSpec((None, S, D), lambda b, qi: (b, 0, 0)),         # x (full, K/V src)
        pl.BlockSpec((None, 1, S), lambda b, qi: (b, 0, 0)),         # mask
        wspec((4, D)),                                               # LayerNorm params
        wspec((D, 4 * D)), wspec((1, 4 * D)),                        # fused QKV+O
        wspec((D, d_ff)), wspec((1, d_ff)),                          # w_1
        wspec((d_ff, D)), wspec((1, D)),                             # w_2
    ]
    out_specs = pl.BlockSpec((None, q_tile, D), lambda b, qi: (b, qi, 0))

    return pl.pallas_call(
        kernel,
        out_shape=jax.ShapeDtypeStruct((B, S, D), jnp.float32),
        grid_spec=pltpu.PrefetchScalarGridSpec(
            num_scalar_prefetch=0,
            grid=(B, n_q),
            in_specs=in_specs,
            out_specs=out_specs,
            scratch_shapes=[
                pltpu.VMEM((heads, D // heads, S), jnp.bfloat16),    # K^T cache
                pltpu.VMEM((heads, S, D // heads), jnp.bfloat16),    # V cache
            ]),
        compiler_params=pltpu.CompilerParams(
            # The q-tile axis must stay "arbitrary": the K/V caches computed at
            # qi == 0 are reused by later q tiles of the same batch element.
            dimension_semantics=("parallel", "arbitrary"),
            vmem_limit_bytes=_vmem_limit_bytes(S, q_tile, D, d_ff, heads,
                                               single_buffer_weights)),
    )(inputs, inputs, mask, fused['ln'], fused['qkvo_w'], fused['qkvo_b'],
      fused['w1_w'], fused['w1_b'], fused['w2_w'], fused['w2_b'])


# ------------------------- pure-JAX reference -------------------------
# Mirrors the kernel's numerics (bf16 matmul operands, f32 accumulation; f32
# LayerNorm / softmax / residuals) so the comparison tolerance can stay tight.
def reference_layer(iter_, inputs, mask, params, heads):
    B, S, D = inputs.shape
    dh = D // heads
    f32, bf16 = jnp.float32, jnp.bfloat16

    x = inputs
    x_norm = _layer_norm(x, params['ln_w'], params['ln_b']) if iter_ != 0 else x
    xb = x_norm.astype(bf16)

    def lin(v_bf, w, b):
        return jnp.einsum('bsd,df->bsf', v_bf, w.astype(bf16),
                          preferred_element_type=f32) + b

    q = lin(xb, params['lq_w'], params['lq_b'])
    k = lin(xb, params['lk_w'], params['lk_b'])
    v = lin(xb, params['lv_w'], params['lv_b'])

    def split(t):  # (B,S,D) -> (B,H,S,dh)
        return t.reshape(B, S, heads, dh).transpose(0, 2, 1, 3)

    scale = 1.0 / jnp.sqrt(f32(dh))
    qh = (split(q) * scale).astype(bf16)
    kh = split(k).astype(bf16)
    vh = split(v).astype(bf16)

    scores = jnp.einsum('bhqd,bhkd->bhqk', qh, kh, preferred_element_type=f32)
    bias = jnp.where(mask[:, None, :, :] > 0.5, f32(-1e18), f32(0.0))
    scores = scores + bias
    m = jnp.max(scores, axis=-1, keepdims=True)
    e = jnp.exp(scores - m)
    p = e / jnp.sum(e, axis=-1, keepdims=True)
    ctx = jnp.einsum('bhqk,bhkd->bhqd', p.astype(bf16), vh,
                     preferred_element_type=f32)
    ctx = ctx.transpose(0, 2, 1, 3).reshape(B, S, D)
    attn_out = lin(ctx.astype(bf16), params['fo_w'], params['fo_b'])
    out = attn_out + x

    y = _layer_norm(out, params['ff_ln_w'], params['ff_ln_b'])
    inter = _gelu(lin(y.astype(bf16), params['w1_w'], params['w1_b']))
    ff = lin(inter.astype(bf16), params['w2_w'], params['w2_b'])
    return ff + out


if __name__ == "__main__":
    B, S, D, heads, d_ff = 2, 16, 128, 4, 256

    key = jax.random.PRNGKey(0)
    ks = jax.random.split(key, 20)

    def w(k, shape, scl=0.05):
        return (scl * jax.random.normal(k, shape)).astype(jnp.float32)

    params = dict(
        ln_w=(1.0 + 0.1 * jax.random.normal(ks[0], (1, D))).astype(jnp.float32),
        ln_b=w(ks[1], (1, D), 0.1),
        lq_w=w(ks[2], (D, D)),  lq_b=w(ks[3], (1, D)),
        lk_w=w(ks[4], (D, D)),  lk_b=w(ks[5], (1, D)),
        lv_w=w(ks[6], (D, D)),  lv_b=w(ks[7], (1, D)),
        fo_w=w(ks[8], (D, D)),  fo_b=w(ks[9], (1, D)),
        ff_ln_w=(1.0 + 0.1 * jax.random.normal(ks[10], (1, D))).astype(jnp.float32),
        ff_ln_b=w(ks[11], (1, D), 0.1),
        w1_w=w(ks[12], (D, d_ff)), w1_b=w(ks[13], (1, d_ff)),
        w2_w=w(ks[14], (d_ff, D)), w2_b=w(ks[15], (1, D)),
    )

    x = jax.random.normal(ks[16], (B, S, D), jnp.float32)
    query = x  # unused by the forward, kept for signature parity

    # mask: 1.0 == padded/masked key position (batch 0 has 3 padded tokens)
    mask2d = jnp.zeros((B, S), jnp.float32).at[0, S - 3:].set(1.0)
    mask = mask2d[:, None, :]                       # (B, 1, S)

    fused = fuse_encoder_params(params)             # pre-fused once, not per call

    def run_kernel(it):
        try:
            return jax.block_until_ready(
                transformer_encoder_layer(it, query, x, mask, fused, heads,
                                          q_tile=8, single_buffer_weights=True))
        except Exception as e:
            # pl.Buffered(1) rejected by this jax build: warn loudly (weights are
            # double-buffered -> 2x resident footprint) and retry with the VMEM
            # limit recomputed for double buffering.
            warnings.warn(
                f"single-buffered weight blocks rejected ({type(e).__name__}); "
                "retrying with default double-buffered weights")
            return jax.block_until_ready(
                transformer_encoder_layer(it, query, x, mask, fused, heads,
                                          q_tile=8, single_buffer_weights=False))

    ok = True
    for it in (0, 1):
        out = run_kernel(it)
        ref = reference_layer(it, x, mask, params, heads)
        if not jnp.allclose(out, ref, atol=3e-3, rtol=3e-3):
            ok = False
            print(f"mismatch at iter={it}: "
                  f"max_abs_err={float(jnp.max(jnp.abs(out - ref)))}")

    if ok:
        print("KERNEL_OK")
</pallas_src>

<mosaic_0001>
module attributes {stable_mosaic.version = 11 : i64} {
  func.func @encoder_layer_kernel(%arg0: i32, %arg1: i32, %arg2: memref<1x8x128xf32, #tpu.memory_space<vmem>>, %arg3: memref<1x16x128xf32, #tpu.memory_space<vmem>>, %arg4: memref<1x1x16xf32, #tpu.memory_space<vmem>>, %arg5: memref<4x128xf32, #tpu.memory_space<vmem>>, %arg6: memref<128x512xbf16, #tpu.memory_space<vmem>>, %arg7: memref<1x512xf32, #tpu.memory_space<vmem>>, %arg8: memref<128x256xbf16, #tpu.memory_space<vmem>>, %arg9: memref<1x256xf32, #tpu.memory_space<vmem>>, %arg10: memref<256x128xbf16, #tpu.memory_space<vmem>>, %arg11: memref<1x128xf32, #tpu.memory_space<vmem>>, %arg12: memref<1x8x128xf32, #tpu.memory_space<vmem>>, %arg13: memref<4x32x16xbf16, #tpu.memory_space<vmem>>, %arg14: memref<4x16x32xbf16, #tpu.memory_space<vmem>>) attributes {dimension_semantics = [#tpu.dimension_semantics<parallel>, #tpu.dimension_semantics<arbitrary>], iteration_bounds = array<i64: 2, 2>, scalar_prefetch = 0 : i64, scratch_operands = 2 : i64, tpu.core_type = #tpu.core_type<tc>, window_params = [{transform_indices = @transform_0, window_bounds = array<i64: 1, 8, 128>}, {transform_indices = @transform_1, window_bounds = array<i64: 1, 16, 128>}, {transform_indices = @transform_2, window_bounds = array<i64: 1, 1, 16>}, {pipeline_mode = #tpu.pipeline_mode<synchronous>, transform_indices = @transform_3, window_bounds = array<i64: 4, 128>}, {pipeline_mode = #tpu.pipeline_mode<synchronous>, transform_indices = @transform_4, window_bounds = array<i64: 128, 512>}, {pipeline_mode = #tpu.pipeline_mode<synchronous>, transform_indices = @transform_5, window_bounds = array<i64: 1, 512>}, {pipeline_mode = #tpu.pipeline_mode<synchronous>, transform_indices = @transform_6, window_bounds = array<i64: 128, 256>}, {pipeline_mode = #tpu.pipeline_mode<synchronous>, transform_indices = @transform_7, window_bounds = array<i64: 1, 256>}, {pipeline_mode = #tpu.pipeline_mode<synchronous>, transform_indices = @transform_8, window_bounds = array<i64: 256, 128>}, {pipeline_mode = #tpu.pipeline_mode<synchronous>, transform_indices = @transform_9, window_bounds = array<i64: 1, 128>}, {transform_indices = @transform_10, window_bounds = array<i64: 1, 8, 128>}]} {
    %c0_i32 = arith.constant 0 : i32
    %0 = arith.cmpi eq, %arg1, %c0_i32 : i32
    %1 = arith.extui %0 : i1 to i32
    %c0_i32_0 = arith.constant 0 : i32
    %2 = arith.cmpi ne, %1, %c0_i32_0 : i32
    scf.if %2 {
      %c0_52 = arith.constant 0 : index
      %c0_53 = arith.constant 0 : index
      %c0_54 = arith.constant 0 : index
      %103 = vector.load %arg3[%c0_52, %c0_53, %c0_54] : memref<1x16x128xf32, #tpu.memory_space<vmem>>, vector<1x16x128xf32>
      %104 = vector.shape_cast %103 : vector<1x16x128xf32> to vector<16x128xf32>
      %105 = arith.truncf %104 : vector<16x128xf32> to vector<16x128xbf16>
      %c0_55 = arith.constant 0 : index
      %c128 = arith.constant 128 : index
      %106 = vector.load %arg6[%c0_55, %c128] : memref<128x512xbf16, #tpu.memory_space<vmem>>, vector<128x256xbf16>
      %cst_56 = arith.constant dense<0.000000e+00> : vector<16x256xf32>
      %107 = tpu.matmul %105, %106, %cst_56 {dimension_numbers = #tpu.dot_dimension_numbers<[1], [0], [0], [1], [0, 0, 1, 1], [], []>} : vector<16x128xbf16>, vector<128x256xbf16>, vector<16x256xf32> -> vector<16x256xf32>
      %c0_57 = arith.constant 0 : index
      %c128_58 = arith.constant 128 : index
      %108 = vector.load %arg7[%c0_57, %c128_58] : memref<1x512xf32, #tpu.memory_space<vmem>>, vector<1x256xf32>
      %109 = vector.broadcast %108 : vector<1x256xf32> to vector<16x256xf32>
      %110 = arith.addf %107, %109 : vector<16x256xf32>
      %111 = vector.extract_strided_slice %110 {offsets = [0, 0], sizes = [16, 128], strides = [1, 1]} : vector<16x256xf32> to vector<16x128xf32>
      %112 = tpu.transpose %111, [1, 0] : vector<16x128xf32> -> vector<128x16xf32>
      %113 = vector.shape_cast %112 : vector<128x16xf32> to vector<4x32x16xf32>
      %114 = arith.truncf %113 : vector<4x32x16xf32> to vector<4x32x16xbf16>
      %c0_59 = arith.constant 0 : index
      %c0_60 = arith.constant 0 : index
      %c0_61 = arith.constant 0 : index
      %115 = vector.load %arg13[%c0_59, %c0_60, %c0_61] : memref<4x32x16xbf16, #tpu.memory_space<vmem>>, vector<4x32x16xbf16>
      tpu.vector_store %arg13[%c0_59, %c0_60, %c0_61], %114 {strides = array<i32>} : memref<4x32x16xbf16, #tpu.memory_space<vmem>>, vector<4x32x16xbf16>,
      %116 = vector.extract_strided_slice %110 {offsets = [0, 128], sizes = [16, 128], strides = [1, 1]} : vector<16x256xf32> to vector<16x128xf32>
      %117 = vector.shape_cast %116 : vector<16x128xf32> to vector<16x4x32xf32>
      %118 = tpu.transpose %117, [1, 0, 2] : vector<16x4x32xf32> -> vector<4x16x32xf32>
      %119 = arith.truncf %118 : vector<4x16x32xf32> to vector<4x16x32xbf16>
      %c0_62 = arith.constant 0 : index
      %c0_63 = arith.constant 0 : index
      %c0_64 = arith.constant 0 : index
      %120 = vector.load %arg14[%c0_62, %c0_63, %c0_64] : memref<4x16x32xbf16, #tpu.memory_space<vmem>>, vector<4x16x32xbf16>
      tpu.vector_store %arg14[%c0_62, %c0_63, %c0_64], %119 {strides = array<i32>} : memref<4x16x32xbf16, #tpu.memory_space<vmem>>, vector<4x16x32xbf16>,
    } else {
    }
    %c0 = arith.constant 0 : index
    %c0_1 = arith.constant 0 : index
    %c0_2 = arith.constant 0 : index
    %3 = vector.load %arg2[%c0, %c0_1, %c0_2] : memref<1x8x128xf32, #tpu.memory_space<vmem>>, vector<1x8x128xf32>
    %4 = vector.shape_cast %3 : vector<1x8x128xf32> to vector<8x128xf32>
    %5 = arith.truncf %4 : vector<8x128xf32> to vector<8x128xbf16>
    %c0_3 = arith.constant 0 : index
    %c0_4 = arith.constant 0 : index
    %6 = vector.load %arg6[%c0_3, %c0_4] : memref<128x512xbf16, #tpu.memory_space<vmem>>, vector<128x128xbf16>
    %cst = arith.constant dense<0.000000e+00> : vector<8x128xf32>
    %7 = tpu.matmul %5, %6, %cst {dimension_numbers = #tpu.dot_dimension_numbers<[1], [0], [0], [1], [0, 0, 1, 1], [], []>} : vector<8x128xbf16>, vector<128x128xbf16>, vector<8x128xf32> -> vector<8x128xf32>
    %c0_5 = arith.constant 0 : index
    %c0_6 = arith.constant 0 : index
    %8 = vector.load %arg7[%c0_5, %c0_6] : memref<1x512xf32, #tpu.memory_space<vmem>>, vector<1x128xf32>
    %9 = vector.broadcast %8 : vector<1x128xf32> to vector<8x128xf32>
    %10 = arith.addf %7, %9 : vector<8x128xf32>
    %cst_7 = arith.constant 0.176776692 : f32
    %11 = vector.broadcast %cst_7 : f32 to vector<8x128xf32>
    %12 = arith.mulf %10, %11 : vector<8x128xf32>
    %13 = vector.shape_cast %12 : vector<8x128xf32> to vector<8x4x32xf32>
    %14 = tpu.transpose %13, [1, 0, 2] : vector<8x4x32xf32> -> vector<4x8x32xf32>
    %15 = arith.truncf %14 : vector<4x8x32xf32> to vector<4x8x32xbf16>
    %c0_8 = arith.constant 0 : index
    %c0_9 = arith.constant 0 : index
    %c0_10 = arith.constant 0 : index
    %16 = vector.load %arg4[%c0_8, %c0_9, %c0_10] : memref<1x1x16xf32, #tpu.memory_space<vmem>>, vector<1x1x16xf32>
    %17 = vector.shape_cast %16 : vector<1x1x16xf32> to vector<1x16xf32>
    %cst_11 = arith.constant 5.000000e-01 : f32
    %18 = vector.broadcast %cst_11 : f32 to vector<1x16xf32>
    %19 = arith.cmpf ogt, %17, %18 : vector<1x16xf32>
    %cst_12 = arith.constant -9.99999984E+17 : f32
    %cst_13 = arith.constant 0.000000e+00 : f32
    %20 = vector.broadcast %cst_12 : f32 to vector<1x16xf32>
    %21 = vector.broadcast %cst_13 : f32 to vector<1x16xf32>
    %22 = arith.select %19, %20, %21 : vector<1x16xi1>, vector<1x16xf32>
    %c0_14 = arith.constant 0 : index
    %c0_15 = arith.constant 0 : index
    %c0_16 = arith.constant 0 : index
    %23 = vector.load %arg13[%c0_14, %c0_15, %c0_16] : memref<4x32x16xbf16, #tpu.memory_space<vmem>>, vector<4x32x16xbf16>
    "tpu.trace_start"() <{level = 10 : i32, message = "hqd,hdk->hqk"}> : () -> ()
    %cst_17 = arith.constant dense<0.000000e+00> : vector<4x8x16xf32>
    %24 = tpu.matmul %15, %23, %cst_17 {dimension_numbers = #tpu.dot_dimension_numbers<[2], [1], [1], [2], [0, 0, 0, 1, 1, 2], [0], [0]>} : vector<4x8x32xbf16>, vector<4x32x16xbf16>, vector<4x8x16xf32> -> vector<4x8x16xf32>
    "tpu.trace_stop"() : () -> ()
    %25 = vector.shape_cast %22 : vector<1x16xf32> to vector<1x1x16xf32>
    %26 = vector.broadcast %25 : vector<1x1x16xf32> to vector<4x8x16xf32>
    %27 = arith.addf %24, %26 : vector<4x8x16xf32>
    %cst_18 = arith.constant dense<0xFF800000> : vector<4x8xf32>
    %28 = vector.multi_reduction <maximumf>, %27, %cst_18 [2] : vector<4x8x16xf32> to vector<4x8xf32>
    %29 = vector.shape_cast %28 : vector<4x8xf32> to vector<4x8x1xf32>
    %30 = vector.broadcast %29 : vector<4x8x1xf32> to vector<4x8x16xf32>
    %31 = arith.subf %27, %30 : vector<4x8x16xf32>
    %32 = math.exp %31 : vector<4x8x16xf32>
    %cst_19 = arith.constant dense<0.000000e+00> : vector<4x8xf32>
    %33 = vector.multi_reduction <add>, %32, %cst_19 [2] : vector<4x8x16xf32> to vector<4x8xf32>
    %34 = vector.shape_cast %33 : vector<4x8xf32> to vector<4x8x1xf32>
    %35 = tpu.reciprocal %34 {approx = true} : vector<4x8x1xf32> -> vector<4x8x1xf32>
    %36 = vector.broadcast %35 : vector<4x8x1xf32> to vector<4x8x16xf32>
    %37 = arith.mulf %32, %36 : vector<4x8x16xf32>
    %38 = arith.truncf %37 : vector<4x8x16xf32> to vector<4x8x16xbf16>
    %c0_20 = arith.constant 0 : index
    %c0_21 = arith.constant 0 : index
    %c0_22 = arith.constant 0 : index
    %39 = vector.load %arg14[%c0_20, %c0_21, %c0_22] : memref<4x16x32xbf16, #tpu.memory_space<vmem>>, vector<4x16x32xbf16>
    "tpu.trace_start"() <{level = 10 : i32, message = "hqk,hkd->hqd"}> : () -> ()
    %cst_23 = arith.constant dense<0.000000e+00> : vector<4x8x32xf32>
    %40 = tpu.matmul %38, %39, %cst_23 {dimension_numbers = #tpu.dot_dimension_numbers<[2], [1], [1], [2], [0, 0, 0, 1, 1, 2], [0], [0]>} : vector<4x8x16xbf16>, vector<4x16x32xbf16>, vector<4x8x32xf32> -> vector<4x8x32xf32>
    "tpu.trace_stop"() : () -> ()
    %41 = tpu.transpose %40, [1, 0, 2] : vector<4x8x32xf32> -> vector<8x4x32xf32>
    %42 = vector.shape_cast %41 : vector<8x4x32xf32> to vector<8x128xf32>
    %43 = arith.truncf %42 : vector<8x128xf32> to vector<8x128xbf16>
    %c0_24 = arith.constant 0 : index
    %c384 = arith.constant 384 : index
    %44 = vector.load %arg6[%c0_24, %c384] : memref<128x512xbf16, #tpu.memory_space<vmem>>, vector<128x128xbf16>
    %cst_25 = arith.constant dense<0.000000e+00> : vector<8x128xf32>
    %45 = tpu.matmul %43, %44, %cst_25 {dimension_numbers = #tpu.dot_dimension_numbers<[1], [0], [0], [1], [0, 0, 1, 1], [], []>} : vector<8x128xbf16>, vector<128x128xbf16>, vector<8x128xf32> -> vector<8x128xf32>
    %c0_26 = arith.constant 0 : index
    %c384_27 = arith.constant 384 : index
    %46 = vector.load %arg7[%c0_26, %c384_27] : memref<1x512xf32, #tpu.memory_space<vmem>>, vector<1x128xf32>
    %47 = vector.broadcast %46 : vector<1x128xf32> to vector<8x128xf32>
    %48 = arith.addf %45, %47 : vector<8x128xf32>
    %49 = arith.addf %48, %4 : vector<8x128xf32>
    %c2 = arith.constant 2 : index
    %c0_28 = arith.constant 0 : index
    %50 = vector.load %arg5[%c2, %c0_28] : memref<4x128xf32, #tpu.memory_space<vmem>>, vector<1x128xf32>
    %c3 = arith.constant 3 : index
    %c0_29 = arith.constant 0 : index
    %51 = vector.load %arg5[%c3, %c0_29] : memref<4x128xf32, #tpu.memory_space<vmem>>, vector<1x128xf32>
    %cst_30 = arith.constant dense<0.000000e+00> : vector<8xf32>
    %52 = vector.multi_reduction <add>, %49, %cst_30 [1] : vector<8x128xf32> to vector<8xf32>
    %53 = vector.shape_cast %52 : vector<8xf32> to vector<8x1xf32>
    %cst_31 = arith.constant 1.280000e+02 : f32
    %54 = vector.broadcast %cst_31 : f32 to vector<8x1xf32>
    %55 = arith.divf %53, %54 : vector<8x1xf32>
    %56 = vector.broadcast %55 : vector<8x1xf32> to vector<8x128xf32>
    %57 = arith.subf %49, %56 : vector<8x128xf32>
    %58 = arith.mulf %57, %57 : vector<8x128xf32>
    %cst_32 = arith.constant dense<0.000000e+00> : vector<8xf32>
    %59 = vector.multi_reduction <add>, %58, %cst_32 [1] : vector<8x128xf32> to vector<8xf32>
    %60 = vector.shape_cast %59 : vector<8xf32> to vector<8x1xf32>
    %cst_33 = arith.constant 1.280000e+02 : f32
    %61 = vector.broadcast %cst_33 : f32 to vector<8x1xf32>
    %62 = arith.divf %60, %61 : vector<8x1xf32>
    %63 = vector.broadcast %55 : vector<8x1xf32> to vector<8x128xf32>
    %64 = arith.subf %49, %63 : vector<8x128xf32>
    %cst_34 = arith.constant 9.99999997E-7 : f32
    %65 = vector.broadcast %cst_34 : f32 to vector<8x1xf32>
    %66 = arith.addf %62, %65 : vector<8x1xf32>
    %67 = math.rsqrt %66 : vector<8x1xf32>
    %68 = vector.broadcast %67 : vector<8x1xf32> to vector<8x128xf32>
    %69 = arith.mulf %64, %68 : vector<8x128xf32>
    %70 = vector.broadcast %50 : vector<1x128xf32> to vector<8x128xf32>
    %71 = arith.mulf %69, %70 : vector<8x128xf32>
    %72 = vector.broadcast %51 : vector<1x128xf32> to vector<8x128xf32>
    %73 = arith.addf %71, %72 : vector<8x128xf32>
    %74 = arith.truncf %73 : vector<8x128xf32> to vector<8x128xbf16>
    %c0_35 = arith.constant 0 : index
    %c0_36 = arith.constant 0 : index
    %75 = vector.load %arg8[%c0_35, %c0_36] : memref<128x256xbf16, #tpu.memory_space<vmem>>, vector<128x256xbf16>
    %cst_37 = arith.constant dense<0.000000e+00> : vector<8x256xf32>
    %76 = tpu.matmul %74, %75, %cst_37 {dimension_numbers = #tpu.dot_dimension_numbers<[1], [0], [0], [1], [0, 0, 1, 1], [], []>} : vector<8x128xbf16>, vector<128x256xbf16>, vector<8x256xf32> -> vector<8x256xf32>
    %c0_38 = arith.constant 0 : index
    %c0_39 = arith.constant 0 : index
    %77 = vector.load %arg9[%c0_38, %c0_39] : memref<1x256xf32, #tpu.memory_space<vmem>>, vector<1x256xf32>
    %78 = vector.broadcast %77 : vector<1x256xf32> to vector<8x256xf32>
    %79 = arith.addf %76, %78 : vector<8x256xf32>
    %cst_40 = arith.constant 5.000000e-01 : f32
    %80 = vector.broadcast %cst_40 : f32 to vector<8x256xf32>
    %81 = arith.mulf %80, %79 : vector<8x256xf32>
    %cst_41 = arith.constant 4.471500e-02 : f32
    %82 = vector.broadcast %cst_41 : f32 to vector<8x256xf32>
    %83 = arith.mulf %82, %79 : vector<8x256xf32>
    %84 = arith.mulf %83, %79 : vector<8x256xf32>
    %85 = arith.mulf %84, %79 : vector<8x256xf32>
    %86 = arith.addf %79, %85 : vector<8x256xf32>
    %cst_42 = arith.constant 0.797884583 : f32
    %87 = vector.broadcast %cst_42 : f32 to vector<8x256xf32>
    %88 = arith.mulf %87, %86 : vector<8x256xf32>
    %89 = math.tanh %88 : vector<8x256xf32>
    %cst_43 = arith.constant 1.000000e+00 : f32
    %90 = vector.broadcast %cst_43 : f32 to vector<8x256xf32>
    %91 = arith.addf %90, %89 : vector<8x256xf32>
    %92 = arith.mulf %81, %91 : vector<8x256xf32>
    %93 = arith.truncf %92 : vector<8x256xf32> to vector<8x256xbf16>
    %c0_44 = arith.constant 0 : index
    %c0_45 = arith.constant 0 : index
    %94 = vector.load %arg10[%c0_44, %c0_45] : memref<256x128xbf16, #tpu.memory_space<vmem>>, vector<256x128xbf16>
    %cst_46 = arith.constant dense<0.000000e+00> : vector<8x128xf32>
    %95 = tpu.matmul %93, %94, %cst_46 {dimension_numbers = #tpu.dot_dimension_numbers<[1], [0], [0], [1], [0, 0, 1, 1], [], []>} : vector<8x256xbf16>, vector<256x128xbf16>, vector<8x128xf32> -> vector<8x128xf32>
    %c0_47 = arith.constant 0 : index
    %c0_48 = arith.constant 0 : index
    %96 = vector.load %arg11[%c0_47, %c0_48] : memref<1x128xf32, #tpu.memory_space<vmem>>, vector<1x128xf32>
    %97 = vector.broadcast %96 : vector<1x128xf32> to vector<8x128xf32>
    %98 = arith.addf %95, %97 : vector<8x128xf32>
    %99 = arith.addf %98, %49 : vector<8x128xf32>
    %c0_49 = arith.constant 0 : index
    %c0_50 = arith.constant 0 : index
    %c0_51 = arith.constant 0 : index
    %100 = vector.load %arg12[%c0_49, %c0_50, %c0_51] : memref<1x8x128xf32, #tpu.memory_space<vmem>>, vector<1x8x128xf32>
    %101 = vector.shape_cast %100 : vector<1x8x128xf32> to vector<8x128xf32>
    %102 = vector.shape_cast %99 : vector<8x128xf32> to vector<1x8x128xf32>
    tpu.vector_store %arg12[%c0_49, %c0_50, %c0_51], %102 {strides = array<i32>} : memref<1x8x128xf32, #tpu.memory_space<vmem>>, vector<1x8x128xf32>,
    return
  }
  func.func @transform_0(%arg0: i32, %arg1: i32) -> (i32, i32, i32) {
    %c0_i32 = arith.constant 0 : i32
    %c0_i32_0 = arith.constant 0 : i32
    return %arg0, %arg1, %c0_i32 : i32, i32, i32
  }
  func.func @transform_1(%arg0: i32, %arg1: i32) -> (i32, i32, i32) {
    %c0_i32 = arith.constant 0 : i32
    %c0_i32_0 = arith.constant 0 : i32
    %c0_i32_1 = arith.constant 0 : i32
    return %arg0, %c0_i32, %c0_i32_0 : i32, i32, i32
  }
  func.func @transform_2(%arg0: i32, %arg1: i32) -> (i32, i32, i32) {
    %c0_i32 = arith.constant 0 : i32
    %c0_i32_0 = arith.constant 0 : i32
    %c0_i32_1 = arith.constant 0 : i32
    return %arg0, %c0_i32, %c0_i32_0 : i32, i32, i32
  }
  func.func @transform_3(%arg0: i32, %arg1: i32) -> (i32, i32) {
    %c0_i32 = arith.constant 0 : i32
    %c0_i32_0 = arith.constant 0 : i32
    %c0_i32_1 = arith.constant 0 : i32
    return %c0_i32, %c0_i32_0 : i32, i32
  }
  func.func @transform_4(%arg0: i32, %arg1: i32) -> (i32, i32) {
    %c0_i32 = arith.constant 0 : i32
    %c0_i32_0 = arith.constant 0 : i32
    %c0_i32_1 = arith.constant 0 : i32
    return %c0_i32, %c0_i32_0 : i32, i32
  }
  func.func @transform_5(%arg0: i32, %arg1: i32) -> (i32, i32) {
    %c0_i32 = arith.constant 0 : i32
    %c0_i32_0 = arith.constant 0 : i32
    %c0_i32_1 = arith.constant 0 : i32
    return %c0_i32, %c0_i32_0 : i32, i32
  }
  func.func @transform_6(%arg0: i32, %arg1: i32) -> (i32, i32) {
    %c0_i32 = arith.constant 0 : i32
    %c0_i32_0 = arith.constant 0 : i32
    %c0_i32_1 = arith.constant 0 : i32
    return %c0_i32, %c0_i32_0 : i32, i32
  }
  func.func @transform_7(%arg0: i32, %arg1: i32) -> (i32, i32) {
    %c0_i32 = arith.constant 0 : i32
    %c0_i32_0 = arith.constant 0 : i32
    %c0_i32_1 = arith.constant 0 : i32
    return %c0_i32, %c0_i32_0 : i32, i32
  }
  func.func @transform_8(%arg0: i32, %arg1: i32) -> (i32, i32) {
    %c0_i32 = arith.constant 0 : i32
    %c0_i32_0 = arith.constant 0 : i32
    %c0_i32_1 = arith.constant 0 : i32
    return %c0_i32, %c0_i32_0 : i32, i32
  }
  func.func @transform_9(%arg0: i32, %arg1: i32) -> (i32, i32) {
    %c0_i32 = arith.constant 0 : i32
    %c0_i32_0 = arith.constant 0 : i32
    %c0_i32_1 = arith.constant 0 : i32
    return %c0_i32, %c0_i32_0 : i32, i32
  }
  func.func @transform_10(%arg0: i32, %arg1: i32) -> (i32, i32, i32) {
    %c0_i32 = arith.constant 0 : i32
    %c0_i32_0 = arith.constant 0 : i32
    return %arg0, %arg1, %c0_i32 : i32, i32, i32
  }
}

module attributes {stable_mosaic.version = 11 : i64} {
  func.func @encoder_layer_kernel(%arg0: i32, %arg1: i32, %arg2: memref<1x8x128xf32, #tpu.memory_space<vmem>>, %arg3: memref<1x16x128xf32, #tpu.memory_space<vmem>>, %arg4: memref<1x1x16xf32, #tpu.memory_space<vmem>>, %arg5: memref<4x128xf32, #tpu.memory_space<vmem>>, %arg6: memref<128x512xbf16, #tpu.memory_space<vmem>>, %arg7: memref<1x512xf32, #tpu.memory_space<vmem>>, %arg8: memref<128x256xbf16, #tpu.memory_space<vmem>>, %arg9: memref<1x256xf32, #tpu.memory_space<vmem>>, %arg10: memref<256x128xbf16, #tpu.memory_space<vmem>>, %arg11: memref<1x128xf32, #tpu.memory_space<vmem>>, %arg12: memref<1x8x128xf32, #tpu.memory_space<vmem>>, %arg13: memref<4x32x16xbf16, #tpu.memory_space<vmem>>, %arg14: memref<4x16x32xbf16, #tpu.memory_space<vmem>>) attributes {dimension_semantics = [#tpu.dimension_semantics<parallel>, #tpu.dimension_semantics<arbitrary>], iteration_bounds = array<i64: 2, 2>, scalar_prefetch = 0 : i64, scratch_operands = 2 : i64, tpu.core_type = #tpu.core_type<tc>, window_params = [{transform_indices = @transform_0, window_bounds = array<i64: 1, 8, 128>}, {transform_indices = @transform_1, window_bounds = array<i64: 1, 16, 128>}, {transform_indices = @transform_2, window_bounds = array<i64: 1, 1, 16>}, {pipeline_mode = #tpu.pipeline_mode<synchronous>, transform_indices = @transform_3, window_bounds = array<i64: 4, 128>}, {pipeline_mode = #tpu.pipeline_mode<synchronous>, transform_indices = @transform_4, window_bounds = array<i64: 128, 512>}, {pipeline_mode = #tpu.pipeline_mode<synchronous>, transform_indices = @transform_5, window_bounds = array<i64: 1, 512>}, {pipeline_mode = #tpu.pipeline_mode<synchronous>, transform_indices = @transform_6, window_bounds = array<i64: 128, 256>}, {pipeline_mode = #tpu.pipeline_mode<synchronous>, transform_indices = @transform_7, window_bounds = array<i64: 1, 256>}, {pipeline_mode = #tpu.pipeline_mode<synchronous>, transform_indices = @transform_8, window_bounds = array<i64: 256, 128>}, {pipeline_mode = #tpu.pipeline_mode<synchronous>, transform_indices = @transform_9, window_bounds = array<i64: 1, 128>}, {transform_indices = @transform_10, window_bounds = array<i64: 1, 8, 128>}]} {
    %c0_i32 = arith.constant 0 : i32
    %0 = arith.cmpi eq, %arg1, %c0_i32 : i32
    %1 = arith.extui %0 : i1 to i32
    %c0_i32_0 = arith.constant 0 : i32
    %2 = arith.cmpi ne, %1, %c0_i32_0 : i32
    scf.if %2 {
      %c0_52 = arith.constant 0 : index
      %c0_53 = arith.constant 0 : index
      %c0_54 = arith.constant 0 : index
      %103 = vector.load %arg3[%c0_52, %c0_53, %c0_54] : memref<1x16x128xf32, #tpu.memory_space<vmem>>, vector<1x16x128xf32>
      %104 = vector.shape_cast %103 : vector<1x16x128xf32> to vector<16x128xf32>
      %105 = arith.truncf %104 : vector<16x128xf32> to vector<16x128xbf16>
      %c0_55 = arith.constant 0 : index
      %c128 = arith.constant 128 : index
      %106 = vector.load %arg6[%c0_55, %c128] : memref<128x512xbf16, #tpu.memory_space<vmem>>, vector<128x256xbf16>
      %cst_56 = arith.constant dense<0.000000e+00> : vector<16x256xf32>
      %107 = tpu.matmul %105, %106, %cst_56 {dimension_numbers = #tpu.dot_dimension_numbers<[1], [0], [0], [1], [0, 0, 1, 1], [], []>} : vector<16x128xbf16>, vector<128x256xbf16>, vector<16x256xf32> -> vector<16x256xf32>
      %c0_57 = arith.constant 0 : index
      %c128_58 = arith.constant 128 : index
      %108 = vector.load %arg7[%c0_57, %c128_58] : memref<1x512xf32, #tpu.memory_space<vmem>>, vector<1x256xf32>
      %109 = vector.broadcast %108 : vector<1x256xf32> to vector<16x256xf32>
      %110 = arith.addf %107, %109 : vector<16x256xf32>
      %111 = vector.extract_strided_slice %110 {offsets = [0, 0], sizes = [16, 128], strides = [1, 1]} : vector<16x256xf32> to vector<16x128xf32>
      %112 = tpu.transpose %111, [1, 0] : vector<16x128xf32> -> vector<128x16xf32>
      %113 = vector.shape_cast %112 : vector<128x16xf32> to vector<4x32x16xf32>
      %114 = arith.truncf %113 : vector<4x32x16xf32> to vector<4x32x16xbf16>
      %c0_59 = arith.constant 0 : index
      %c0_60 = arith.constant 0 : index
      %c0_61 = arith.constant 0 : index
      %115 = vector.load %arg13[%c0_59, %c0_60, %c0_61] : memref<4x32x16xbf16, #tpu.memory_space<vmem>>, vector<4x32x16xbf16>
      tpu.vector_store %arg13[%c0_59, %c0_60, %c0_61], %114 {strides = array<i32>} : memref<4x32x16xbf16, #tpu.memory_space<vmem>>, vector<4x32x16xbf16>,
      %116 = vector.extract_strided_slice %110 {offsets = [0, 128], sizes = [16, 128], strides = [1, 1]} : vector<16x256xf32> to vector<16x128xf32>
      %117 = vector.shape_cast %116 : vector<16x128xf32> to vector<16x4x32xf32>
      %118 = tpu.transpose %117, [1, 0, 2] : vector<16x4x32xf32> -> vector<4x16x32xf32>
      %119 = arith.truncf %118 : vector<4x16x32xf32> to vector<4x16x32xbf16>
      %c0_62 = arith.constant 0 : index
      %c0_63 = arith.constant 0 : index
      %c0_64 = arith.constant 0 : index
      %120 = vector.load %arg14[%c0_62, %c0_63, %c0_64] : memref<4x16x32xbf16, #tpu.memory_space<vmem>>, vector<4x16x32xbf16>
      tpu.vector_store %arg14[%c0_62, %c0_63, %c0_64], %119 {strides = array<i32>} : memref<4x16x32xbf16, #tpu.memory_space<vmem>>, vector<4x16x32xbf16>,
    } else {
    }
    %c0 = arith.constant 0 : index
    %c0_1 = arith.constant 0 : index
    %c0_2 = arith.constant 0 : index
    %3 = vector.load %arg2[%c0, %c0_1, %c0_2] : memref<1x8x128xf32, #tpu.memory_space<vmem>>, vector<1x8x128xf32>
    %4 = vector.shape_cast %3 : vector<1x8x128xf32> to vector<8x128xf32>
    %5 = arith.truncf %4 : vector<8x128xf32> to vector<8x128xbf16>
    %c0_3 = arith.constant 0 : index
    %c0_4 = arith.constant 0 : index
    %6 = vector.load %arg6[%c0_3, %c0_4] : memref<128x512xbf16, #tpu.memory_space<vmem>>, vector<128x128xbf16>
    %cst = arith.constant dense<0.000000e+00> : vector<8x128xf32>
    %7 = tpu.matmul %5, %6, %cst {dimension_numbers = #tpu.dot_dimension_numbers<[1], [0], [0], [1], [0, 0, 1, 1], [], []>} : vector<8x128xbf16>, vector<128x128xbf16>, vector<8x128xf32> -> vector<8x128xf32>
    %c0_5 = arith.constant 0 : index
    %c0_6 = arith.constant 0 : index
    %8 = vector.load %arg7[%c0_5, %c0_6] : memref<1x512xf32, #tpu.memory_space<vmem>>, vector<1x128xf32>
    %9 = vector.broadcast %8 : vector<1x128xf32> to vector<8x128xf32>
    %10 = arith.addf %7, %9 : vector<8x128xf32>
    %cst_7 = arith.constant 0.176776692 : f32
    %11 = vector.broadcast %cst_7 : f32 to vector<8x128xf32>
    %12 = arith.mulf %10, %11 : vector<8x128xf32>
    %13 = vector.shape_cast %12 : vector<8x128xf32> to vector<8x4x32xf32>
    %14 = tpu.transpose %13, [1, 0, 2] : vector<8x4x32xf32> -> vector<4x8x32xf32>
    %15 = arith.truncf %14 : vector<4x8x32xf32> to vector<4x8x32xbf16>
    %c0_8 = arith.constant 0 : index
    %c0_9 = arith.constant 0 : index
    %c0_10 = arith.constant 0 : index
    %16 = vector.load %arg4[%c0_8, %c0_9, %c0_10] : memref<1x1x16xf32, #tpu.memory_space<vmem>>, vector<1x1x16xf32>
    %17 = vector.shape_cast %16 : vector<1x1x16xf32> to vector<1x16xf32>
    %cst_11 = arith.constant 5.000000e-01 : f32
    %18 = vector.broadcast %cst_11 : f32 to vector<1x16xf32>
    %19 = arith.cmpf ogt, %17, %18 : vector<1x16xf32>
    %cst_12 = arith.constant -9.99999984E+17 : f32
    %cst_13 = arith.constant 0.000000e+00 : f32
    %20 = vector.broadcast %cst_12 : f32 to vector<1x16xf32>
    %21 = vector.broadcast %cst_13 : f32 to vector<1x16xf32>
    %22 = arith.select %19, %20, %21 : vector<1x16xi1>, vector<1x16xf32>
    %c0_14 = arith.constant 0 : index
    %c0_15 = arith.constant 0 : index
    %c0_16 = arith.constant 0 : index
    %23 = vector.load %arg13[%c0_14, %c0_15, %c0_16] : memref<4x32x16xbf16, #tpu.memory_space<vmem>>, vector<4x32x16xbf16>
    "tpu.trace_start"() <{level = 10 : i32, message = "hqd,hdk->hqk"}> : () -> ()
    %cst_17 = arith.constant dense<0.000000e+00> : vector<4x8x16xf32>
    %24 = tpu.matmul %15, %23, %cst_17 {dimension_numbers = #tpu.dot_dimension_numbers<[2], [1], [1], [2], [0, 0, 0, 1, 1, 2], [0], [0]>} : vector<4x8x32xbf16>, vector<4x32x16xbf16>, vector<4x8x16xf32> -> vector<4x8x16xf32>
    "tpu.trace_stop"() : () -> ()
    %25 = vector.shape_cast %22 : vector<1x16xf32> to vector<1x1x16xf32>
    %26 = vector.broadcast %25 : vector<1x1x16xf32> to vector<4x8x16xf32>
    %27 = arith.addf %24, %26 : vector<4x8x16xf32>
    %cst_18 = arith.constant dense<0xFF800000> : vector<4x8xf32>
    %28 = vector.multi_reduction <maximumf>, %27, %cst_18 [2] : vector<4x8x16xf32> to vector<4x8xf32>
    %29 = vector.shape_cast %28 : vector<4x8xf32> to vector<4x8x1xf32>
    %30 = vector.broadcast %29 : vector<4x8x1xf32> to vector<4x8x16xf32>
    %31 = arith.subf %27, %30 : vector<4x8x16xf32>
    %32 = math.exp %31 : vector<4x8x16xf32>
    %cst_19 = arith.constant dense<0.000000e+00> : vector<4x8xf32>
    %33 = vector.multi_reduction <add>, %32, %cst_19 [2] : vector<4x8x16xf32> to vector<4x8xf32>
    %34 = vector.shape_cast %33 : vector<4x8xf32> to vector<4x8x1xf32>
    %35 = tpu.reciprocal %34 {approx = true} : vector<4x8x1xf32> -> vector<4x8x1xf32>
    %36 = vector.broadcast %35 : vector<4x8x1xf32> to vector<4x8x16xf32>
    %37 = arith.mulf %32, %36 : vector<4x8x16xf32>
    %38 = arith.truncf %37 : vector<4x8x16xf32> to vector<4x8x16xbf16>
    %c0_20 = arith.constant 0 : index
    %c0_21 = arith.constant 0 : index
    %c0_22 = arith.constant 0 : index
    %39 = vector.load %arg14[%c0_20, %c0_21, %c0_22] : memref<4x16x32xbf16, #tpu.memory_space<vmem>>, vector<4x16x32xbf16>
    "tpu.trace_start"() <{level = 10 : i32, message = "hqk,hkd->hqd"}> : () -> ()
    %cst_23 = arith.constant dense<0.000000e+00> : vector<4x8x32xf32>
    %40 = tpu.matmul %38, %39, %cst_23 {dimension_numbers = #tpu.dot_dimension_numbers<[2], [1], [1], [2], [0, 0, 0, 1, 1, 2], [0], [0]>} : vector<4x8x16xbf16>, vector<4x16x32xbf16>, vector<4x8x32xf32> -> vector<4x8x32xf32>
    "tpu.trace_stop"() : () -> ()
    %41 = tpu.transpose %40, [1, 0, 2] : vector<4x8x32xf32> -> vector<8x4x32xf32>
    %42 = vector.shape_cast %41 : vector<8x4x32xf32> to vector<8x128xf32>
    %43 = arith.truncf %42 : vector<8x128xf32> to vector<8x128xbf16>
    %c0_24 = arith.constant 0 : index
    %c384 = arith.constant 384 : index
    %44 = vector.load %arg6[%c0_24, %c384] : memref<128x512xbf16, #tpu.memory_space<vmem>>, vector<128x128xbf16>
    %cst_25 = arith.constant dense<0.000000e+00> : vector<8x128xf32>
    %45 = tpu.matmul %43, %44, %cst_25 {dimension_numbers = #tpu.dot_dimension_numbers<[1], [0], [0], [1], [0, 0, 1, 1], [], []>} : vector<8x128xbf16>, vector<128x128xbf16>, vector<8x128xf32> -> vector<8x128xf32>
    %c0_26 = arith.constant 0 : index
    %c384_27 = arith.constant 384 : index
    %46 = vector.load %arg7[%c0_26, %c384_27] : memref<1x512xf32, #tpu.memory_space<vmem>>, vector<1x128xf32>
    %47 = vector.broadcast %46 : vector<1x128xf32> to vector<8x128xf32>
    %48 = arith.addf %45, %47 : vector<8x128xf32>
    %49 = arith.addf %48, %4 : vector<8x128xf32>
    %c2 = arith.constant 2 : index
    %c0_28 = arith.constant 0 : index
    %50 = vector.load %arg5[%c2, %c0_28] : memref<4x128xf32, #tpu.memory_space<vmem>>, vector<1x128xf32>
    %c3 = arith.constant 3 : index
    %c0_29 = arith.constant 0 : index
    %51 = vector.load %arg5[%c3, %c0_29] : memref<4x128xf32, #tpu.memory_space<vmem>>, vector<1x128xf32>
    %cst_30 = arith.constant dense<0.000000e+00> : vector<8xf32>
    %52 = vector.multi_reduction <add>, %49, %cst_30 [1] : vector<8x128xf32> to vector<8xf32>
    %53 = vector.shape_cast %52 : vector<8xf32> to vector<8x1xf32>
    %cst_31 = arith.constant 1.280000e+02 : f32
    %54 = vector.broadcast %cst_31 : f32 to vector<8x1xf32>
    %55 = arith.divf %53, %54 : vector<8x1xf32>
    %56 = vector.broadcast %55 : vector<8x1xf32> to vector<8x128xf32>
    %57 = arith.subf %49, %56 : vector<8x128xf32>
    %58 = arith.mulf %57, %57 : vector<8x128xf32>
    %cst_32 = arith.constant dense<0.000000e+00> : vector<8xf32>
    %59 = vector.multi_reduction <add>, %58, %cst_32 [1] : vector<8x128xf32> to vector<8xf32>
    %60 = vector.shape_cast %59 : vector<8xf32> to vector<8x1xf32>
    %cst_33 = arith.constant 1.280000e+02 : f32
    %61 = vector.broadcast %cst_33 : f32 to vector<8x1xf32>
    %62 = arith.divf %60, %61 : vector<8x1xf32>
    %63 = vector.broadcast %55 : vector<8x1xf32> to vector<8x128xf32>
    %64 = arith.subf %49, %63 : vector<8x128xf32>
    %cst_34 = arith.constant 9.99999997E-7 : f32
    %65 = vector.broadcast %cst_34 : f32 to vector<8x1xf32>
    %66 = arith.addf %62, %65 : vector<8x1xf32>
    %67 = math.rsqrt %66 : vector<8x1xf32>
    %68 = vector.broadcast %67 : vector<8x1xf32> to vector<8x128xf32>
    %69 = arith.mulf %64, %68 : vector<8x128xf32>
    %70 = vector.broadcast %50 : vector<1x128xf32> to vector<8x128xf32>
    %71 = arith.mulf %69, %70 : vector<8x128xf32>
    %72 = vector.broadcast %51 : vector<1x128xf32> to vector<8x128xf32>
    %73 = arith.addf %71, %72 : vector<8x128xf32>
    %74 = arith.truncf %73 : vector<8x128xf32> to vector<8x128xbf16>
    %c0_35 = arith.constant 0 : index
    %c0_36 = arith.constant 0 : index
    %75 = vector.load %arg8[%c0_35, %c0_36] : memref<128x256xbf16, #tpu.memory_space<vmem>>, vector<128x256xbf16>
    %cst_37 = arith.constant dense<0.000000e+00> : vector<8x256xf32>
    %76 = tpu.matmul %74, %75, %cst_37 {dimension_numbers = #tpu.dot_dimension_numbers<[1], [0], [0], [1], [0, 0, 1, 1], [], []>} : vector<8x128xbf16>, vector<128x256xbf16>, vector<8x256xf32> -> vector<8x256xf32>
    %c0_38 = arith.constant 0 : index
    %c0_39 = arith.constant 0 : index
    %77 = vector.load %arg9[%c0_38, %c0_39] : memref<1x256xf32, #tpu.memory_space<vmem>>, vector<1x256xf32>
    %78 = vector.broadcast %77 : vector<1x256xf32> to vector<8x256xf32>
    %79 = arith.addf %76, %78 : vector<8x256xf32>
    %cst_40 = arith.constant 5.000000e-01 : f32
    %80 = vector.broadcast %cst_40 : f32 to vector<8x256xf32>
    %81 = arith.mulf %80, %79 : vector<8x256xf32>
    %cst_41 = arith.constant 4.471500e-02 : f32
    %82 = vector.broadcast %cst_41 : f32 to vector<8x256xf32>
    %83 = arith.mulf %82, %79 : vector<8x256xf32>
    %84 = arith.mulf %83, %79 : vector<8x256xf32>
    %85 = arith.mulf %84, %79 : vector<8x256xf32>
    %86 = arith.addf %79, %85 : vector<8x256xf32>
    %cst_42 = arith.constant 0.797884583 : f32
    %87 = vector.broadcast %cst_42 : f32 to vector<8x256xf32>
    %88 = arith.mulf %87, %86 : vector<8x256xf32>
    %89 = math.tanh %88 : vector<8x256xf32>
    %cst_43 = arith.constant 1.000000e+00 : f32
    %90 = vector.broadcast %cst_43 : f32 to vector<8x256xf32>
    %91 = arith.addf %90, %89 : vector<8x256xf32>
    %92 = arith.mulf %81, %91 : vector<8x256xf32>
    %93 = arith.truncf %92 : vector<8x256xf32> to vector<8x256xbf16>
    %c0_44 = arith.constant 0 : index
    %c0_45 = arith.constant 0 : index
    %94 = vector.load %arg10[%c0_44, %c0_45] : memref<256x128xbf16, #tpu.memory_space<vmem>>, vector<256x128xbf16>
    %cst_46 = arith.constant dense<0.000000e+00> : vector<8x128xf32>
    %95 = tpu.matmul %93, %94, %cst_46 {dimension_numbers = #tpu.dot_dimension_numbers<[1], [0], [0], [1], [0, 0, 1, 1], [], []>} : vector<8x256xbf16>, vector<256x128xbf16>, vector<8x128xf32> -> vector<8x128xf32>
    %c0_47 = arith.constant 0 : index
    %c0_48 = arith.constant 0 : index
    %96 = vector.load %arg11[%c0_47, %c0_48] : memref<1x128xf32, #tpu.memory_space<vmem>>, vector<1x128xf32>
    %97 = vector.broadcast %96 : vector<1x128xf32> to vector<8x128xf32>
    %98 = arith.addf %95, %97 : vector<8x128xf32>
    %99 = arith.addf %98, %49 : vector<8x128xf32>
    %c0_49 = arith.constant 0 : index
    %c0_50 = arith.constant 0 : index
    %c0_51 = arith.constant 0 : index
    %100 = vector.load %arg12[%c0_49, %c0_50, %c0_51] : memref<1x8x128xf32, #tpu.memory_space<vmem>>, vector<1x8x128xf32>
    %101 = vector.shape_cast %100 : vector<1x8x128xf32> to vector<8x128xf32>
    %102 = vector.shape_cast %99 : vector<8x128xf32> to vector<1x8x128xf32>
    tpu.vector_store %arg12[%c0_49, %c0_50, %c0_51], %102 {strides = array<i32>} : memref<1x8x128xf32, #tpu.memory_space<vmem>>, vector<1x8x128xf32>,
    return
  }
  func.func @transform_0(%arg0: i32, %arg1: i32) -> (i32, i32, i32) {
    %c0_i32 = arith.constant 0 : i32
    %c0_i32_0 = arith.constant 0 : i32
    return %arg0, %arg1, %c0_i32 : i32, i32, i32
  }
  func.func @transform_1(%arg0: i32, %arg1: i32) -> (i32, i32, i32) {
    %c0_i32 = arith.constant 0 : i32
    %c0_i32_0 = arith.constant 0 : i32
    %c0_i32_1 = arith.constant 0 : i32
    return %arg0, %c0_i32, %c0_i32_0 : i32, i32, i32
  }
  func.func @transform_2(%arg0: i32, %arg1: i32) -> (i32, i32, i32) {
    %c0_i32 = arith.constant 0 : i32
    %c0_i32_0 = arith.constant 0 : i32
    %c0_i32_1 = arith.constant 0 : i32
    return %arg0, %c0_i32, %c0_i32_0 : i32, i32, i32
  }
  func.func @transform_3(%arg0: i32, %arg1: i32) -> (i32, i32) {
    %c0_i32 = arith.constant 0 : i32
    %c0_i32_0 = arith.constant 0 : i32
    %c0_i32_1 = arith.constant 0 : i32
    return %c0_i32, %c0_i32_0 : i32, i32
  }
  func.func @transform_4(%arg0: i32, %arg1: i32) -> (i32, i32) {
    %c0_i32 = arith.constant 0 : i32
    %c0_i32_0 = arith.constant 0 : i32
    %c0_i32_1 = arith.constant 0 : i32
    return %c0_i32, %c0_i32_0 : i32, i32
  }
  func.func @transform_5(%arg0: i32, %arg1: i32) -> (i32, i32) {
    %c0_i32 = arith.constant 0 : i32
    %c0_i32_0 = arith.constant 0 : i32
    %c0_i32_1 = arith.constant 0 : i32
    return %c0_i32, %c0_i32_0 : i32, i32
  }
  func.func @transform_6(%arg0: i32, %arg1: i32) -> (i32, i32) {
    %c0_i32 = arith.constant 0 : i32
    %c0_i32_0 = arith.constant 0 : i32
    %c0_i32_1 = arith.constant 0 : i32
    return %c0_i32, %c0_i32_0 : i32, i32
  }
  func.func @transform_7(%arg0: i32, %arg1: i32) -> (i32, i32) {
    %c0_i32 = arith.constant 0 : i32
    %c0_i32_0 = arith.constant 0 : i32
    %c0_i32_1 = arith.constant 0 : i32
    return %c0_i32, %c0_i32_0 : i32, i32
  }
  func.func @transform_8(%arg0: i32, %arg1: i32) -> (i32, i32) {
    %c0_i32 = arith.constant 0 : i32
    %c0_i32_0 = arith.constant 0 : i32
    %c0_i32_1 = arith.constant 0 : i32
    return %c0_i32, %c0_i32_0 : i32, i32
  }
  func.func @transform_9(%arg0: i32, %arg1: i32) -> (i32, i32) {
    %c0_i32 = arith.constant 0 : i32
    %c0_i32_0 = arith.constant 0 : i32
    %c0_i32_1 = arith.constant 0 : i32
    return %c0_i32, %c0_i32_0 : i32, i32
  }
  func.func @transform_10(%arg0: i32, %arg1: i32) -> (i32, i32, i32) {
    %c0_i32 = arith.constant 0 : i32
    %c0_i32_0 = arith.constant 0 : i32
    return %arg0, %arg1, %c0_i32 : i32, i32, i32
  }
}

</mosaic_0001>

<bundles_post_ra>
// kernel: tpu_custom_call.1
= control target key start
LH: loop header
LB: loop body
LE: loop exit
PB: predicated region body
PF: predicated region fallthrough
CT: control target
= control target key end

     0   :  { %s4169_s0 = inlined_call_operand.hbm [shape: f32[2,16,128], index: 0, kind: input, shape index: {}]   ;;  %s4170_s1 = inlined_call_operand.hbm [shape: f32[2,16,128], index: 1, kind: input, shape index: {}]   ;;  %s4171_s2 = inlined_call_operand.hbm [shape: f32[2,1,16], index: 2, kind: input, shape index: {}]   ;;  %s4172_s3 = inlined_call_operand.vmem [shape: f32[4,128], index: 3, kind: input, shape index: {}]   ;;  %s4173_s4 = inlined_call_operand.hbm [shape: bf16[128,512], index: 4, kind: input, shape index: {}]   ;;  %s4174_s5 = inlined_call_operand.vmem [shape: f32[1,512], index: 5, kind: input, shape index: {}]   ;;  %s4175_s6 = inlined_call_operand.hbm [shape: bf16[128,256], index: 6, kind: input, shape index: {}]   ;;  %s4176_s7 = inlined_call_operand.vmem [shape: f32[1,256], index: 7, kind: input, shape index: {}]   ;;  %s4177_s8 = inlined_call_operand.hbm [shape: bf16[256,128], index: 8, kind: input, shape index: {}]   ;;  %s4178_s9 = inlined_call_operand.vmem [shape: f32[1,128], index: 9, kind: input, shape index: {}]   ;;  %s4179_s10 = inlined_call_operand.hbm [shape: f32[2,16,128], index: 10, kind: output, shape index: {}]  }
   0x1   :  { %4198 = sst [smem:[#allocation30_spill]] %s4170_s1 }
   0x2   :  { %4199 = sst [smem:[#allocation31_spill]] %s4172_s3 }
   0x3   :  { %4200 = sst [smem:[#allocation32_spill]] %s4173_s4 }
   0x4   :  { %4201 = sst [smem:[#allocation33_spill]] %s4174_s5 }
   0x5   :  { %4202 = sst [smem:[#allocation34_spill]] %s4175_s6 }
   0x6   :  { %4203 = sst [smem:[#allocation35_spill]] %s4176_s7 }
   0x7   :  { %4204 = sst [smem:[#allocation36_spill]] %s4177_s8 }
   0x8   :  { %4205 = sst [smem:[#allocation37_spill]] %s4178_s9 }
   0x9   :  { %4206 = sst [smem:[#allocation38_spill]] %s4179_s10 }
   0xa   :  { %15 = vsyncpa [#allocation5], 0 }
   0xb   :  { %17 = vsyncpa [#allocation5 + $0x1], 0 }
   0xc   :  { %18 = vsyncpa [#allocation8], 0 }
   0xd   :  { %20 = vsyncpa [#allocation8 + $0x1], 0 }
   0xe   :  { %21 = vsyncpa [#allocation11], 0 }
   0xf   :  { %22 = vsyncpa [#allocation14], 0 }
  0x10   :  { %23 = vsyncpa [#allocation6], 0 }
  0x11   :  { %25 = vsyncpa [#allocation6 + $0x1], 0  ;;  %s3668_s13 = smov 0   ;;  %s3670_s14 = smov 0  }
  0x12   :  { %s3672_s15 = smov 0   ;;  %s3674_s16 = smov 0  }
  0x13   :  { %s3676_s17 = smov 0   ;;  %s3678_s18 = smov 0  }
  0x14   :  { %s3680_s19 = smov 0   ;;  %s3682_s20 = smov 0  }
  0x15   :  { %s3684_s21 = smov 0   ;;  %s3686_s22 = smov 0  }
  0x16   :  { %s3688_s23 = smov 0  }
  0x17 LB: > { %4207 = sst [smem:[#allocation21_spill]] %s3556_s16  ;;  %s3722_s24 = sadd.s32 4294967295, %s3584_s23   ;;  %s3584_s23 = sphi %s3688_s23, %s31_s23   ;;  %s3580_s22 = sphi %s3686_s22, %s4267_s22   ;;  %s3576_s21 = sphi %s3684_s21, %s4266_s21   ;;  %s3572_s20 = sphi %s3682_s20, %s4265_s20   ;;  %s3568_s19 = sphi %s3680_s19, %s4264_s19   ;;  %s3564_s18 = sphi %s3678_s18, %s4256_s18   ;;  %s3560_s17 = sphi %s3676_s17, %s4263_s17   ;;  %s3556_s16 = sphi %s3674_s16, %s4262_s16   ;;  %s3552_s15 = sphi %s3672_s15, %s4261_s15   ;;  %s3548_s14 = sphi %s3670_s14, %s4260_s14   ;;  %s3544_s13 = sphi %s3668_s13, %s4259_s13  }
  0x18   : > { %4208 = sst [smem:[#allocation22_spill]] %s3564_s18  ;;  %p91_p0 = scmp.ne.s32.totalorder %s3548_s14, %s3544_s13 }
  0x19   : > { %4209 = sst [smem:[#allocation23_spill]] %s3568_s19  ;;  %p4187_p1 = scmp.eq.s32.totalorder %s3722_s24, 0 }
  0x1a   : > { %4210 = sst [smem:[#allocation24_spill]] %s3572_s20  ;;  %p2685_p2 = scmp.ge.s32.totalorder %s3584_s23, 1 }
  0x1b   : > { %p303_p3 = scmp.lt.s32.totalorder %s3584_s23, 5  ;;  %p3730_p4 = por %p91_p0, %p4187_p1 }
  0x1c   : > { %s3586_s27 = smov [#allocation10]   ;;  %p4189_p8 = scmp.eq.s32.totalorder %s3584_s23, 0 }
  0x1d   : > { %s4211_s25 = scalar_select %p3730_p4, 1, 0 }
  0x1e   : > { %p3734_p5 = pnand %p2685_p2, %p303_p3  ;;  %s318_s28 = sshll.u32 %s3586_s27, 4  ;;  %s319_s28 = int_to_ptr.vmem [resolvable:$true] %s318_s28 }
  0x1f   : > { %4212 = sst [smem:[#allocation25_spill]] %s4211_s25  ;;  %s3301_s30 = scalar_lea.vmem %s319_s28, 4096 }
  0x20   : > { %s4213_s26 = scalar_select %p3734_p5, 1, 0 }
  0x21   : > { %p3032_p6 = pneg %p3734_p5  ;;  %p3302_p10 = scmp.ne.s32.totalorder %s319_s28, %s3301_s30 }
  0x22   : > { %4214 = sst [smem:[#allocation26_spill]] %s4213_s26  ;;  %p3309_p13 = scmp.lt.s32.totalorder %s319_s28, %s319_s28 }
  0x23   : > { %p3742_p7 = pnand %p3032_p6, %p4187_p1  ;;  %p3310_p0 = scmp.lt.s32.totalorder %s3301_s30, %s3301_s30 }
  0x25   : > { %p3292_p9 = pneg %p3742_p7  ;;  %p3311_p2 = por %p3310_p0, %p3309_p13 }
  0x27   : > { %p3304_p11 = pnand %p3302_p10, %p3292_p9 }
  0x29   : > { %p3305_p12 = pneg %p3304_p11 }
  0x2b   : > { %p3312_p3 = pnand %p3311_p2, %p3305_p12 }
  0x2d   : > { %3315 = shalt.err (!%p3312_p3)
}
  0x2e   : > { %s3587_s11 = smov 256   ;;  %s3588_s12 = smov 16  }
  0x2f   : > { %s4216_s4 = sld [smem:[#allocation32_spill]]  ;;  %p85_p6 = scmp.ne.s32.totalorder %s3552_s15, %s3548_s14 }
  0x30   : > { %p4186_p10 = scmp.lt.s32.totalorder %s3584_s23, 4  ;;  %s387_s30 = sand.u32 1, %s3584_s23  }
  0x31   : > { %p87_p11 = por %p85_p6, %p4189_p8  ;;  %s4192_s10 = sand.u32 1, %s3552_s15  }
  0x32   : > { %s2693_s9 = sshll.u32 %s4192_s10, 4  ;;  %s2831_s20 = sshll.u32 %s3580_s22, 8 }
  0x33   : > { %s4217_s1 = sld [smem:[#allocation30_spill]]  ;;  %s391_s19 = scalar_lea.vmem [#allocation7], %s2693_s9 }
  0x34   : > { %s398_s25 = sshll.u32 %s391_s19, 4  ;;  %p3772_p12 = pnand %p4186_p10, %p87_p11  ;;  %s399_s25 = int_to_ptr.vmem [resolvable:$true] %s398_s25 }
  0x35   : > { %3035 = dma.hbm_to_vmem [thread:$0]  (!%p3742_p7), %s4216_s4, 4096, %s319_s28, [#allocation11], %s3587_s11, %s3587_s11, %s3588_s12  }
  0x36   : > { %s3589_s28 = smov [#allocation12]   ;;  %s3776_s12 = scalar_lea.sflag [#allocation8], %s387_s30 }
  0x37   : > { %s334_s11 = sshll.u32 %s3589_s28, 4  ;;  %p4188_p13 = pneg %p3772_p12  ;;  %s335_s11 = int_to_ptr.vmem [resolvable:$true] %s334_s11 }
  0x38   : > { %s3329_s13 = scalar_lea.vmem %s399_s25, 256  ;;  %s3590_s3 = smov [#allocation7]  }
  0x39   : > { %s397_s5 = scalar_lea.hbm %s4217_s1, %s2831_s20  ;;  %p3330_p0 = scmp.ne.s32.totalorder %s399_s25, %s3329_s13 }
  0x3a   : > { %s3334_s7 = sshll.u32 %s3590_s3, 4  ;;  %s3335_s7 = int_to_ptr.vmem [resolvable:$false] %s3334_s7 }
  0x3b   : > { %p3332_p2 = pnand %p3330_p0, %p4188_p13  ;;  %s3336_s9 = scalar_lea.vmem %s3335_s7, 512 }
  0x3c   : > { %p3337_p6 = scmp.lt.s32.totalorder %s399_s25, %s3335_s7  ;;  %p3338_p11 = scmp.lt.s32.totalorder %s3336_s9, %s3329_s13 }
  0x3d   : > { %p3333_p3 = pneg %p3332_p2 }
  0x3e   : > { %p3339_p10 = por %p3338_p11, %p3337_p6 }
  0x40   : > { %p3340_p1 = pnand %p3339_p10, %p3333_p3 }
  0x42   : > { %3343 = shalt.err (!%p3340_p1)
}
  0x43   : > { %s3591_s19 = smov 128   ;;  %s3592_s20 = smov 8  }
  0x44   : > { %3048 = dma.hbm_to_vmem [thread:$0]  (!%p3772_p12), %s397_s5, 256, %s399_s25, %s3776_s12, %s3591_s19, %s3591_s19, %s3592_s20  }
  0x45   : > { %s3355_s27 = scalar_lea.vmem %s335_s11, 2048  ;;  %p3363_p8 = scmp.lt.s32.totalorder %s335_s11, %s335_s11 }
  0x46   : > { %p3356_p0 = scmp.ne.s32.totalorder %s335_s11, %s3355_s27  ;;  %p3364_p4 = scmp.lt.s32.totalorder %s3355_s27, %s3355_s27 }
  0x48   : > { %p3358_p2 = pnand %p3356_p0, %p3292_p9  ;;  %p3365_p5 = por %p3364_p4, %p3363_p8 }
  0x4a   : > { %p3359_p13 = pneg %p3358_p2 }
  0x4c   : > { %p3366_p6 = pnand %p3365_p5, %p3359_p13 }
  0x4e   : > { %3369 = shalt.err (!%p3366_p6)
}
  0x4f   : > { %s4219_s6 = sld [smem:[#allocation34_spill]]  ;;  %s3593_s5 = smov [#allocation13]  }
  0x50   : > { %s350_s25 = sshll.u32 %s3593_s5, 4  ;;  %s351_s25 = int_to_ptr.vmem [resolvable:$true] %s350_s25 }
  0x51   : > { %s3381_s13 = scalar_lea.vmem %s351_s25, 2048  ;;  %p3389_p11 = scmp.lt.s32.totalorder %s351_s25, %s351_s25 }
  0x52   : > { %p3382_p1 = scmp.ne.s32.totalorder %s351_s25, %s3381_s13  ;;  %p3390_p4 = scmp.lt.s32.totalorder %s3381_s13, %s3381_s13 }
  0x54   : > { %p3384_p10 = pnand %p3382_p1, %p3292_p9  ;;  %p3391_p5 = por %p3390_p4, %p3389_p11 }
  0x55   : > { %3038 = dma.hbm_to_vmem [thread:$0]  (!%p3742_p7), %s4219_s6, 2048, %s335_s11, [#allocation11], %s3591_s19, %s3591_s19, %s3592_s20  }
  0x56   : > { %p3385_p3 = pneg %p3384_p10 }
  0x58   : > { %p3392_p8 = pnand %p3391_p5, %p3385_p3 }
  0x5a   : > { %3395 = shalt.err (!%p3392_p8)
}
  0x5b   : > { %s3594_s3 = smov 64   ;;  %s3595_s11 = smov 4  }
  0x5c   : > { %s4220_s8 = sld [smem:[#allocation36_spill]]  ;;  %s2684_s19 = sadd.s32 4294967294, %s3584_s23  }
  0x5d   : > { %s40_s20 = sadd.s32 1, %s3576_s21  ;;  %s43_s27 = sadd.s32 1, %s3580_s22 }
  0x5e   : > { %p41_p9 = scmp.ge.s32.totalorder %s40_s20, 2  ;;  %s52_s30 = sadd.s32 1, %s3564_s18 }
  0x5f   : > { %p59_p13 = scmp.ne.s32.totalorder %s3564_s18, %s3560_s17  ;;  %p4222_p0 = scmp.eq.s32.totalorder %s3584_s23, 0 }
  0x60   : > { %s4269_s20 = smov (%p41_p9, %s40_s20), 0  ;;  %s4271_s27 = smov (!%p41_p9, %s43_s27), %s3580_s22 }
  0x61   : > { %4221 = sst [smem:[#allocation27_spill]] %s4269_s20  ;;  %s48_s28 = ssub.s32 %s3576_s21, %s4269_s20 }
  0x62   : > { %3041 = dma.hbm_to_vmem [thread:$0]  (!%p3742_p7), %s4220_s8, 2048, %s351_s25, [#allocation14], %s3594_s3, %s3594_s3, %s3595_s11  }
  0x63   : > { %p3815_p2 = por %p4222_p0, %p59_p13  ;;  %p45_p7 = scmp.ge.s32.totalorder %s4271_s27, 2 }
  0x64   : > { %p65_p6 = scmp.ne.s32.totalorder %s3560_s17, %s3556_s16  ;;  %s78_s5 = sadd.s32 1, %s3552_s15 }
  0x65   : > { %p290_p1 = scmp.eq.s32.totalorder %s3722_s24, 3  ;;  %s4273_s27 = smov (%p45_p7, %s4271_s27), 0 }
  0x66   : > { %4224 = sst [smem:[#allocation28_spill]] %s4273_s27  ;;  %p4225_p10 = scmp.eq.s32.totalorder %s3722_s24, 0 }
  0x67   : > { %p3831_p11 = por %p290_p1, %p59_p13  ;;  %s47_s3 = ssub.s32 %s3580_s22, %s4273_s27 }
  0x68   : > { %p3827_p3 = por %p4225_p10, %p65_p6  ;;  %p296_p4 = scmp.eq.s32.totalorder %s2684_s19, 3 }
  0x69   : > { %s4227_s13 = scalar_select %p3831_p11, 1, 0 }
  0x6a   : > { %s49_s11 = sor.u32 %s48_s28, %s47_s3  ;;  %p76_p5 = scmp.eq.s32.totalorder %s47_s3, 0 }
  0x6b   : > { %p50_p8 = scmp.eq.s32.totalorder %s49_s11, 0  ;;  %p3837_p9 = por %p296_p4, %p65_p6 }
  0x6c   : > { %s3842_s9 = scalar_select %p76_p5, %s3552_s15, %s78_s5  }
  0x6d   : > { %s4228_s7 = scalar_select %p3837_p9, 1, 0 }
  0x6e   : > { %s3845_s10 = scalar_select %p50_p8, %s3564_s18, %s52_s30  }
  0x6f   : > { %s367_s1 = sand.u32 1, %s3564_s18   ;;  %s2691_s4 = sshll.u32 %s3580_s22, 1 }
  0x70   : > { %4229 = sst [smem:[#allocation29_spill]] %s3845_s10  ;;  %s2690_s6 = sshll.u32 %s367_s1, 3 }
  0x71   : > { %s376_s8 = sadd.s32 %s3576_s21, %s2691_s4  ;;  %s371_s27 = scalar_lea.vmem [#allocation4], %s2690_s6 }
  0x72   : > { %s2692_s19 = sshll.u32 %s376_s8, 7  ;;  %s380_s20 = sshll.u32 %s371_s27, 4  ;;  %s381_s20 = int_to_ptr.vmem [resolvable:$true] %s380_s20 }
  0x73   : > { %s378_s3 = scalar_lea.hbm %s4169_s0, %s2692_s19  ;;  %p4230_p13 = scmp.lt.s32.totalorder %s3584_s23, 4 }
  0x74   : > { %s2696_s30 = sshll.u32 %s3580_s22, 4  ;;  %s4232_s5 = sand.u32 1, %s3552_s15  }
  0x75   : > { %p3857_p0 = pnand %p4230_p13, %p3815_p2  ;;  %s411_s10 = scalar_lea.vmem [#allocation9], %s4232_s5 }
  0x76   : > { %s418_s18 = sshll.u32 %s411_s10, 4  ;;  %s3867_s6 = scalar_lea.hbm %s4171_s2, %s2696_s30  ;;  %s419_s18 = int_to_ptr.vmem [resolvable:$true] %s418_s18 }
  0x77   : > { %s368_s27 = scalar_lea.sflag [#allocation5], %s367_s1  ;;  %p3398_p7 = pneg %p3857_p0 }
  0x78   : > { %s3409_s16 = scalar_lea.vmem %s381_s20, 128  ;;  %s3596_s29 = smov [#allocation4]  }
  0x79   : > { %p3410_p6 = scmp.ne.s32.totalorder %s381_s20, %s3409_s16  ;;  %s3414_s19 = sshll.u32 %s3596_s29, 4  ;;  %s3415_s19 = int_to_ptr.vmem [resolvable:$false] %s3414_s19 }
  0x7a   : > { %s3416_s28 = scalar_lea.vmem %s3415_s19, 256  ;;  %p3417_p10 = scmp.lt.s32.totalorder %s381_s20, %s3415_s19 }
  0x7b   : > { %p3412_p1 = pnand %p3410_p6, %p3398_p7  ;;  %p3418_p4 = scmp.lt.s32.totalorder %s3416_s28, %s3409_s16 }
  0x7d   : > { %p3413_p2 = pneg %p3412_p1  ;;  %p3419_p5 = por %p3418_p4, %p3417_p10 }
  0x7f   : > { %p3420_p8 = pnand %p3419_p5, %p3413_p2 }
  0x81   : > { %3423 = shalt.err (!%p3420_p8)
}
  0x82   : > { %3045 = dma.hbm_to_vmem [thread:$0]  (!%p3857_p0), %s378_s3, 128, %s381_s20, %s368_s27  }
  0x83   : > { %s3437_s1 = scalar_lea.vmem %s419_s18, 16  ;;  %p4233_p9 = pneg %p3772_p12 }
  0x84   : > { %p3438_p13 = scmp.ne.s32.totalorder %s419_s18, %s3437_s1  ;;  %s3597_s10 = smov [#allocation9]  }
  0x85   : > { %s3442_s30 = sshll.u32 %s3597_s10, 4  ;;  %s3443_s30 = int_to_ptr.vmem [resolvable:$false] %s3442_s30 }
  0x86   : > { %p3440_p7 = pnand %p3438_p13, %p4233_p9  ;;  %s3444_s5 = scalar_lea.vmem %s3443_s30, 32 }
  0x87   : > { %p3445_p1 = scmp.lt.s32.totalorder %s419_s18, %s3443_s30  ;;  %p3446_p11 = scmp.lt.s32.totalorder %s3444_s5, %s3437_s1 }
  0x88   : > { %p3441_p6 = pneg %p3440_p7 }
  0x89   : > { %p3447_p10 = por %p3446_p11, %p3445_p1 }
  0x8b   : > { %p3448_p2 = pnand %p3447_p10, %p3441_p6 }
  0x8d   : > { %3451 = shalt.err (!%p3448_p2)
}
  0x8e   : > { %3051 = dma.hbm_to_vmem [thread:$0]  (!%p3772_p12), %s3867_s6, 16, %s419_s18, %s3776_s12  }
  0x8f   : > { %s4234_s20 = sld [smem:[#allocation26_spill]] }
  0x95   : > { %p4235_p0 = scmp.ne.s32.totalorder %s4234_s20, 0 }
  0x96   : > { %s3883_s3 = sand.u32 (!%p4235_p0), 1, %s3560_s17  }
  0x97   : > { %427 = sbr.rel (%p4235_p0) target bundleno = 2825 (0xb09), region = 60  ;;  %s2698_s11 = sshll.u32 (!%p4235_p0), %s3883_s3, 3 }
  0x98   : > { %s430_s4 = scalar_lea.sflag (!%p4235_p0), [#allocation5], %s3883_s3  ;;  %s3887_s8 = scalar_lea.vmem (!%p4235_p0), [#allocation4], %s2698_s11 }
  0x9c   : > { %3523 = dma.done.wait (%p3827_p3), %s430_s4, 128  }
  0x9d   : > { %3525 = vsyncadd (%p3827_p3), %s430_s4, 4294967168  ;;  %s4236_s18 = sld [smem:[#allocation25_spill]]  ;;  %s438_s26 = sand.u32 1, %s3722_s24  }
  0x9e   : > { %s440_s12 = sand.u32 1, %s3548_s14   ;;  %s439_s27 = scalar_lea.sflag [#allocation8], %s438_s26 }
  0x9f   : > { %s3895_s6 = sshll.u32 %s440_s12, 4 }
  0xa0   : > { %s442_s16 = scalar_lea.vmem [#allocation7], %s3895_s6 }
  0xa3   : > { %p4237_p12 = scmp.ne.s32.totalorder %s4236_s18, 0 }
  0xa5   : > { %3527 = dma.done.wait (%p4237_p12), %s439_s27, 272  }
  0xa6   : > { %3529 = vsyncadd (%p4237_p12), %s439_s27, 4294967024  ;;  %s3902_s29 = scalar_lea.vmem [#allocation9], %s440_s12  ;;  %p4238_p11 = scmp.eq.s32.totalorder %s3722_s24, 0 }
  0xa8   : > { %3531 = dma.done.wait (%p4238_p11), [#allocation11], 6144   ;;  %p4239_p3 = pmov %p4238_p11 }
  0xaa   : > { %3533 = vsyncadd (%p4239_p3), [#allocation11], 4294961152  ;;  %p4240_p9 = pmov %p4239_p3 }
  0xab   : > { %p4241_p4 = pmov %p4239_p3 }
  0xac   : > { %3535 = dma.done.wait (%p4240_p9), [#allocation14], 2048  }
  0xad   : > { %3537 = vsyncadd (%p4241_p4), [#allocation14], 4294965248  ;;  %s3912_s25 = scalar_lea.vmem [#allocation15], %s2698_s11  ;;  %s4242_s19 = sld [smem:[#allocation23_spill]] }
  0xb3   : > { %p2704_p5 = scmp.ne.s32.totalorder %s4242_s19, 0 }
  0xb4   : > { %s4243_s1 = sld [smem:[#allocation33_spill]] (!%p2704_p5)  ;;  %s3599_s10 = smov (!%p2704_p5), 64  }
  0xb5   : > { %512 = sbr.rel (%p2704_p5) target bundleno = 642 (0x282), region = 88  ;;  %s3600_s30 = smov (!%p2704_p5), 96  }
  0xb6   : > { %s3601_s5 = smov (!%p2704_p5), 32  }
  0xba   : > { %v3176_v0 = vld [vmem:[#allocation10 + $0xe8] ss:$16 sps:$4 sm:$0xff]   ;;  %v3178_v1 = vld [vmem:[#allocation10 + $0xe4] ss:$16 sps:$4 sm:$0xff]   ;;  %v3598_v2 = vmov 0   ;;  %v534_v20 = vlaneseq  ;;  %vm1104_vm0 = vcmask 257024  }
  0xbb   : > { %656 = vmatprep.mubr.bf16.mxu0 %v3598_v2  ;;  %624 = vmatprep.subr.bf16.mxu0 %v3176_v0  ;;  %v3179_v3 = vld [vmem:[#allocation10 + $0xc8] ss:$16 sps:$4 sm:$0xff]   ;;  %v3181_v4 = vld [vmem:[#allocation10 + $0xc4] ss:$16 sps:$4 sm:$0xff]   ;;  %v532_v23 = vld [vmem:[%s4243_s1 + $0x1] sm:$0x3] }
  0xbc   : > { %625 = vmatpush1.bf16.msra.mxu0 %v3178_v1  ;;  %v3182_v5 = vld [vmem:[#allocation10 + $0xa8] ss:$16 sps:$4 sm:$0xff]   ;;  %v3184_v6 = vld [vmem:[#allocation10 + $0xa4] ss:$16 sps:$4 sm:$0xff]   ;;  %v535_v21 = vshrl.u32 %v534_v20, 7  ;;  %vm763_vm1 = vcmask 125952  }
  0xbd   : > { %626 = vmatprep.subr.bf16.mxu0 %v3179_v3  ;;  %v3185_v7 = vld [vmem:[#allocation10 + $0x88] ss:$16 sps:$4 sm:$0xff]   ;;  %v3187_v8 = vld [vmem:[#allocation10 + $0x84] ss:$16 sps:$4 sm:$0xff]   ;;  %v3602_v35 = vmov 1983009808  }
  0xbe   : > { %v3188_v9 = vld [vmem:[#allocation10 + $0x68] ss:$16 sps:$4 sm:$0xff]   ;;  %v3190_v10 = vld [vmem:[#allocation10 + $0x64] ss:$16 sps:$4 sm:$0xff]   ;;  %v540_v22 = vsub.s32 1, %v535_v21  ;;  %v536_v31 = vsub.s32 0, %v535_v21  ;;  %v803_v36 = vunpack.c.l.s4 %v3602_v35 }
  0xbf   : > { %v3191_v11 = vld [vmem:[#allocation10 + $0x48] ss:$16 sps:$4 sm:$0xff]   ;;  %v3193_v12 = vld [vmem:[#allocation10 + $0x44] ss:$16 sps:$4 sm:$0xff]   ;;  %v3603_v37 = vmov 1934713408  }
  0xc0   : > { %627 = vmatpush1.bf16.msra.mxu0 %v3181_v4  ;;  %v3194_v13 = vld [vmem:[#allocation10 + $0x28] ss:$16 sps:$4 sm:$0xff]   ;;  %v3196_v14 = vld [vmem:[#allocation10 + $0x24] ss:$16 sps:$4 sm:$0xff]   ;;  %v541_v24 = vrot.slane %v532_v23, %v540_v22  ;;  %v537_v32 = vrot.slane %v532_v23, %v536_v31  ;;  %v835_v38 = vunpack.c.l.s4 %v3603_v37  ;;  %v804_v39 = vunpack.c.0.s8 %v803_v36 }
  0xc1   : > { %628 = vmatprep.subr.bf16.mxu0 %v3182_v5  ;;  %v3197_v15 = vld [vmem:[#allocation10 + $0x8] ss:$16 sps:$4 sm:$0xff]   ;;  %v3199_v16 = vld [vmem:[#allocation10 + $0x4] ss:$16 sps:$4 sm:$0xff]  }
  0xc2   : > { %v513_v17 = vld [vmem:[%s442_s16] sm:$0xff]  ;;  %v514_v18 = vld [vmem:[%s442_s16 + $0x8] sm:$0xff]  ;;  %v836_v42 = vunpack.c.0.s8 %v835_v38  ;;  %v807_v43 = vsub.s32 %v804_v39, %v535_v21 }
  0xc3   : > { %v515_v19 = vpack.c.bf16 %v514_v18, %v513_v17 }
  0xc4   : > { %629 = vmatpush1.bf16.msra.mxu0 %v3184_v6  ;;  %v3922_v50 = vsub.s32 %v836_v42, %v535_v21 }
  0xc5   : > { %630 = vmatprep.subr.bf16.mxu0 %v3185_v7 }
  0xc8   : > { %631 = vmatpush1.bf16.msra.mxu0 %v3187_v8 }
  0xc9   : > { %632 = vmatprep.subr.bf16.mxu0 %v3188_v9 }
  0xcc   : > { %633 = vmatpush1.bf16.msra.mxu0 %v3190_v10 }
  0xcd   : > { %634 = vmatprep.subr.bf16.mxu0 %v3191_v11 }
  0xd0   : > { %635 = vmatpush1.bf16.msra.mxu0 %v3193_v12 }
  0xd1   : > { %636 = vmatprep.subr.bf16.mxu0 %v3194_v13 }
  0xd4   : > { %637 = vmatpush1.bf16.msra.mxu0 %v3196_v14 }
  0xd5   : > { %638 = vmatprep.subr.bf16.mxu0 %v3197_v15 }
  0xd8   : > { %639 = vmatpush1.bf16.msra.mxu0 %v3199_v16 }
  0xdb   : > { %657 = vmatmul.mubr.bf16.vlgmr.msra.gmra.mxu0 %v515_v19 }
 0x19b   : > { %v658_v25 = vpop.f32.mrf.mxu0 }
 0x19c   : > { %v659_v33 = vadd.f32 %v658_v25, %v537_v32 }
 0x19d   : > { %v660_v26 = vpop.f32.mrf.mxu0 }
 0x19e   : > { %v661_v27 = vadd.f32 %v660_v26, %v541_v24 }
 0x19f   : > { %v662_v28 = vpop.f32.mrf.mxu0 }
 0x1a0   : > { %788 = vrot.lane.b32.xlu1 %v661_v27, %s3599_s10  ;;  %782 = vrot.lane.b32.xlu0 %v661_v27, %s3600_s30  ;;  %v663_v34 = vadd.f32 %v662_v28, %v537_v32 }
 0x1a1   : > { %v664_v29 = vpop.f32.mrf.mxu0 }
 0x1a2   : > { %v665_v30 = vadd.f32 %v664_v29, %v541_v24 }
 0x1a4   : > { %790 = vrot.lane.b32.xlu1 %v665_v30, %s3599_s10  ;;  %794 = vrot.lane.b32.xlu0 %v661_v27, %s3601_s5 }
 0x1a8   : > { %796 = vrot.lane.b32.xlu1 %v665_v30, %s3601_s5  ;;  %784 = vrot.lane.b32.xlu0 %v665_v30, %s3600_s30 }
 0x1c6   : > { %667 = vxpose.xlu0.b32.start [1/2] (short) %v659_v33, 128 }
 0x1ca   : > { %668 = vxpose.xlu0.b32.end [2/2] (short) %v663_v34, 128 }
 0x212   : > { %v789_v40 = vpop.permute.xlu1 %788  ;;  %v783_v41 = vpop.permute.xlu0 %782 }
 0x213   : > { %v800_v44 = vcombine.low %v661_v27, %v789_v40  ;;  %v801_v45 = vcombine.high %v661_v27, %v789_v40 }
 0x215   : > { %v808_v51 = vrot.slane %v800_v44, %v807_v43  ;;  %v815_v52 = vrot.slane %v801_v45, %v807_v43 }
 0x216   : > { %v791_v46 = vpop.permute.xlu1 %790  ;;  %v795_v47 = vpop.permute.xlu0 %794 }
 0x217   : > { %v816_v48 = vcombine.low %v783_v41, %v795_v47  ;;  %v817_v49 = vcombine.high %v783_v41, %v795_v47  ;;  %v868_v55 = vcombine.low %v665_v30, %v791_v46  ;;  %v869_v56 = vcombine.high %v665_v30, %v791_v46 }
 0x219   : > { %v824_v53 = vrot.slane %v816_v48, %v807_v43  ;;  %v831_v54 = vrot.slane %v817_v49, %v807_v43  ;;  %v876_v5 = vrot.slane %v868_v55, %v807_v43  ;;  %v883_v6 = vrot.slane %v869_v56, %v807_v43 }
 0x21a   : > { %v797_v57 = vpop.permute.xlu1 %796  ;;  %v785_v58 = vpop.permute.xlu0 %784 }
 0x21b   : > { %v832_v59 = vcombine.low %v808_v51, %v824_v53  ;;  %v833_v60 = vcombine.high %v808_v51, %v824_v53  ;;  %v848_v61 = vcombine.low %v815_v52, %v831_v54  ;;  %v849_v62 = vcombine.high %v815_v52, %v831_v54 }
 0x21c   : > { %v884_v63 = vcombine.low %v785_v58, %v797_v57  ;;  %v885_v0 = vcombine.high %v785_v58, %v797_v57 }
 0x21d   : > { %v840_v1 = vrot.slane %v832_v59, %v3922_v50  ;;  %v847_v2 = vrot.slane %v833_v60, %v3922_v50  ;;  %v856_v3 = vrot.slane %v848_v61, %v3922_v50  ;;  %v863_v4 = vrot.slane %v849_v62, %v3922_v50 }
 0x21e   : > { %v892_v7 = vrot.slane %v884_v63, %v807_v43  ;;  %v899_v8 = vrot.slane %v885_v0, %v807_v43 }
 0x21f   : > { %v936_v9 = vcombine.low %v840_v1, %v847_v2  ;;  %v2737_v10 = vcombine.high %v840_v1, %v847_v2  ;;  %v952_v11 = vcombine.low %v856_v3, %v863_v4  ;;  %v2738_v12 = vcombine.high %v856_v3, %v863_v4 }
 0x220   : > { %v900_v13 = vcombine.low %v876_v5, %v892_v7  ;;  %v901_v14 = vcombine.high %v876_v5, %v892_v7  ;;  %v916_v15 = vcombine.low %v883_v6, %v899_v8  ;;  %v917_v16 = vcombine.high %v883_v6, %v899_v8 }
 0x221   : > { %v943_v17 = vrot.slane %v936_v9, %v807_v43  ;;  %v951_v18 = vrot.slane %v2737_v10, %v807_v43  ;;  %v959_v19 = vrot.slane %v952_v11, %v807_v43  ;;  %v967_v20 = vrot.slane %v2738_v12, %v807_v43 }
 0x222   : > { %v908_v21 = vrot.slane %v900_v13, %v3922_v50  ;;  %v915_v22 = vrot.slane %v901_v14, %v3922_v50  ;;  %v924_v23 = vrot.slane %v916_v15, %v3922_v50  ;;  %v931_v24 = vrot.slane %v917_v16, %v3922_v50 }
 0x223   : > { %v968_v25 = vcombine.low %v943_v17, %v951_v18  ;;  %v969_v26 = vcombine.high %v943_v17, %v951_v18  ;;  %v984_v27 = vcombine.low %v959_v19, %v967_v20  ;;  %v985_v28 = vcombine.high %v959_v19, %v967_v20 }
 0x224   : > { %v1004_v29 = vcombine.low %v908_v21, %v915_v22  ;;  %v2739_v30 = vcombine.high %v908_v21, %v915_v22  ;;  %v1020_v31 = vcombine.low %v924_v23, %v931_v24  ;;  %v2740_v32 = vcombine.high %v924_v23, %v931_v24 }
 0x225   : > { %v976_v33 = vrot.slane %v968_v25, %v3922_v50  ;;  %v983_v34 = vrot.slane %v969_v26, %v3922_v50  ;;  %v992_v35 = vrot.slane %v984_v27, %v3922_v50  ;;  %v999_v36 = vrot.slane %v985_v28, %v3922_v50 }
 0x226   : > { %v1011_v37 = vrot.slane %v1004_v29, %v807_v43  ;;  %v1019_v38 = vrot.slane %v2739_v30, %v807_v43  ;;  %v1027_v39 = vrot.slane %v1020_v31, %v807_v43  ;;  %v1035_v40 = vrot.slane %v2740_v32, %v807_v43 }
 0x227   : > { %v1000_v41 = vcombine.low %v976_v33, %v992_v35  ;;  %v1001_v42 = vcombine.high %v976_v33, %v992_v35  ;;  %v1002_v44 = vcombine.low %v983_v34, %v999_v36  ;;  %v1003_v45 = vcombine.high %v983_v34, %v999_v36 }
 0x228   : > { %v1036_v46 = vcombine.low %v1011_v37, %v1019_v38  ;;  %v1037_v47 = vcombine.high %v1011_v37, %v1019_v38  ;;  %v1052_v48 = vcombine.low %v1027_v39, %v1035_v40  ;;  %v1053_v49 = vcombine.high %v1027_v39, %v1035_v40 }
 0x229   : > { %v2848_v51 = vpack.c.bf16 %v1000_v41, %v1000_v41  ;;  %v2850_v52 = vpack.c.bf16 %v1001_v42, %v1001_v42  ;;  %v2852_v53 = vpack.c.bf16 %v1002_v44, %v1002_v44  ;;  %v2854_v54 = vpack.c.bf16 %v1003_v45, %v1003_v45 }
 0x22a   : > { %v1044_v55 = vrot.slane %v1036_v46, %v3922_v50  ;;  %v1051_v56 = vrot.slane %v1037_v47, %v3922_v50  ;;  %v1060_v57 = vrot.slane %v1052_v48, %v3922_v50  ;;  %v1067_v43 = vrot.slane %v1053_v49, %v3922_v50 }
 0x22b   : > { %1105 = vst.msk [vmem:[#allocation3] sm:$0xf] %vm1104_vm0, %v2848_v51  ;;  %1107 = vst.msk [vmem:[#allocation3 + $0x8] sm:$0xf] %vm1104_vm0, %v2850_v52 }
 0x22c   : > { %1109 = vst.msk [vmem:[#allocation3 + $0x10] sm:$0xf] %vm1104_vm0, %v2852_v53  ;;  %1111 = vst.msk [vmem:[#allocation3 + $0x18] sm:$0xf] %vm1104_vm0, %v2854_v54  ;;  %v1068_v58 = vcombine.low %v1044_v55, %v1060_v57  ;;  %v1069_v59 = vcombine.high %v1044_v55, %v1060_v57  ;;  %v1070_v60 = vcombine.low %v1051_v56, %v1067_v43 }
 0x22d   : > { %v1071_v61 = vcombine.high %v1051_v56, %v1067_v43 }
 0x22e   : > { %v2849_v62 = vpack.c.bf16 %v1068_v58, %v1068_v58  ;;  %v2851_v63 = vpack.c.bf16 %v1069_v59, %v1069_v59  ;;  %v2853_v0 = vpack.c.bf16 %v1070_v60, %v1070_v60 }
 0x22f   : > { %v2855_v1 = vpack.c.bf16 %v1071_v61, %v1071_v61 }
 0x230   : > { %1106 = vst.msk [vmem:[#allocation3 + $0x4] sm:$0xf] %vm1104_vm0, %v2849_v62  ;;  %1108 = vst.msk [vmem:[#allocation3 + $0xc] sm:$0xf] %vm1104_vm0, %v2851_v63 }
 0x231   : > { %1110 = vst.msk [vmem:[#allocation3 + $0x14] sm:$0xf] %vm1104_vm0, %v2853_v0  ;;  %1112 = vst.msk [vmem:[#allocation3 + $0x1c] sm:$0xf] %vm1104_vm0, %v2855_v1 }
 0x242   : > { %v683_v50 = vpop.trf.xlu0 }
 0x243   : > { %v2832_v2 = vpack.c.bf16 %v683_v50, %v683_v50 }
 0x245   : > { %764 = vst.msk [vmem:[#allocation2] sm:$0xf] %vm763_vm1, %v2832_v2 }
 0x246   : > { %v684_v3 = vpop.trf.xlu0 }
 0x247   : > { %v2833_v4 = vpack.c.bf16 %v684_v3, %v684_v3 }
 0x249   : > { %765 = vst.msk [vmem:[#allocation2 + $0x4] sm:$0xf] %vm763_vm1, %v2833_v4 }
 0x24a   : > { %v685_v5 = vpop.trf.xlu0 }
 0x24b   : > { %v2834_v6 = vpack.c.bf16 %v685_v5, %v685_v5 }
 0x24d   : > { %766 = vst.msk [vmem:[#allocation2 + $0x8] sm:$0xf] %vm763_vm1, %v2834_v6 }
 0x24e   : > { %v686_v7 = vpop.trf.xlu0 }
 0x24f   : > { %v2835_v8 = vpack.c.bf16 %v686_v7, %v686_v7 }
 0x251   : > { %767 = vst.msk [vmem:[#allocation2 + $0xc] sm:$0xf] %vm763_vm1, %v2835_v8 }
 0x252   : > { %v687_v9 = vpop.trf.xlu0 }
 0x253   : > { %v2836_v10 = vpack.c.bf16 %v687_v9, %v687_v9 }
 0x255   : > { %768 = vst.msk [vmem:[#allocation2 + $0x10] sm:$0xf] %vm763_vm1, %v2836_v10 }
 0x256   : > { %v688_v11 = vpop.trf.xlu0 }
 0x257   : > { %v2837_v12 = vpack.c.bf16 %v688_v11, %v688_v11 }
 0x259   : > { %769 = vst.msk [vmem:[#allocation2 + $0x14] sm:$0xf] %vm763_vm1, %v2837_v12 }
 0x25a   : > { %v689_v13 = vpop.trf.xlu0 }
 0x25b   : > { %v2838_v14 = vpack.c.bf16 %v689_v13, %v689_v13 }
 0x25d   : > { %770 = vst.msk [vmem:[#allocation2 + $0x18] sm:$0xf] %vm763_vm1, %v2838_v14 }
 0x25e   : > { %v690_v15 = vpop.trf.xlu0 }
 0x25f   : > { %v2839_v16 = vpack.c.bf16 %v690_v15, %v690_v15 }
 0x261   : > { %771 = vst.msk [vmem:[#allocation2 + $0x1c] sm:$0xf] %vm763_vm1, %v2839_v16 }
 0x262   : > { %v691_v17 = vpop.trf.xlu0 }
 0x263   : > { %v2840_v18 = vpack.c.bf16 %v691_v17, %v691_v17 }
 0x265   : > { %772 = vst.msk [vmem:[#allocation2 + $0x20] sm:$0xf] %vm763_vm1, %v2840_v18 }
 0x266   : > { %v692_v19 = vpop.trf.xlu0 }
 0x267   : > { %v2841_v20 = vpack.c.bf16 %v692_v19, %v692_v19 }
 0x269   : > { %773 = vst.msk [vmem:[#allocation2 + $0x24] sm:$0xf] %vm763_vm1, %v2841_v20 }
 0x26a   : > { %v693_v21 = vpop.trf.xlu0 }
 0x26b   : > { %v2842_v22 = vpack.c.bf16 %v693_v21, %v693_v21 }
 0x26d   : > { %774 = vst.msk [vmem:[#allocation2 + $0x28] sm:$0xf] %vm763_vm1, %v2842_v22 }
 0x26e   : > { %v694_v23 = vpop.trf.xlu0 }
 0x26f   : > { %v2843_v24 = vpack.c.bf16 %v694_v23, %v694_v23 }
 0x271   : > { %775 = vst.msk [vmem:[#allocation2 + $0x2c] sm:$0xf] %vm763_vm1, %v2843_v24 }
 0x272   : > { %v695_v25 = vpop.trf.xlu0 }
 0x273   : > { %v2844_v26 = vpack.c.bf16 %v695_v25, %v695_v25 }
 0x275   : > { %776 = vst.msk [vmem:[#allocation2 + $0x30] sm:$0xf] %vm763_vm1, %v2844_v26 }
 0x276   : > { %v696_v27 = vpop.trf.xlu0 }
 0x277   : > { %v2845_v28 = vpack.c.bf16 %v696_v27, %v696_v27 }
 0x279   : > { %777 = vst.msk [vmem:[#allocation2 + $0x34] sm:$0xf] %vm763_vm1, %v2845_v28 }
 0x27a   : > { %v697_v29 = vpop.trf.xlu0 }
 0x27b   : > { %v2846_v30 = vpack.c.bf16 %v697_v29, %v697_v29 }
 0x27d   : > { %778 = vst.msk [vmem:[#allocation2 + $0x38] sm:$0xf] %vm763_vm1, %v2846_v30 }
 0x27e   : > { %v698_v31 = vpop.trf.xlu0 }
 0x27f   : > { %v2847_v32 = vpack.c.bf16 %v698_v31, %v698_v31 }
 0x281   : > { %779 = vst.msk [vmem:[#allocation2 + $0x3c] sm:$0xf] %vm763_vm1, %v2847_v32 }
 0x282 PF: > { %v3604_v33 = vmov 0.0   ;;  %v3200_v34 = vld [vmem:[#allocation10 + $0xe0] ss:$16 sps:$4 sm:$0xff]   ;;  %vm3605_vm2 = vmmov 0   ;;  %s4244_s4 = sld [smem:[#allocation33_spill]]  ;;  %s3607_s18 = smov 96   ;;  %v1242_v57 = vlaneseq }
 0x283   : > { %2916 = vmatprep.subr.bf16.mxu0 %v3604_v33  ;;  %2932 = vmatprep.mubr.msk.bf16.mxu0 %vm3605_vm2, %v3604_v33  ;;  %v3201_v35 = vld [vmem:[#allocation10 + $0xc0] ss:$16 sps:$4 sm:$0xff]   ;;  %v3208_v53 = vld [vmem:[#allocation2 + $0x8] sm:$0xff]   ;;  %s3608_s26 = smov 64   ;;  %v3609_v55 = vmov 1983009808  }
 0x284   : > { %2936 = vmatprep.subr.bf16.mxu1 %v3604_v33  ;;  %2940 = vmatprep.mubr.msk.bf16.mxu1 %vm3605_vm2, %v3604_v33  ;;  %v3202_v36 = vld [vmem:[#allocation10 + $0xa0] ss:$16 sps:$4 sm:$0xff]   ;;  %v1240_v56 = vunpack.c.l.s4 %v3609_v55  ;;  %v3610_v43 = vmov 1934713408   ;;  %v3993_v60 = vshrl.u32 %v1242_v57, 7  ;;  %vm1414_vm3 = vcmask 261120  }
 0x285   : > { %2917 = vmatpush3.bf16.msra.mxu0 %v3200_v34  ;;  %v3203_v37 = vld [vmem:[#allocation10 + $0x80] ss:$16 sps:$4 sm:$0xff]   ;;  %2937 = vmatpush3.bf16.msra.mxu1 %v3208_v53  ;;  %v1272_v58 = vunpack.c.l.s4 %v3610_v43  ;;  %v3210_v31 = vld [vmem:[#allocation2 + $0x18] sm:$0xff]   ;;  %vm1623_vm5 = vcmask 130048   ;;  %vm2025_vm6 = vcmask 523264   ;;  %vm2027_vm7 = vcmask 785408  }
 0x286   : > { %2918 = vmatprep.subr.bf16.mxu0 %v3604_v33  ;;  %v3204_v38 = vld [vmem:[#allocation10 + $0x60] ss:$16 sps:$4 sm:$0xff]   ;;  %2938 = vmatprep.subr.bf16.mxu1 %v3604_v33  ;;  %v1241_v59 = vunpack.c.0.s8 %v1240_v56  ;;  %v1399_v53 = vsub.s32 0, %v3993_v60  ;;  %s4246_s10 = sld [smem:[#allocation35_spill]]  ;;  %s2529_s12 = sshll.u32 %s3912_s25, 4  ;;  %s2530_s12 = int_to_ptr.vmem [resolvable:$true] %s2529_s12 }
 0x287   : > { %v3205_v39 = vld [vmem:[#allocation10 + $0x40] ss:$16 sps:$4 sm:$0xff]   ;;  %v1273_v63 = vunpack.c.0.s8 %v1272_v58  ;;  %s4247_s30 = sld [smem:[#allocation24_spill]]  ;;  %s2514_s28 = scalar_lea.sflag [#allocation6], %s3883_s3 }
 0x288   : > { %v3206_v40 = vld [vmem:[#allocation10 + $0x20] ss:$16 sps:$4 sm:$0xff]   ;;  %v2749_v45 = vld [vmem:[%s4244_s4] ss:$0 sm:$0xff]  ;;  %v3996_v0 = vsub.s32 %v1241_v59, %v3993_v60  ;;  %s4248_s5 = sld [smem:[#allocation23_spill]]  ;;  %s3452_s1 = scalar_lea.vmem %s2530_s12, 128 }
 0x289   : > { %2919 = vmatpush3.bf16.msra.mxu0 %v3201_v35  ;;  %v3207_v41 = vld [vmem:[#allocation10] ss:$16 sps:$4 sm:$0xff]   ;;  %v3999_v5 = vsub.s32 %v1273_v63, %v3993_v60  ;;  %s4250_s16 = sld [smem:[#allocation38_spill]]  ;;  %p3453_p8 = scmp.ne.s32.totalorder %s2530_s12, %s3452_s1 }
 0x28a   : > { %2920 = vmatprep.subr.bf16.mxu0 %v3604_v33  ;;  %v3977_v42 = vld [vmem:[%s3887_s8] sm:$0xff]  ;;  %s3606_s8 = smov 32   ;;  %v3211_v34 = vld [vmem:[#allocation2 + $0x10] sm:$0xff]   ;;  %p4252_p13 = scmp.ne.s32.totalorder %s4227_s13, 0 }
 0x28b   : > { %v1114_v44 = vpack.c.bf16 %v3977_v42, %v3977_v42  ;;  %v3209_v54 = vld [vmem:[#allocation2] sm:$0xff]  }
 0x28c   : > { %2939 = vmatpush3.bf16.msra.mxu1 %v3209_v54  ;;  %p3454_p7 = pnand %p3453_p8, %p4252_p13 }
 0x28d   : > { %2921 = vmatpush3.bf16.msra.mxu0 %v3202_v36  ;;  %2944 = vmatprep.subr.bf16.mxu1 %v3604_v33  ;;  %s2827_s20 = sshll.u32 %s4247_s30, 1 }
 0x28e   : > { %2922 = vmatprep.subr.bf16.mxu0 %v3604_v33  ;;  %s2525_s11 = sadd.s32 %s4248_s5, %s2827_s20  ;;  %p3455_p6 = pneg %p3454_p7 }
 0x28f   : > { %s4251_s24 = smov %s4250_s16 }
 0x291   : > { %2923 = vmatpush3.bf16.msra.mxu0 %v3203_v37 }
 0x292   : > { %2924 = vmatprep.subr.bf16.mxu0 %v3604_v33 }
 0x295   : > { %2925 = vmatpush3.bf16.msra.mxu0 %v3204_v38  ;;  %v3212_v38 = vld [vmem:[#allocation2 + $0x28] sm:$0xff]  }
 0x296   : > { %2926 = vmatprep.subr.bf16.mxu0 %v3604_v33 }
 0x299   : > { %2927 = vmatpush3.bf16.msra.mxu0 %v3205_v39 }
 0x29a   : > { %2928 = vmatprep.subr.bf16.mxu0 %v3604_v33 }
 0x29d   : > { %2929 = vmatpush3.bf16.msra.mxu0 %v3206_v40 }
 0x29e   : > { %2930 = vmatprep.subr.bf16.mxu0 %v3604_v33 }
 0x2a1   : > { %2931 = vmatpush3.bf16.msra.mxu0 %v3207_v41 }
 0x2a2   : > { %2992 = vmatprep.subr.bf16.mxu0 %v3604_v33 }
 0x2a4   : > { %2933 = vmatmul.mubr.bf16.vlgmr.msra.gmra.mxu0 %v1114_v44  ;;  %v3213_v44 = vld [vmem:[#allocation2 + $0x20] sm:$0xff]  }
 0x2a5   : > { %3008 = vmatprep.mubr.msk.bf16.mxu0 %vm3605_vm2, %v3604_v33 }
 0x364   : > { %v1220_v46 = vpop.f32.mrf.mxu0 }
 0x365   : > { %v1221_v47 = vadd.f32 %v2749_v45, %v1220_v46  ;;  %v3214_v46 = vld [vmem:[#allocation2 + $0x38] sm:$0xff]  }
 0x366   : > { %v2934_v48 = vpop.f32.mrf.mxu0 }
 0x367   : > { %v1226_v49 = vmul.f32 0.17677669, %v1221_v47  ;;  %v3215_v48 = vld [vmem:[#allocation2 + $0x30] sm:$0xff]  }
 0x368   : > { %v1223_v51 = vpop.f32.mrf.mxu0 }
 0x369   : > { %1234 = vrot.lane.b32.xlu1 %v1226_v49, %s3606_s8  ;;  %1228 = vrot.lane.b32.xlu0 %v1226_v49, %s3607_s18 }
 0x36a   : > { %v2935_v52 = vpop.f32.mrf.mxu0 }
 0x36b   : > { %v1377_v52 = vld [vmem:[%s3902_s29] sm:$0x1]  ;;  %s4245_s29 = sld [smem:[#allocation31_spill]] }
 0x36c   : > { %vm1378_vm4 = vcmp.gt.f32.partialorder %v1377_v52, 0.5  ;;  %v3218_v52 = vld [vmem:[#allocation3 + $0x10] sm:$0xff]  }
 0x36d   : > { %1231 = vrot.lane.b32.xlu0 %v1226_v49, %s3608_s26  ;;  %v1379_v54 = vsel %vm1378_vm4, -1e+18, %v3604_v33 }
 0x36e   : > { %v1400_v55 = vrot.slane %v1379_v54, %v1399_v53 }
 0x3db   : > { %v1235_v61 = vpop.permute.xlu1 %1234  ;;  %v1229_v62 = vpop.permute.xlu0 %1228 }
 0x3dc   : > { %v1253_v1 = vcombine.low %v1229_v62, %v1235_v61  ;;  %v1254_v50 = vcombine.high %v1229_v62, %v1235_v61 }
 0x3de   : > { %v1261_v6 = vrot.slane %v1253_v1, %v3996_v0  ;;  %v1268_v7 = vrot.slane %v1254_v50, %v3996_v0 }
 0x3df   : > { %v1232_v2 = vpop.permute.xlu0 %1231 }
 0x3e0   : > { %v1237_v3 = vcombine.low %v1226_v49, %v1232_v2  ;;  %v1238_v4 = vcombine.high %v1226_v49, %v1232_v2 }
 0x3e2   : > { %v1245_v8 = vrot.slane %v1237_v3, %v3996_v0  ;;  %v1252_v9 = vrot.slane %v1238_v4, %v3996_v0 }
 0x3e4   : > { %v1269_v10 = vcombine.low %v1245_v8, %v1261_v6  ;;  %v1270_v11 = vcombine.high %v1245_v8, %v1261_v6  ;;  %v1285_v12 = vcombine.low %v1252_v9, %v1268_v7  ;;  %v1286_v13 = vcombine.high %v1252_v9, %v1268_v7 }
 0x3e6   : > { %v1277_v14 = vrot.slane %v1269_v10, %v3999_v5  ;;  %v1284_v15 = vrot.slane %v1270_v11, %v3999_v5  ;;  %v1293_v16 = vrot.slane %v1285_v12, %v3999_v5  ;;  %v1300_v17 = vrot.slane %v1286_v13, %v3999_v5 }
 0x3e8   : > { %v1305_v18 = vcombine.low %v1277_v14, %v1284_v15  ;;  %v2758_v19 = vcombine.high %v1277_v14, %v1284_v15  ;;  %v1321_v20 = vcombine.low %v1293_v16, %v1300_v17  ;;  %v2759_v21 = vcombine.high %v1293_v16, %v1300_v17 }
 0x3ea   : > { %v1312_v22 = vrot.slane %v1305_v18, %v3996_v0  ;;  %v1320_v23 = vrot.slane %v2758_v19, %v3996_v0  ;;  %v1328_v24 = vrot.slane %v1321_v20, %v3996_v0  ;;  %v1336_v25 = vrot.slane %v2759_v21, %v3996_v0 }
 0x3ec   : > { %v1337_v26 = vcombine.low %v1312_v22, %v1320_v23  ;;  %v1353_v27 = vcombine.low %v1328_v24, %v1336_v25  ;;  %v1338_v35 = vcombine.high %v1312_v22, %v1320_v23  ;;  %v1354_v36 = vcombine.high %v1328_v24, %v1336_v25 }
 0x3ee   : > { %v1345_v28 = vrot.slane %v1337_v26, %v3999_v5  ;;  %v1361_v29 = vrot.slane %v1353_v27, %v3999_v5  ;;  %v1352_v40 = vrot.slane %v1338_v35, %v3999_v5  ;;  %v1368_v41 = vrot.slane %v1354_v36, %v3999_v5  ;;  %v3216_v36 = vld [vmem:[#allocation3] sm:$0xff]  }
 0x3f0   : > { %v1369_v30 = vcombine.low %v1345_v28, %v1361_v29  ;;  %v1370_v37 = vcombine.high %v1345_v28, %v1361_v29  ;;  %v1371_v45 = vcombine.low %v1352_v40, %v1368_v41  ;;  %v1372_v49 = vcombine.high %v1352_v40, %v1368_v41 }
 0x3f2   : > { %v1373_v32 = vpack.c.bf16 %v1369_v30, %v1369_v30  ;;  %v1374_v39 = vpack.c.bf16 %v1370_v37, %v1370_v37  ;;  %v1375_v47 = vpack.c.bf16 %v1371_v45, %v1371_v45  ;;  %v1376_v51 = vpack.c.bf16 %v1372_v49, %v1372_v49 }
 0x3f4   : > { %2941 = vmatmul.mubr.msk.bf16.vlgmr.msra.gmra.mxu1 %vm1414_vm3, %v1373_v32 }
 0x3f5   : > { %2945 = vmatpush3.bf16.msra.mxu1 %v3210_v31  ;;  %2948 = vmatprep.mubr.msk.bf16.mxu1 %vm3605_vm2, %v3604_v33 }
 0x3f6   : > { %2946 = vmatprep.subr.bf16.mxu1 %v3604_v33 }
 0x3f9   : > { %2947 = vmatpush3.bf16.msra.mxu1 %v3211_v34 }
 0x3fa   : > { %2952 = vmatprep.subr.bf16.mxu1 %v3604_v33 }
 0x3fc   : > { %2949 = vmatmul.mubr.msk.bf16.vlgmr.msra.gmra.mxu1 %vm1414_vm3, %v1374_v39 }
 0x3fd   : > { %2953 = vmatpush3.bf16.msra.mxu1 %v3212_v38  ;;  %2956 = vmatprep.mubr.msk.bf16.mxu1 %vm3605_vm2, %v3604_v33 }
 0x3fe   : > { %2954 = vmatprep.subr.bf16.mxu1 %v3604_v33 }
 0x401   : > { %2955 = vmatpush3.bf16.msra.mxu1 %v3213_v44 }
 0x402   : > { %2960 = vmatprep.subr.bf16.mxu1 %v3604_v33 }
 0x404   : > { %2957 = vmatmul.mubr.msk.bf16.vlgmr.msra.gmra.mxu1 %vm1414_vm3, %v1375_v47 }
 0x405   : > { %2961 = vmatpush3.bf16.msra.mxu1 %v3214_v46  ;;  %2964 = vmatprep.mubr.msk.bf16.mxu1 %vm3605_vm2, %v3604_v33  ;;  %v3217_v46 = vld [vmem:[#allocation3 + $0x8] sm:$0xff]  }
 0x406   : > { %2962 = vmatprep.subr.bf16.mxu1 %v3604_v33 }
 0x409   : > { %2963 = vmatpush3.bf16.msra.mxu1 %v3215_v48 }
 0x40a   : > { %2968 = vmatprep.subr.bf16.mxu1 %v3604_v33 }
 0x40c   : > { %2965 = vmatmul.mubr.msk.bf16.vlgmr.msra.gmra.mxu1 %vm1414_vm3, %v1376_v51 }
 0x40d   : > { %2970 = vmatprep.mubr.msk.bf16.mxu1 %vm3605_vm2, %v3604_v33  ;;  %2969 = vmatpush3.bf16.msra.mxu1 %v3216_v36 }
 0x40e   : > { %2974 = vmatprep.subr.bf16.mxu1 %v3604_v33 }
 0x4b4   : > { %v1452_v56 = vpop.f32.mrf.mxu1 }
 0x4b5   : > { %v1453_v57 = vadd.f32 %v1452_v56, %v1400_v55 }
 0x4b6   : > { %v2942_v43 = vpop.f32.mrf.mxu1 }
 0x4b7   : > { %v1624_v58 = vsel %vm1623_vm5, %v1453_v57, -inf }
 0x4b8   : > { %1625 = vmax.xlane.f32.xlu1 %v1624_v58  ;;  %v1455_v59 = vpop.f32.mrf.mxu1 }
 0x4ba   : > { %v2943_v61 = vpop.f32.mrf.mxu1 }
 0x4bc   : > { %v1507_v62 = vpop.f32.mrf.mxu1 }
 0x4bd   : > { %v1508_v63 = vadd.f32 %v1507_v62, %v1400_v55  ;;  %v3220_v62 = vld [vmem:[#allocation10 + $0xec] ss:$16 sps:$4 sm:$0xff]  }
 0x4be   : > { %v2950_v1 = vpop.f32.mrf.mxu1  ;;  %2993 = vmatpush3.bf16.msra.mxu0 %v3220_v62 }
 0x4bf   : > { %v1627_v50 = vsel %vm1623_vm5, %v1508_v63, -inf  ;;  %2994 = vmatprep.subr.bf16.mxu0 %v3604_v33  ;;  %v3222_v1 = vld [vmem:[#allocation10 + $0xac] ss:$16 sps:$4 sm:$0xff]  }
 0x4c0   : > { %1628 = vmax.xlane.f32.xlu0 %v1627_v50  ;;  %v1510_v2 = vpop.f32.mrf.mxu1  ;;  %v3223_v50 = vld [vmem:[#allocation10 + $0x8c] ss:$16 sps:$4 sm:$0xff]  }
 0x4c1   : > { %v3224_v2 = vld [vmem:[#allocation10 + $0x6c] ss:$16 sps:$4 sm:$0xff]  }
 0x4c2   : > { %v2951_v3 = vpop.f32.mrf.mxu1 }
 0x4c3   : > { %v3225_v3 = vld [vmem:[#allocation10 + $0x4c] ss:$16 sps:$4 sm:$0xff]  }
 0x4c4   : > { %v1562_v4 = vpop.f32.mrf.mxu1 }
 0x4c5   : > { %v1563_v6 = vadd.f32 %v1562_v4, %v1400_v55 }
 0x4c6   : > { %v2958_v7 = vpop.f32.mrf.mxu1 }
 0x4c7   : > { %v1630_v8 = vsel %vm1623_vm5, %v1563_v6, -inf }
 0x4c8   : > { %1631 = vmax.xlane.f32.xlu0 %v1630_v8  ;;  %v1565_v9 = vpop.f32.mrf.mxu1 }
 0x4ca   : > { %v2959_v10 = vpop.f32.mrf.mxu1 }
 0x4cc   : > { %v1617_v11 = vpop.f32.mrf.mxu1 }
 0x4cd   : > { %v1618_v12 = vadd.f32 %v1617_v11, %v1400_v55 }
 0x4ce   : > { %v2966_v13 = vpop.f32.mrf.mxu1 }
 0x4cf   : > { %v1633_v14 = vsel %vm1623_vm5, %v1618_v12, -inf }
 0x4d0   : > { %1634 = vmax.xlane.f32.xlu1 %v1633_v14  ;;  %v1620_v15 = vpop.f32.mrf.mxu1 }
 0x4d2   : > { %v2967_v16 = vpop.f32.mrf.mxu1 }
 0x541   : > { %v1626_v17 = vpop.xlane.xlu1 %1625 }
 0x542   : > { %v1636_v18 = vsub.f32 %v1453_v57, %v1626_v17  ;;  %v3219_v57 = vld [vmem:[#allocation3 + $0x18] sm:$0xff]  }
 0x544   : > { %v1640_v19 = vmul.f32 1.442695, %v1636_v18 }
 0x546   : > { %3268 = vpow2.f32 %v1640_v19 }
 0x549   : > { %v1629_v20 = vpop.xlane.xlu0 %1628 }
 0x54a   : > { %v1637_v21 = vsub.f32 %v1508_v63, %v1629_v20  ;;  %v3221_v63 = vld [vmem:[#allocation10 + $0xcc] ss:$16 sps:$4 sm:$0xff]  }
 0x54b   : > { %2995 = vmatpush3.bf16.msra.mxu0 %v3221_v63 }
 0x54c   : > { %v1642_v22 = vmul.f32 1.442695, %v1637_v21  ;;  %2996 = vmatprep.subr.bf16.mxu0 %v3604_v33 }
 0x54e   : > { %3270 = vpow2.f32 %v1642_v22 }
 0x54f   : > { %2997 = vmatpush3.bf16.msra.mxu0 %v3222_v1 }
 0x550   : > { %2998 = vmatprep.subr.bf16.mxu0 %v3604_v33 }
 0x551   : > { %v1632_v23 = vpop.xlane.xlu0 %1631 }
 0x552   : > { %v1638_v24 = vsub.f32 %v1563_v6, %v1632_v23 }
 0x553   : > { %v3269_v25 = vpop.eup %3268  ;;  %2999 = vmatpush3.bf16.msra.mxu0 %v3223_v50 }
 0x554   : > { %v1644_v26 = vmul.f32 1.442695, %v1638_v24  ;;  %v1648_v27 = vsel %vm1623_vm5, %v3269_v25, 0.0  ;;  %3000 = vmatprep.subr.bf16.mxu0 %v3604_v33 }
 0x555   : > { %1649 = vadd.xlane.f32.xlu0 %v1648_v27 }
 0x556   : > { %3272 = vpow2.f32 %v1644_v26 }
 0x557   : > { %3001 = vmatpush3.bf16.msra.mxu0 %v3224_v2 }
 0x558   : > { %3002 = vmatprep.subr.bf16.mxu0 %v3604_v33 }
 0x559   : > { %v1635_v28 = vpop.xlane.xlu1 %1634 }
 0x55a   : > { %v1639_v29 = vsub.f32 %v1618_v12, %v1635_v28  ;;  %v3226_v28 = vld [vmem:[#allocation10 + $0x2c] ss:$16 sps:$4 sm:$0xff]  }
 0x55b   : > { %v3271_v30 = vpop.eup %3270  ;;  %3003 = vmatpush3.bf16.msra.mxu0 %v3225_v3 }
 0x55c   : > { %v1646_v31 = vmul.f32 1.442695, %v1639_v29  ;;  %v1651_v32 = vsel %vm1623_vm5, %v3271_v30, 0.0  ;;  %3004 = vmatprep.subr.bf16.mxu0 %v3604_v33 }
 0x55d   : > { %1652 = vadd.xlane.f32.xlu1 %v1651_v32 }
 0x55e   : > { %3274 = vpow2.f32 %v1646_v31 }
 0x55f   : > { %3005 = vmatpush3.bf16.msra.mxu0 %v3226_v28  ;;  %v3248_v28 = vld [vmem:[#allocation12 + $0x14] ss:$8 sps:$4 sm:$0xff]  }
 0x560   : > { %3006 = vmatprep.subr.bf16.mxu0 %v3604_v33 }
 0x563   : > { %v3273_v34 = vpop.eup %3272 }
 0x564   : > { %v1654_v35 = vsel %vm1623_vm5, %v3273_v34, 0.0 }
 0x565   : > { %1655 = vadd.xlane.f32.xlu0 %v1654_v35 }
 0x56b   : > { %v3275_v37 = vpop.eup %3274 }
 0x56c   : > { %v1657_v38 = vsel %vm1623_vm5, %v3275_v37, 0.0 }
 0x56d   : > { %1658 = vadd.xlane.f32.xlu1 %v1657_v38 }
 0x5de   : > { %v1650_v39 = vpop.xlane.xlu0 %1649 }
 0x5df   : > { %3276 = vrcp.f32 %v1650_v39  ;;  %v3227_v39 = vld [vmem:[#allocation10 + $0xc] ss:$16 sps:$4 sm:$0xff]  }
 0x5e0   : > { %3007 = vmatpush3.bf16.msra.mxu0 %v3227_v39  ;;  %v2792_v39 = vld [vmem:[%s4245_s29 + $0x3] ss:$0 sm:$0xff] }
 0x5e6   : > { %v1653_v40 = vpop.xlane.xlu1 %1652 }
 0x5e7   : > { %3278 = vrcp.f32 %v1653_v40 }
 0x5ec   : > { %v3277_v41 = vpop.eup %3276 }
 0x5ed   : > { %v1664_v44 = vmul.f32 %v3277_v41, %v3269_v25 }
 0x5ee   : > { %v1656_v45 = vpop.xlane.xlu0 %1655 }
 0x5ef   : > { %3280 = vrcp.f32 %v1656_v45  ;;  %v1668_v47 = vpack.c.bf16 %v1664_v44, %v1664_v44 }
 0x5f1   : > { %2971 = vmatmul.mubr.msk.bf16.vlgmr.msra.gmra.mxu1 %vm1623_vm5, %v1668_v47 }
 0x5f2   : > { %2975 = vmatpush3.bf16.msra.mxu1 %v3217_v46  ;;  %2976 = vmatprep.mubr.msk.bf16.mxu1 %vm3605_vm2, %v3604_v33 }
 0x5f3   : > { %2980 = vmatprep.subr.bf16.mxu1 %v3604_v33 }
 0x5f4   : > { %v3279_v48 = vpop.eup %3278 }
 0x5f5   : > { %v1665_v49 = vmul.f32 %v3279_v48, %v3271_v30 }
 0x5f6   : > { %v1659_v51 = vpop.xlane.xlu1 %1658 }
 0x5f7   : > { %3282 = vrcp.f32 %v1659_v51  ;;  %v1669_v54 = vpack.c.bf16 %v1665_v49, %v1665_v49 }
 0x5f9   : > { %2977 = vmatmul.mubr.msk.bf16.vlgmr.msra.gmra.mxu1 %vm1623_vm5, %v1669_v54 }
 0x5fa   : > { %2981 = vmatpush3.bf16.msra.mxu1 %v3218_v52  ;;  %2982 = vmatprep.mubr.msk.bf16.mxu1 %vm3605_vm2, %v3604_v33 }
 0x5fb   : > { %2986 = vmatprep.subr.bf16.mxu1 %v3604_v33 }
 0x5fc   : > { %v3281_v55 = vpop.eup %3280 }
 0x5fd   : > { %v1666_v56 = vmul.f32 %v3281_v55, %v3273_v34 }
 0x5ff   : > { %v1670_v43 = vpack.c.bf16 %v1666_v56, %v1666_v56 }
 0x601   : > { %2983 = vmatmul.mubr.msk.bf16.vlgmr.msra.gmra.mxu1 %vm1623_vm5, %v1670_v43 }
 0x602   : > { %2987 = vmatpush3.bf16.msra.mxu1 %v3219_v57  ;;  %2988 = vmatprep.mubr.msk.bf16.mxu1 %vm3605_vm2, %v3604_v33 }
 0x604   : > { %v3283_v58 = vpop.eup %3282 }
 0x605   : > { %v1667_v59 = vmul.f32 %v3283_v58, %v3275_v37 }
 0x607   : > { %v1671_v61 = vpack.c.bf16 %v1667_v59, %v1667_v59 }
 0x609   : > { %2989 = vmatmul.mubr.msk.bf16.vlgmr.msra.gmra.mxu1 %vm1623_vm5, %v1671_v61 }
 0x6b1   : > { %v1723_v4 = vpop.f32.mrf.mxu1 }
 0x6b3   : > { %v2972_v6 = vpop.f32.mrf.mxu1 }
 0x6b5   : > { %v1726_v7 = vpop.f32.mrf.mxu1 }
 0x6b7   : > { %v2973_v8 = vpop.f32.mrf.mxu1 }
 0x6b9   : > { %v1772_v9 = vpop.f32.mrf.mxu1 }
 0x6bb   : > { %v2978_v10 = vpop.f32.mrf.mxu1 }
 0x6bd   : > { %v1775_v11 = vpop.f32.mrf.mxu1 }
 0x6bf   : > { %v2979_v12 = vpop.f32.mrf.mxu1 }
 0x6c0   : > { %v3228_v12 = vld [vmem:[#allocation12 + $0x70] ss:$8 sps:$4 sm:$0xff]  }
 0x6c1   : > { %v1821_v13 = vpop.f32.mrf.mxu1 }
 0x6c2   : > { %v1876_v17 = vcombine.low %v1723_v4, %v1821_v13  ;;  %v1877_v18 = vcombine.high %v1723_v4, %v1821_v13  ;;  %v2782_v4 = vld [vmem:[%s4244_s4 + $0x3] ss:$0 sm:$0xff]  ;;  %v3230_v13 = vld [vmem:[#allocation12 + $0x74] ss:$8 sps:$4 sm:$0xff]  }
 0x6c3   : > { %v2984_v14 = vpop.f32.mrf.mxu1  ;;  %2275 = vmatprep.subr.bf16.mxu1 %v3230_v13 }
 0x6c4   : > { %v1884_v23 = vrot.slane %v1876_v17, %v3996_v0  ;;  %v1891_v24 = vrot.slane %v1877_v18, %v3996_v0  ;;  %v3233_v14 = vld [vmem:[#allocation12 + $0x64] ss:$8 sps:$4 sm:$0xff]   ;;  %2276 = vmatpush1.bf16.msra.mxu1 %v3228_v12 }
 0x6c5   : > { %v1824_v15 = vpop.f32.mrf.mxu1  ;;  %2277 = vmatprep.subr.bf16.mxu1 %v3233_v14 }
 0x6c6   : > { %v3231_v15 = vld [vmem:[#allocation12 + $0x60] ss:$8 sps:$4 sm:$0xff]  }
 0x6c7   : > { %v2985_v16 = vpop.f32.mrf.mxu1 }
 0x6c8   : > { %2278 = vmatpush1.bf16.msra.mxu1 %v3231_v15 }
 0x6c9   : > { %v1870_v19 = vpop.f32.mrf.mxu1 }
 0x6ca   : > { %v1892_v20 = vcombine.low %v1772_v9, %v1870_v19  ;;  %v1893_v21 = vcombine.high %v1772_v9, %v1870_v19 }
 0x6cb   : > { %v2990_v22 = vpop.f32.mrf.mxu1 }
 0x6cc   : > { %v1900_v25 = vrot.slane %v1892_v20, %v3996_v0  ;;  %v1907_v26 = vrot.slane %v1893_v21, %v3996_v0  ;;  %v3234_v20 = vld [vmem:[#allocation12 + $0x50] ss:$8 sps:$4 sm:$0xff]   ;;  %v3237_v21 = vld [vmem:[#allocation12 + $0x40] ss:$8 sps:$4 sm:$0xff]   ;;  %v3239_v22 = vld [vmem:[#allocation12 + $0x44] ss:$8 sps:$4 sm:$0xff]  }
 0x6cd   : > { %v1873_v27 = vpop.f32.mrf.mxu1 }
 0x6ce   : > { %v1908_v29 = vcombine.low %v1884_v23, %v1900_v25  ;;  %v1909_v30 = vcombine.high %v1884_v23, %v1900_v25  ;;  %v1924_v31 = vcombine.low %v1891_v24, %v1907_v26  ;;  %v1925_v32 = vcombine.high %v1891_v24, %v1907_v26  ;;  %v3242_v23 = vld [vmem:[#allocation12 + $0x34] ss:$8 sps:$4 sm:$0xff]   ;;  %v3240_v24 = vld [vmem:[#allocation12 + $0x30] ss:$8 sps:$4 sm:$0xff]   ;;  %v3245_v25 = vld [vmem:[#allocation12 + $0x24] ss:$8 sps:$4 sm:$0xff]  }
 0x6cf   : > { %v2991_v34 = vpop.f32.mrf.mxu1  ;;  %v3611_v26 = vmov 0   ;;  %v3243_v27 = vld [vmem:[#allocation12 + $0x20] ss:$8 sps:$4 sm:$0xff]  }
 0x6d0   : > { %v1916_v35 = vrot.slane %v1908_v29, %v3999_v5  ;;  %v1923_v36 = vrot.slane %v1909_v30, %v3999_v5  ;;  %v1932_v37 = vrot.slane %v1924_v31, %v3999_v5  ;;  %v1939_v38 = vrot.slane %v1925_v32, %v3999_v5  ;;  %2307 = vmatprep.mubr.bf16.mxu1 %v3611_v26  ;;  %v3246_v29 = vld [vmem:[#allocation12 + $0x10] ss:$8 sps:$4 sm:$0xff]   ;;  %v3251_v30 = vld [vmem:[#allocation12 + $0x4] ss:$8 sps:$4 sm:$0xff]   ;;  %v3249_v31 = vld [vmem:[#allocation12] ss:$8 sps:$4 sm:$0xff]  }
 0x6d2   : > { %v1944_v40 = vcombine.low %v1916_v35, %v1923_v36  ;;  %v2780_v41 = vcombine.high %v1916_v35, %v1923_v36  ;;  %v1960_v44 = vcombine.low %v1932_v37, %v1939_v38  ;;  %v2781_v45 = vcombine.high %v1932_v37, %v1939_v38  ;;  %v2791_v37 = vld [vmem:[%s4245_s29 + $0x2] ss:$0 sm:$0xff] }
 0x6d4   : > { %v1951_v46 = vrot.slane %v1944_v40, %v3996_v0  ;;  %v1959_v47 = vrot.slane %v2780_v41, %v3996_v0  ;;  %v1967_v48 = vrot.slane %v1960_v44, %v3996_v0  ;;  %v1975_v49 = vrot.slane %v2781_v45, %v3996_v0  ;;  %v3252_v45 = vld [vmem:[#allocation13 + $0x78] sm:$0xff]  }
 0x6d5   : > { %2894 = vmatprep.subr.bf16.mxu0 %v3252_v45 }
 0x6d6   : > { %v1977_v51 = vcombine.high %v1951_v46, %v1959_v47  ;;  %v1993_v52 = vcombine.high %v1967_v48, %v1975_v49  ;;  %v1976_v54 = vcombine.low %v1951_v46, %v1959_v47  ;;  %v1992_v55 = vcombine.low %v1967_v48, %v1975_v49  ;;  %v3253_v46 = vld [vmem:[#allocation13 + $0x38] sm:$0xff]   ;;  %v3254_v47 = vld [vmem:[#allocation13 + $0x70] sm:$0xff]   ;;  %v3256_v49 = vld [vmem:[#allocation13 + $0x68] sm:$0xff]  }
 0x6d7   : > { %v3255_v48 = vld [vmem:[#allocation13 + $0x30] sm:$0xff]  }
 0x6d8   : > { %v1991_v33 = vrot.slane %v1977_v51, %v3999_v5  ;;  %v2007_v56 = vrot.slane %v1993_v52, %v3999_v5  ;;  %v1984_v57 = vrot.slane %v1976_v54, %v3999_v5  ;;  %v2000_v43 = vrot.slane %v1992_v55, %v3999_v5  ;;  %v3257_v51 = vld [vmem:[#allocation13 + $0x28] sm:$0xff]   ;;  %v3258_v52 = vld [vmem:[#allocation13 + $0x60] sm:$0xff]   ;;  %v3260_v55 = vld [vmem:[#allocation13 + $0x58] sm:$0xff]  }
 0x6d9   : > { %v3259_v54 = vld [vmem:[#allocation13 + $0x20] sm:$0xff]  }
 0x6da   : > { %v2010_v58 = vcombine.low %v1991_v33, %v2007_v56  ;;  %v2009_v59 = vcombine.high %v1984_v57, %v2000_v43  ;;  %v2008_v61 = vcombine.low %v1984_v57, %v2000_v43  ;;  %v2011_v0 = vcombine.high %v1991_v33, %v2007_v56  ;;  %v3261_v33 = vld [vmem:[#allocation13 + $0x18] sm:$0xff]   ;;  %v3262_v56 = vld [vmem:[#allocation13 + $0x50] sm:$0xff]   ;;  %v3264_v43 = vld [vmem:[#allocation13 + $0x48] sm:$0xff]  }
 0x6db   : > { %v3263_v57 = vld [vmem:[#allocation13 + $0x10] sm:$0xff]  }
 0x6dc   : > { %2017 = vrot.lane.b32.xlu1 %v2010_v58, %s3608_s26  ;;  %2013 = vrot.lane.b32.xlu0 %v2009_v59, %s3606_s8  ;;  %v3265_v58 = vld [vmem:[#allocation13 + $0x8] sm:$0xff]   ;;  %v3266_v59 = vld [vmem:[#allocation13 + $0x40] sm:$0xff]   ;;  %s2828_s26 = sshll.u32 %s2525_s11, 7 }
 0x6dd   : > { %s2527_s19 = scalar_lea.hbm %s4250_s16, %s2828_s26 }
 0x6e0   : > { %2021 = vrot.lane.b32.xlu1 %v2011_v0, %s3607_s18  ;;  %v2183_v0 = vld [vmem:[%s4246_s10] sm:$0x3]  ;;  %s4249_s18 = sld [smem:[#allocation37_spill]]  ;;  %s3612_s10 = smov [#allocation15]  }
 0x6e1   : > { %s3456_s30 = sshll.u32 %s3612_s10, 4  ;;  %s3457_s30 = int_to_ptr.vmem [resolvable:$false] %s3456_s30 }
 0x6e2   : > { %s3458_s5 = scalar_lea.vmem %s3457_s30, 256  ;;  %p3459_p1 = scmp.lt.s32.totalorder %s2530_s12, %s3457_s30 }
 0x6e3   : > { %p3460_p10 = scmp.lt.s32.totalorder %s3458_s5, %s3452_s1 }
 0x6e5   : > { %p3461_p2 = por %p3460_p10, %p3459_p1 }
 0x6e6   : > { %v2809_v26 = vld [vmem:[%s4249_s18] ss:$0 sm:$0xff] }
 0x6e7   : > { %p3462_p0 = pnand %p3461_p2, %p3455_p6 }
 0x74e   : > { %v2018_v62 = vpop.permute.xlu1 %2017  ;;  %v2014_v63 = vpop.permute.xlu0 %2013 }
 0x74f   : > { %v2024_v1 = vsel %vm1414_vm3, %v2008_v61, %v2014_v63  ;;  %v3267_v61 = vld [vmem:[#allocation13] sm:$0xff]   ;;  %v2188_v63 = vrot.slane %v2183_v0, %v1399_v53 }
 0x750   : > { %v2026_v2 = vsel %vm2025_vm6, %v2024_v1, %v2018_v62  ;;  %v2191_v62 = vsub.s32 1, %v3993_v60 }
 0x752   : > { %v2022_v50 = vpop.permute.xlu1 %2021  ;;  %v2192_v1 = vrot.slane %v2183_v0, %v2191_v62 }
 0x753   : > { %v2028_v3 = vsel %vm2027_vm7, %v2026_v2, %v2022_v50 }
 0x754   : > { %v2029_v5 = vpack.c.bf16 %v2028_v3, %v2028_v3 }
 0x756   : > { %3009 = vmatmul.mubr.bf16.vlgmr.msra.gmra.mxu0 %v2029_v5 }
 0x757   : > { %2895 = vmatpush3.bf16.msra.mxu0 %v3253_v46 }
 0x758   : > { %2896 = vmatprep.subr.bf16.mxu0 %v3254_v47 }
 0x75b   : > { %2897 = vmatpush3.bf16.msra.mxu0 %v3255_v48 }
 0x75c   : > { %2898 = vmatprep.subr.bf16.mxu0 %v3256_v49 }
 0x75f   : > { %2899 = vmatpush3.bf16.msra.mxu0 %v3257_v51 }
 0x760   : > { %2900 = vmatprep.subr.bf16.mxu0 %v3258_v52 }
 0x763   : > { %2901 = vmatpush3.bf16.msra.mxu0 %v3259_v54 }
 0x764   : > { %2902 = vmatprep.subr.bf16.mxu0 %v3260_v55 }
 0x767   : > { %2903 = vmatpush3.bf16.msra.mxu0 %v3261_v33 }
 0x768   : > { %2904 = vmatprep.subr.bf16.mxu0 %v3262_v56 }
 0x76b   : > { %2905 = vmatpush3.bf16.msra.mxu0 %v3263_v57 }
 0x76c   : > { %2906 = vmatprep.subr.bf16.mxu0 %v3264_v43 }
 0x76f   : > { %2907 = vmatpush3.bf16.msra.mxu0 %v3265_v58 }
 0x770   : > { %2908 = vmatprep.subr.bf16.mxu0 %v3266_v59 }
 0x773   : > { %2909 = vmatpush3.bf16.msra.mxu0 %v3267_v61 }
 0x816   : > { %v2135_v6 = vpop.f32.mrf.mxu0 }
 0x817   : > { %v2136_v7 = vadd.f32 %v2782_v4, %v2135_v6 }
 0x818   : > { %v3010_v8 = vpop.f32.mrf.mxu0 }
 0x819   : > { %v4092_v9 = vadd.f32 %v2136_v7, %v3977_v42  ;;  %v3236_v42 = vld [vmem:[#allocation12 + $0x54] ss:$8 sps:$4 sm:$0xff]  }
 0x81a   : > { %v2138_v10 = vpop.f32.mrf.mxu0  ;;  %2279 = vmatprep.subr.bf16.mxu1 %v3236_v42 }
 0x81b   : > { %2144 = vadd.xlane.f32.xlu0 %v4092_v9  ;;  %2280 = vmatpush1.bf16.msra.mxu1 %v3234_v20 }
 0x81c   : > { %v3011_v11 = vpop.f32.mrf.mxu0  ;;  %2281 = vmatprep.subr.bf16.mxu1 %v3239_v22 }
 0x81f   : > { %2282 = vmatpush1.bf16.msra.mxu1 %v3237_v21 }
 0x820   : > { %2283 = vmatprep.subr.bf16.mxu1 %v3242_v23 }
 0x823   : > { %2284 = vmatpush1.bf16.msra.mxu1 %v3240_v24 }
 0x824   : > { %2285 = vmatprep.subr.bf16.mxu1 %v3245_v25 }
 0x827   : > { %2286 = vmatpush1.bf16.msra.mxu1 %v3243_v27 }
 0x828   : > { %2287 = vmatprep.subr.bf16.mxu1 %v3248_v28 }
 0x82b   : > { %2288 = vmatpush1.bf16.msra.mxu1 %v3246_v29 }
 0x82c   : > { %2289 = vmatprep.subr.bf16.mxu1 %v3251_v30 }
 0x82f   : > { %2290 = vmatpush1.bf16.msra.mxu1 %v3249_v31 }
 0x8a4   : > { %v2145_v16 = vpop.xlane.xlu0 %2144 }
 0x8a5   : > { %v2147_v17 = vmul.f32 0.0078125, %v2145_v16 }
 0x8a7   : > { %v2148_v18 = vsub.f32 %v4092_v9, %v2147_v17 }
 0x8a9   : > { %v2149_v19 = vmul.f32 %v2148_v18, %v2148_v18 }
 0x8ab   : > { %2150 = vadd.xlane.f32.xlu1 %v2149_v19 }
 0x934   : > { %v2151_v32 = vpop.xlane.xlu1 %2150 }
 0x935   : > { %v2152_v34 = vmul.f32 0.0078125, %v2151_v32 }
 0x937   : > { %v2153_v35 = vadd.f32 1e-06, %v2152_v34 }
 0x939   : > { %3284 = vrsqrt.f32 %v2153_v35 }
 0x946   : > { %v3285_v36 = vpop.eup %3284 }
 0x947   : > { %v2155_v38 = vmul.f32 %v3285_v36, %v2148_v18 }
 0x949   : > { %v2160_v40 = vmul.f32 %v2791_v37, %v2155_v38 }
 0x94b   : > { %v2165_v41 = vadd.f32 %v2792_v39, %v2160_v40 }
 0x94d   : > { %v2166_v44 = vpack.c.bf16 %v2165_v41, %v2165_v41 }
 0x94f   : > { %2308 = vmatmul.mubr.bf16.vlgmr.msra.gmra.mxu1 %v2166_v44 }
 0xa0f   : > { %v2309_v50 = vpop.f32.mrf.mxu1 }
 0xa10   : > { %v2310_v2 = vadd.f32 %v2309_v50, %v2188_v63 }
 0xa11   : > { %v2311_v3 = vpop.f32.mrf.mxu1 }
 0xa12   : > { %v2318_v5 = vmul.f32 0.044715, %v2310_v2  ;;  %v2312_v4 = vadd.f32 %v2311_v3, %v2192_v1  ;;  %v2316_v19 = vmul.f32 0.5, %v2310_v2 }
 0xa13   : > { %v2313_v6 = vpop.f32.mrf.mxu1 }
 0xa14   : > { %v2320_v7 = vmul.f32 %v2318_v5, %v2310_v2  ;;  %v2319_v8 = vmul.f32 0.044715, %v2312_v4  ;;  %v2317_v42 = vmul.f32 0.5, %v2312_v4 }
 0xa15   : > { %v2314_v10 = vpop.f32.mrf.mxu1 }
 0xa16   : > { %v2322_v11 = vmul.f32 %v2320_v7, %v2310_v2  ;;  %v2321_v12 = vmul.f32 %v2319_v8, %v2312_v4 }
 0xa18   : > { %v2324_v13 = vadd.f32 %v2322_v11, %v2310_v2  ;;  %v2323_v14 = vmul.f32 %v2321_v12, %v2312_v4 }
 0xa1a   : > { %v2326_v15 = vmul.f32 0.7978846, %v2324_v13  ;;  %v2325_v16 = vadd.f32 %v2323_v14, %v2312_v4 }
 0xa1c   : > { %v2327_v17 = vmul.f32 0.7978846, %v2325_v16  ;;  %3286 = vtanh.f32 %v2326_v15 }
 0xa1e   : > { %3288 = vtanh.f32 %v2327_v17 }
 0xa29   : > { %v3287_v60 = vpop.eup %3286 }
 0xa2a   : > { %v2330_v53 = vadd.f32 1.0, %v3287_v60 }
 0xa2b   : > { %v3289_v18 = vpop.eup %3288 }
 0xa2c   : > { %v2331_v20 = vadd.f32 1.0, %v3289_v18  ;;  %v2332_v21 = vmul.f32 %v2330_v53, %v2316_v19 }
 0xa2e   : > { %v2333_v22 = vmul.f32 %v2331_v20, %v2317_v42  ;;  %v2334_v24 = vpack.c.bf16 %v2332_v21, %v2332_v21 }
 0xa30   : > { %v2335_v23 = vpack.c.bf16 %v2333_v22, %v2333_v22 }
 0xa32   : > { %2503 = vmatprep.mubr.bf16.mxu0 %v2335_v23 }
 0xa33   : > { %2504 = vmatmul.mubr.bf16.vlgmr.msra.gmra.mxu0 %v2334_v24 }
 0xaf3   : > { %v2910_v25 = vpop.f32.mrf.mxu0 }
 0xaf5   : > { %v2911_v27 = vpop.f32.mrf.mxu0 }
 0xaf6   : > { %v2912_v28 = vadd.f32 %v2911_v27, %v2910_v25 }
 0xaf7   : > { %v2913_v29 = vpop.f32.mrf.mxu0 }
 0xaf8   : > { %v2506_v30 = vadd.f32 %v2912_v28, %v2809_v26 }
 0xaf9   : > { %v2914_v31 = vpop.f32.mrf.mxu0 }
 0xafa   : > { %v2511_v32 = vadd.f32 %v2506_v30, %v4092_v9 }
 0xafc   : > { %2512 = vst [vmem:[%s3912_s25] sm:$0xff] %v2511_v32 }
 0xafd   : > { %3465 = shalt.err (!%p3462_p0)
}
 0xafe   : > { %s3466_s20 = scalar_lea.hbm %s2527_s19, 128  ;;  %s3470_s11 = scalar_lea.hbm %s4251_s24, 512 }
 0xaff   : > { %p3467_p12 = scmp.ne.s32.totalorder %s2527_s19, %s3466_s20  ;;  %p3471_p9 = scmp.lt.s32.totalorder %s2527_s19, %s4251_s24 }
 0xb00   : > { %p3472_p4 = scmp.lt.s32.totalorder %s3470_s11, %s3466_s20 }
 0xb01   : > { %p3468_p11 = pnand %p3467_p12, %p4252_p13 }
 0xb02   : > { %p3473_p5 = por %p3472_p4, %p3471_p9 }
 0xb03   : > { %p3469_p3 = pneg %p3468_p11 }
 0xb05   : > { %p3474_p8 = pnand %p3473_p5, %p3469_p3 }
 0xb07   : > { %3477 = shalt.err (!%p3474_p8)
}
 0xb08   : > { %3030 = dma.vmem_to_hbm [thread:$0]  (%p4252_p13), %s2530_s12, 128, %s2527_s19, %s2514_s28  }
 0xb09 PF: > { %s4253_s18 = sld [smem:[#allocation21_spill]]  ;;  %p3063_p7 = scmp.ge.s32.totalorder %s3584_s23, 2 }
 0xb0a   : > { %p4254_p6 = scmp.ne.s32.totalorder %s4228_s7, 0 }
 0xb0c   : > { %p3053_p1 = pnand %p3063_p7, %p4254_p6 }
 0xb0e   : > { %p3054_p10 = pneg %p3053_p1 }
 0xb0f   : > { %s2541_s26 = sand.u32 1, %s4253_s18  }
 0xb10   : > { %s2542_s6 = scalar_lea.sflag [#allocation6], %s2541_s26 }
 0xb11   : > { %3539 = dma.done.wait (%p3054_p10), %s2542_s6, 128  }
 0xb12   : > { %3541 = vsyncadd (%p3054_p10), %s2542_s6, 4294967168  ;;  %s31_s23 = sadd.s32 1, %s3584_s23   ;;  %s4255_s12 = sld [smem:[#allocation22_spill]] }
 0xb13   : > { %p28_p2 = scmp.ge.s32.totalorder %s31_s23, 6   ;;  %s4256_s18 = sld [smem:[#allocation29_spill]] }
 0xb14   : > { %s4257_s27 = sld [smem:[#allocation27_spill]]  ;;  %s4259_s13 = smov %s3548_s14 }
 0xb15   : > { %s4258_s28 = sld [smem:[#allocation28_spill]]  ;;  %s4260_s14 = smov %s3552_s15 }
 0xb16   : > { %s4261_s15 = smov %s3842_s9  ;;  %s4262_s16 = smov %s3560_s17 }
 0xb17   : > { %s4264_s19 = smov %s3576_s21  ;;  %s4265_s20 = smov %s3580_s22 }
 0xb18   : > { %s4263_s17 = smov %s4255_s12  ;;  %30 = sbr.rel (!%p28_p2) target bundleno = 23 (0x17), region = 145 }
 0xb1a   : > { %s4266_s21 = smov %s4257_s27 }
 0xb1b   : > { %s4267_s22 = smov %s4258_s28 }
 0xb1d   :  { %2547 = vsyncpa [#allocation5], 1 }
 0xb1e   :  { %2549 = vsyncpa [#allocation5 + $0x1], 1 }
 0xb1f   :  { %2550 = vsyncpa [#allocation8], 1 }
 0xb20   :  { %2552 = vsyncpa [#allocation8 + $0x1], 1 }
 0xb21   :  { %2553 = vsyncpa [#allocation11], 1 }
 0xb22   :  { %2554 = vsyncpa [#allocation14], 1 }
 0xb23   :  { %2555 = vsyncpa [#allocation6], 1 }
 0xb24   :  { %2557 = vsyncpa [#allocation6 + $0x1], 1 }

// kernel: tpu_custom_call.1
= control target key start
LH: loop header
LB: loop body
LE: loop exit
PB: predicated region body
PF: predicated region fallthrough
CT: control target
= control target key end

     0   :  { %s4169_s0 = inlined_call_operand.hbm [shape: f32[2,16,128], index: 0, kind: input, shape index: {}]   ;;  %s4170_s1 = inlined_call_operand.hbm [shape: f32[2,16,128], index: 1, kind: input, shape index: {}]   ;;  %s4171_s2 = inlined_call_operand.hbm [shape: f32[2,1,16], index: 2, kind: input, shape index: {}]   ;;  %s4172_s3 = inlined_call_operand.vmem [shape: f32[4,128], index: 3, kind: input, shape index: {}]   ;;  %s4173_s4 = inlined_call_operand.hbm [shape: bf16[128,512], index: 4, kind: input, shape index: {}]   ;;  %s4174_s5 = inlined_call_operand.vmem [shape: f32[1,512], index: 5, kind: input, shape index: {}]   ;;  %s4175_s6 = inlined_call_operand.hbm [shape: bf16[128,256], index: 6, kind: input, shape index: {}]   ;;  %s4176_s7 = inlined_call_operand.vmem [shape: f32[1,256], index: 7, kind: input, shape index: {}]   ;;  %s4177_s8 = inlined_call_operand.hbm [shape: bf16[256,128], index: 8, kind: input, shape index: {}]   ;;  %s4178_s9 = inlined_call_operand.vmem [shape: f32[1,128], index: 9, kind: input, shape index: {}]   ;;  %s4179_s10 = inlined_call_operand.hbm [shape: f32[2,16,128], index: 10, kind: output, shape index: {}]  }
   0x1   :  { %4198 = sst [smem:[#allocation30_spill]] %s4170_s1 }
   0x2   :  { %4199 = sst [smem:[#allocation31_spill]] %s4172_s3 }
   0x3   :  { %4200 = sst [smem:[#allocation32_spill]] %s4173_s4 }
   0x4   :  { %4201 = sst [smem:[#allocation33_spill]] %s4174_s5 }
   0x5   :  { %4202 = sst [smem:[#allocation34_spill]] %s4175_s6 }
   0x6   :  { %4203 = sst [smem:[#allocation35_spill]] %s4176_s7 }
   0x7   :  { %4204 = sst [smem:[#allocation36_spill]] %s4177_s8 }
   0x8   :  { %4205 = sst [smem:[#allocation37_spill]] %s4178_s9 }
   0x9   :  { %4206 = sst [smem:[#allocation38_spill]] %s4179_s10 }
   0xa   :  { %15 = vsyncpa [#allocation5], 0 }
   0xb   :  { %17 = vsyncpa [#allocation5 + $0x1], 0 }
   0xc   :  { %18 = vsyncpa [#allocation8], 0 }
   0xd   :  { %20 = vsyncpa [#allocation8 + $0x1], 0 }
   0xe   :  { %21 = vsyncpa [#allocation11], 0 }
   0xf   :  { %22 = vsyncpa [#allocation14], 0 }
  0x10   :  { %23 = vsyncpa [#allocation6], 0 }
  0x11   :  { %25 = vsyncpa [#allocation6 + $0x1], 0  ;;  %s3668_s13 = smov 0   ;;  %s3670_s14 = smov 0  }
  0x12   :  { %s3672_s15 = smov 0   ;;  %s3674_s16 = smov 0  }
  0x13   :  { %s3676_s17 = smov 0   ;;  %s3678_s18 = smov 0  }
  0x14   :  { %s3680_s19 = smov 0   ;;  %s3682_s20 = smov 0  }
  0x15   :  { %s3684_s21 = smov 0   ;;  %s3686_s22 = smov 0  }
  0x16   :  { %s3688_s23 = smov 0  }
  0x17 LB: > { %4207 = sst [smem:[#allocation21_spill]] %s3556_s16  ;;  %s3722_s24 = sadd.s32 4294967295, %s3584_s23   ;;  %s3584_s23 = sphi %s3688_s23, %s31_s23   ;;  %s3580_s22 = sphi %s3686_s22, %s4267_s22   ;;  %s3576_s21 = sphi %s3684_s21, %s4266_s21   ;;  %s3572_s20 = sphi %s3682_s20, %s4265_s20   ;;  %s3568_s19 = sphi %s3680_s19, %s4264_s19   ;;  %s3564_s18 = sphi %s3678_s18, %s4256_s18   ;;  %s3560_s17 = sphi %s3676_s17, %s4263_s17   ;;  %s3556_s16 = sphi %s3674_s16, %s4262_s16   ;;  %s3552_s15 = sphi %s3672_s15, %s4261_s15   ;;  %s3548_s14 = sphi %s3670_s14, %s4260_s14   ;;  %s3544_s13 = sphi %s3668_s13, %s4259_s13  }
  0x18   : > { %4208 = sst [smem:[#allocation22_spill]] %s3564_s18  ;;  %p91_p0 = scmp.ne.s32.totalorder %s3548_s14, %s3544_s13 }
  0x19   : > { %4209 = sst [smem:[#allocation23_spill]] %s3568_s19  ;;  %p4187_p1 = scmp.eq.s32.totalorder %s3722_s24, 0 }
  0x1a   : > { %4210 = sst [smem:[#allocation24_spill]] %s3572_s20  ;;  %p2685_p2 = scmp.ge.s32.totalorder %s3584_s23, 1 }
  0x1b   : > { %p303_p3 = scmp.lt.s32.totalorder %s3584_s23, 5  ;;  %p3730_p4 = por %p91_p0, %p4187_p1 }
  0x1c   : > { %s3586_s27 = smov [#allocation10]   ;;  %p4189_p8 = scmp.eq.s32.totalorder %s3584_s23, 0 }
  0x1d   : > { %s4211_s25 = scalar_select %p3730_p4, 1, 0 }
  0x1e   : > { %p3734_p5 = pnand %p2685_p2, %p303_p3  ;;  %s318_s28 = sshll.u32 %s3586_s27, 4  ;;  %s319_s28 = int_to_ptr.vmem [resolvable:$true] %s318_s28 }
  0x1f   : > { %4212 = sst [smem:[#allocation25_spill]] %s4211_s25  ;;  %s3301_s30 = scalar_lea.vmem %s319_s28, 4096 }
  0x20   : > { %s4213_s26 = scalar_select %p3734_p5, 1, 0 }
  0x21   : > { %p3032_p6 = pneg %p3734_p5  ;;  %p3302_p10 = scmp.ne.s32.totalorder %s319_s28, %s3301_s30 }
  0x22   : > { %4214 = sst [smem:[#allocation26_spill]] %s4213_s26  ;;  %p3309_p13 = scmp.lt.s32.totalorder %s319_s28, %s319_s28 }
  0x23   : > { %p3742_p7 = pnand %p3032_p6, %p4187_p1  ;;  %p3310_p0 = scmp.lt.s32.totalorder %s3301_s30, %s3301_s30 }
  0x25   : > { %p3292_p9 = pneg %p3742_p7  ;;  %p3311_p2 = por %p3310_p0, %p3309_p13 }
  0x27   : > { %p3304_p11 = pnand %p3302_p10, %p3292_p9 }
  0x29   : > { %p3305_p12 = pneg %p3304_p11 }
  0x2b   : > { %p3312_p3 = pnand %p3311_p2, %p3305_p12 }
  0x2d   : > { %3315 = shalt.err (!%p3312_p3)
}
  0x2e   : > { %s3587_s11 = smov 256   ;;  %s3588_s12 = smov 16  }
  0x2f   : > { %s4216_s4 = sld [smem:[#allocation32_spill]]  ;;  %p85_p6 = scmp.ne.s32.totalorder %s3552_s15, %s3548_s14 }
  0x30   : > { %p4186_p10 = scmp.lt.s32.totalorder %s3584_s23, 4  ;;  %s387_s30 = sand.u32 1, %s3584_s23  }
  0x31   : > { %p87_p11 = por %p85_p6, %p4189_p8  ;;  %s4192_s10 = sand.u32 1, %s3552_s15  }
  0x32   : > { %s2693_s9 = sshll.u32 %s4192_s10, 4  ;;  %s2831_s20 = sshll.u32 %s3580_s22, 8 }
  0x33   : > { %s4217_s1 = sld [smem:[#allocation30_spill]]  ;;  %s391_s19 = scalar_lea.vmem [#allocation7], %s2693_s9 }
  0x34   : > { %s398_s25 = sshll.u32 %s391_s19, 4  ;;  %p3772_p12 = pnand %p4186_p10, %p87_p11  ;;  %s399_s25 = int_to_ptr.vmem [resolvable:$true] %s398_s25 }
  0x35   : > { %3035 = dma.hbm_to_vmem [thread:$0]  (!%p3742_p7), %s4216_s4, 4096, %s319_s28, [#allocation11], %s3587_s11, %s3587_s11, %s3588_s12  }
  0x36   : > { %s3589_s28 = smov [#allocation12]   ;;  %s3776_s12 = scalar_lea.sflag [#allocation8], %s387_s30 }
  0x37   : > { %s334_s11 = sshll.u32 %s3589_s28, 4  ;;  %p4188_p13 = pneg %p3772_p12  ;;  %s335_s11 = int_to_ptr.vmem [resolvable:$true] %s334_s11 }
  0x38   : > { %s3329_s13 = scalar_lea.vmem %s399_s25, 256  ;;  %s3590_s3 = smov [#allocation7]  }
  0x39   : > { %s397_s5 = scalar_lea.hbm %s4217_s1, %s2831_s20  ;;  %p3330_p0 = scmp.ne.s32.totalorder %s399_s25, %s3329_s13 }
  0x3a   : > { %s3334_s7 = sshll.u32 %s3590_s3, 4  ;;  %s3335_s7 = int_to_ptr.vmem [resolvable:$false] %s3334_s7 }
  0x3b   : > { %p3332_p2 = pnand %p3330_p0, %p4188_p13  ;;  %s3336_s9 = scalar_lea.vmem %s3335_s7, 512 }
  0x3c   : > { %p3337_p6 = scmp.lt.s32.totalorder %s399_s25, %s3335_s7  ;;  %p3338_p11 = scmp.lt.s32.totalorder %s3336_s9, %s3329_s13 }
  0x3d   : > { %p3333_p3 = pneg %p3332_p2 }
  0x3e   : > { %p3339_p10 = por %p3338_p11, %p3337_p6 }
  0x40   : > { %p3340_p1 = pnand %p3339_p10, %p3333_p3 }
  0x42   : > { %3343 = shalt.err (!%p3340_p1)
}
  0x43   : > { %s3591_s19 = smov 128   ;;  %s3592_s20 = smov 8  }
  0x44   : > { %3048 = dma.hbm_to_vmem [thread:$0]  (!%p3772_p12), %s397_s5, 256, %s399_s25, %s3776_s12, %s3591_s19, %s3591_s19, %s3592_s20  }
  0x45   : > { %s3355_s27 = scalar_lea.vmem %s335_s11, 2048  ;;  %p3363_p8 = scmp.lt.s32.totalorder %s335_s11, %s335_s11 }
  0x46   : > { %p3356_p0 = scmp.ne.s32.totalorder %s335_s11, %s3355_s27  ;;  %p3364_p4 = scmp.lt.s32.totalorder %s3355_s27, %s3355_s27 }
  0x48   : > { %p3358_p2 = pnand %p3356_p0, %p3292_p9  ;;  %p3365_p5 = por %p3364_p4, %p3363_p8 }
  0x4a   : > { %p3359_p13 = pneg %p3358_p2 }
  0x4c   : > { %p3366_p6 = pnand %p3365_p5, %p3359_p13 }
  0x4e   : > { %3369 = shalt.err (!%p3366_p6)
}
  0x4f   : > { %s4219_s6 = sld [smem:[#allocation34_spill]]  ;;  %s3593_s5 = smov [#allocation13]  }
  0x50   : > { %s350_s25 = sshll.u32 %s3593_s5, 4  ;;  %s351_s25 = int_to_ptr.vmem [resolvable:$true] %s350_s25 }
  0x51   : > { %s3381_s13 = scalar_lea.vmem %s351_s25, 2048  ;;  %p3389_p11 = scmp.lt.s32.totalorder %s351_s25, %s351_s25 }
  0x52   : > { %p3382_p1 = scmp.ne.s32.totalorder %s351_s25, %s3381_s13  ;;  %p3390_p4 = scmp.lt.s32.totalorder %s3381_s13, %s3381_s13 }
  0x54   : > { %p3384_p10 = pnand %p3382_p1, %p3292_p9  ;;  %p3391_p5 = por %p3390_p4, %p3389_p11 }
  0x55   : > { %3038 = dma.hbm_to_vmem [thread:$0]  (!%p3742_p7), %s4219_s6, 2048, %s335_s11, [#allocation11], %s3591_s19, %s3591_s19, %s3592_s20  }
  0x56   : > { %p3385_p3 = pneg %p3384_p10 }
  0x58   : > { %p3392_p8 = pnand %p3391_p5, %p3385_p3 }
  0x5a   : > { %3395 = shalt.err (!%p3392_p8)
}
  0x5b   : > { %s3594_s3 = smov 64   ;;  %s3595_s11 = smov 4  }
  0x5c   : > { %s4220_s8 = sld [smem:[#allocation36_spill]]  ;;  %s2684_s19 = sadd.s32 4294967294, %s3584_s23  }
  0x5d   : > { %s40_s20 = sadd.s32 1, %s3576_s21  ;;  %s43_s27 = sadd.s32 1, %s3580_s22 }
  0x5e   : > { %p41_p9 = scmp.ge.s32.totalorder %s40_s20, 2  ;;  %s52_s30 = sadd.s32 1, %s3564_s18 }
  0x5f   : > { %p59_p13 = scmp.ne.s32.totalorder %s3564_s18, %s3560_s17  ;;  %p4222_p0 = scmp.eq.s32.totalorder %s3584_s23, 0 }
  0x60   : > { %s4269_s20 = smov (%p41_p9, %s40_s20), 0  ;;  %s4271_s27 = smov (!%p41_p9, %s43_s27), %s3580_s22 }
  0x61   : > { %4221 = sst [smem:[#allocation27_spill]] %s4269_s20  ;;  %s48_s28 = ssub.s32 %s3576_s21, %s4269_s20 }
  0x62   : > { %3041 = dma.hbm_to_vmem [thread:$0]  (!%p3742_p7), %s4220_s8, 2048, %s351_s25, [#allocation14], %s3594_s3, %s3594_s3, %s3595_s11  }
  0x63   : > { %p3815_p2 = por %p4222_p0, %p59_p13  ;;  %p45_p7 = scmp.ge.s32.totalorder %s4271_s27, 2 }
  0x64   : > { %p65_p6 = scmp.ne.s32.totalorder %s3560_s17, %s3556_s16  ;;  %s78_s5 = sadd.s32 1, %s3552_s15 }
  0x65   : > { %p290_p1 = scmp.eq.s32.totalorder %s3722_s24, 3  ;;  %s4273_s27 = smov (%p45_p7, %s4271_s27), 0 }
  0x66   : > { %4224 = sst [smem:[#allocation28_spill]] %s4273_s27  ;;  %p4225_p10 = scmp.eq.s32.totalorder %s3722_s24, 0 }
  0x67   : > { %p3831_p11 = por %p290_p1, %p59_p13  ;;  %s47_s3 = ssub.s32 %s3580_s22, %s4273_s27 }
  0x68   : > { %p3827_p3 = por %p4225_p10, %p65_p6  ;;  %p296_p4 = scmp.eq.s32.totalorder %s2684_s19, 3 }
  0x69   : > { %s4227_s13 = scalar_select %p3831_p11, 1, 0 }
  0x6a   : > { %s49_s11 = sor.u32 %s48_s28, %s47_s3  ;;  %p76_p5 = scmp.eq.s32.totalorder %s47_s3, 0 }
  0x6b   : > { %p50_p8 = scmp.eq.s32.totalorder %s49_s11, 0  ;;  %p3837_p9 = por %p296_p4, %p65_p6 }
  0x6c   : > { %s3842_s9 = scalar_select %p76_p5, %s3552_s15, %s78_s5  }
  0x6d   : > { %s4228_s7 = scalar_select %p3837_p9, 1, 0 }
  0x6e   : > { %s3845_s10 = scalar_select %p50_p8, %s3564_s18, %s52_s30  }
  0x6f   : > { %s367_s1 = sand.u32 1, %s3564_s18   ;;  %s2691_s4 = sshll.u32 %s3580_s22, 1 }
  0x70   : > { %4229 = sst [smem:[#allocation29_spill]] %s3845_s10  ;;  %s2690_s6 = sshll.u32 %s367_s1, 3 }
  0x71   : > { %s376_s8 = sadd.s32 %s3576_s21, %s2691_s4  ;;  %s371_s27 = scalar_lea.vmem [#allocation4], %s2690_s6 }
  0x72   : > { %s2692_s19 = sshll.u32 %s376_s8, 7  ;;  %s380_s20 = sshll.u32 %s371_s27, 4  ;;  %s381_s20 = int_to_ptr.vmem [resolvable:$true] %s380_s20 }
  0x73   : > { %s378_s3 = scalar_lea.hbm %s4169_s0, %s2692_s19  ;;  %p4230_p13 = scmp.lt.s32.totalorder %s3584_s23, 4 }
  0x74   : > { %s2696_s30 = sshll.u32 %s3580_s22, 4  ;;  %s4232_s5 = sand.u32 1, %s3552_s15  }
  0x75   : > { %p3857_p0 = pnand %p4230_p13, %p3815_p2  ;;  %s411_s10 = scalar_lea.vmem [#allocation9], %s4232_s5 }
  0x76   : > { %s418_s18 = sshll.u32 %s411_s10, 4  ;;  %s3867_s6 = scalar_lea.hbm %s4171_s2, %s2696_s30  ;;  %s419_s18 = int_to_ptr.vmem [resolvable:$true] %s418_s18 }
  0x77   : > { %s368_s27 = scalar_lea.sflag [#allocation5], %s367_s1  ;;  %p3398_p7 = pneg %p3857_p0 }
  0x78   : > { %s3409_s16 = scalar_lea.vmem %s381_s20, 128  ;;  %s3596_s29 = smov [#allocation4]  }
  0x79   : > { %p3410_p6 = scmp.ne.s32.totalorder %s381_s20, %s3409_s16  ;;  %s3414_s19 = sshll.u32 %s3596_s29, 4  ;;  %s3415_s19 = int_to_ptr.vmem [resolvable:$false] %s3414_s19 }
  0x7a   : > { %s3416_s28 = scalar_lea.vmem %s3415_s19, 256  ;;  %p3417_p10 = scmp.lt.s32.totalorder %s381_s20, %s3415_s19 }
  0x7b   : > { %p3412_p1 = pnand %p3410_p6, %p3398_p7  ;;  %p3418_p4 = scmp.lt.s32.totalorder %s3416_s28, %s3409_s16 }
  0x7d   : > { %p3413_p2 = pneg %p3412_p1  ;;  %p3419_p5 = por %p3418_p4, %p3417_p10 }
  0x7f   : > { %p3420_p8 = pnand %p3419_p5, %p3413_p2 }
  0x81   : > { %3423 = shalt.err (!%p3420_p8)
}
  0x82   : > { %3045 = dma.hbm_to_vmem [thread:$0]  (!%p3857_p0), %s378_s3, 128, %s381_s20, %s368_s27  }
  0x83   : > { %s3437_s1 = scalar_lea.vmem %s419_s18, 16  ;;  %p4233_p9 = pneg %p3772_p12 }
  0x84   : > { %p3438_p13 = scmp.ne.s32.totalorder %s419_s18, %s3437_s1  ;;  %s3597_s10 = smov [#allocation9]  }
  0x85   : > { %s3442_s30 = sshll.u32 %s3597_s10, 4  ;;  %s3443_s30 = int_to_ptr.vmem [resolvable:$false] %s3442_s30 }
  0x86   : > { %p3440_p7 = pnand %p3438_p13, %p4233_p9  ;;  %s3444_s5 = scalar_lea.vmem %s3443_s30, 32 }
  0x87   : > { %p3445_p1 = scmp.lt.s32.totalorder %s419_s18, %s3443_s30  ;;  %p3446_p11 = scmp.lt.s32.totalorder %s3444_s5, %s3437_s1 }
  0x88   : > { %p3441_p6 = pneg %p3440_p7 }
  0x89   : > { %p3447_p10 = por %p3446_p11, %p3445_p1 }
  0x8b   : > { %p3448_p2 = pnand %p3447_p10, %p3441_p6 }
  0x8d   : > { %3451 = shalt.err (!%p3448_p2)
}
  0x8e   : > { %3051 = dma.hbm_to_vmem [thread:$0]  (!%p3772_p12), %s3867_s6, 16, %s419_s18, %s3776_s12  }
  0x8f   : > { %s4234_s20 = sld [smem:[#allocation26_spill]] }
  0x95   : > { %p4235_p0 = scmp.ne.s32.totalorder %s4234_s20, 0 }
  0x96   : > { %s3883_s3 = sand.u32 (!%p4235_p0), 1, %s3560_s17  }
  0x97   : > { %427 = sbr.rel (%p4235_p0) target bundleno = 2825 (0xb09), region = 60  ;;  %s2698_s11 = sshll.u32 (!%p4235_p0), %s3883_s3, 3 }
  0x98   : > { %s430_s4 = scalar_lea.sflag (!%p4235_p0), [#allocation5], %s3883_s3  ;;  %s3887_s8 = scalar_lea.vmem (!%p4235_p0), [#allocation4], %s2698_s11 }
  0x9c   : > { %3523 = dma.done.wait (%p3827_p3), %s430_s4, 128  }
  0x9d   : > { %3525 = vsyncadd (%p3827_p3), %s430_s4, 4294967168  ;;  %s4236_s18 = sld [smem:[#allocation25_spill]]  ;;  %s438_s26 = sand.u32 1, %s3722_s24  }
  0x9e   : > { %s440_s12 = sand.u32 1, %s3548_s14   ;;  %s439_s27 = scalar_lea.sflag [#allocation8], %s438_s26 }
  0x9f   : > { %s3895_s6 = sshll.u32 %s440_s12, 4 }
  0xa0   : > { %s442_s16 = scalar_lea.vmem [#allocation7], %s3895_s6 }
  0xa3   : > { %p4237_p12 = scmp.ne.s32.totalorder %s4236_s18, 0 }
  0xa5   : > { %3527 = dma.done.wait (%p4237_p12), %s439_s27, 272  }
  0xa6   : > { %3529 = vsyncadd (%p4237_p12), %s439_s27, 4294967024  ;;  %s3902_s29 = scalar_lea.vmem [#allocation9], %s440_s12  ;;  %p4238_p11 = scmp.eq.s32.totalorder %s3722_s24, 0 }
  0xa8   : > { %3531 = dma.done.wait (%p4238_p11), [#allocation11], 6144   ;;  %p4239_p3 = pmov %p4238_p11 }
  0xaa   : > { %3533 = vsyncadd (%p4239_p3), [#allocation11], 4294961152  ;;  %p4240_p9 = pmov %p4239_p3 }
  0xab   : > { %p4241_p4 = pmov %p4239_p3 }
  0xac   : > { %3535 = dma.done.wait (%p4240_p9), [#allocation14], 2048  }
  0xad   : > { %3537 = vsyncadd (%p4241_p4), [#allocation14], 4294965248  ;;  %s3912_s25 = scalar_lea.vmem [#allocation15], %s2698_s11  ;;  %s4242_s19 = sld [smem:[#allocation23_spill]] }
  0xb3   : > { %p2704_p5 = scmp.ne.s32.totalorder %s4242_s19, 0 }
  0xb4   : > { %s4243_s1 = sld [smem:[#allocation33_spill]] (!%p2704_p5)  ;;  %s3599_s10 = smov (!%p2704_p5), 64  }
  0xb5   : > { %512 = sbr.rel (%p2704_p5) target bundleno = 642 (0x282), region = 88  ;;  %s3600_s30 = smov (!%p2704_p5), 96  }
  0xb6   : > { %s3601_s5 = smov (!%p2704_p5), 32  }
  0xba   : > { %v3176_v0 = vld [vmem:[#allocation10 + $0xe8] ss:$16 sps:$4 sm:$0xff]   ;;  %v3178_v1 = vld [vmem:[#allocation10 + $0xe4] ss:$16 sps:$4 sm:$0xff]   ;;  %v3598_v2 = vmov 0   ;;  %v534_v20 = vlaneseq  ;;  %vm1104_vm0 = vcmask 257024  }
  0xbb   : > { %656 = vmatprep.mubr.bf16.mxu0 %v3598_v2  ;;  %624 = vmatprep.subr.bf16.mxu0 %v3176_v0  ;;  %v3179_v3 = vld [vmem:[#allocation10 + $0xc8] ss:$16 sps:$4 sm:$0xff]   ;;  %v3181_v4 = vld [vmem:[#allocation10 + $0xc4] ss:$16 sps:$4 sm:$0xff]   ;;  %v532_v23 = vld [vmem:[%s4243_s1 + $0x1] sm:$0x3] }
  0xbc   : > { %625 = vmatpush1.bf16.msra.mxu0 %v3178_v1  ;;  %v3182_v5 = vld [vmem:[#allocation10 + $0xa8] ss:$16 sps:$4 sm:$0xff]   ;;  %v3184_v6 = vld [vmem:[#allocation10 + $0xa4] ss:$16 sps:$4 sm:$0xff]   ;;  %v535_v21 = vshrl.u32 %v534_v20, 7  ;;  %vm763_vm1 = vcmask 125952  }
  0xbd   : > { %626 = vmatprep.subr.bf16.mxu0 %v3179_v3  ;;  %v3185_v7 = vld [vmem:[#allocation10 + $0x88] ss:$16 sps:$4 sm:$0xff]   ;;  %v3187_v8 = vld [vmem:[#allocation10 + $0x84] ss:$16 sps:$4 sm:$0xff]   ;;  %v3602_v35 = vmov 1983009808  }
  0xbe   : > { %v3188_v9 = vld [vmem:[#allocation10 + $0x68] ss:$16 sps:$4 sm:$0xff]   ;;  %v3190_v10 = vld [vmem:[#allocation10 + $0x64] ss:$16 sps:$4 sm:$0xff]   ;;  %v540_v22 = vsub.s32 1, %v535_v21  ;;  %v536_v31 = vsub.s32 0, %v535_v21  ;;  %v803_v36 = vunpack.c.l.s4 %v3602_v35 }
  0xbf   : > { %v3191_v11 = vld [vmem:[#allocation10 + $0x48] ss:$16 sps:$4 sm:$0xff]   ;;  %v3193_v12 = vld [vmem:[#allocation10 + $0x44] ss:$16 sps:$4 sm:$0xff]   ;;  %v3603_v37 = vmov 1934713408  }
  0xc0   : > { %627 = vmatpush1.bf16.msra.mxu0 %v3181_v4  ;;  %v3194_v13 = vld [vmem:[#allocation10 + $0x28] ss:$16 sps:$4 sm:$0xff]   ;;  %v3196_v14 = vld [vmem:[#allocation10 + $0x24] ss:$16 sps:$4 sm:$0xff]   ;;  %v541_v24 = vrot.slane %v532_v23, %v540_v22  ;;  %v537_v32 = vrot.slane %v532_v23, %v536_v31  ;;  %v835_v38 = vunpack.c.l.s4 %v3603_v37  ;;  %v804_v39 = vunpack.c.0.s8 %v803_v36 }
  0xc1   : > { %628 = vmatprep.subr.bf16.mxu0 %v3182_v5  ;;  %v3197_v15 = vld [vmem:[#allocation10 + $0x8] ss:$16 sps:$4 sm:$0xff]   ;;  %v3199_v16 = vld [vmem:[#allocation10 + $0x4] ss:$16 sps:$4 sm:$0xff]  }
  0xc2   : > { %v513_v17 = vld [vmem:[%s442_s16] sm:$0xff]  ;;  %v514_v18 = vld [vmem:[%s442_s16 + $0x8] sm:$0xff]  ;;  %v836_v42 = vunpack.c.0.s8 %v835_v38  ;;  %v807_v43 = vsub.s32 %v804_v39, %v535_v21 }
  0xc3   : > { %v515_v19 = vpack.c.bf16 %v514_v18, %v513_v17 }
  0xc4   : > { %629 = vmatpush1.bf16.msra.mxu0 %v3184_v6  ;;  %v3922_v50 = vsub.s32 %v836_v42, %v535_v21 }
  0xc5   : > { %630 = vmatprep.subr.bf16.mxu0 %v3185_v7 }
  0xc8   : > { %631 = vmatpush1.bf16.msra.mxu0 %v3187_v8 }
  0xc9   : > { %632 = vmatprep.subr.bf16.mxu0 %v3188_v9 }
  0xcc   : > { %633 = vmatpush1.bf16.msra.mxu0 %v3190_v10 }
  0xcd   : > { %634 = vmatprep.subr.bf16.mxu0 %v3191_v11 }
  0xd0   : > { %635 = vmatpush1.bf16.msra.mxu0 %v3193_v12 }
  0xd1   : > { %636 = vmatprep.subr.bf16.mxu0 %v3194_v13 }
  0xd4   : > { %637 = vmatpush1.bf16.msra.mxu0 %v3196_v14 }
  0xd5   : > { %638 = vmatprep.subr.bf16.mxu0 %v3197_v15 }
  0xd8   : > { %639 = vmatpush1.bf16.msra.mxu0 %v3199_v16 }
  0xdb   : > { %657 = vmatmul.mubr.bf16.vlgmr.msra.gmra.mxu0 %v515_v19 }
 0x19b   : > { %v658_v25 = vpop.f32.mrf.mxu0 }
 0x19c   : > { %v659_v33 = vadd.f32 %v658_v25, %v537_v32 }
 0x19d   : > { %v660_v26 = vpop.f32.mrf.mxu0 }
 0x19e   : > { %v661_v27 = vadd.f32 %v660_v26, %v541_v24 }
 0x19f   : > { %v662_v28 = vpop.f32.mrf.mxu0 }
 0x1a0   : > { %788 = vrot.lane.b32.xlu1 %v661_v27, %s3599_s10  ;;  %782 = vrot.lane.b32.xlu0 %v661_v27, %s3600_s30  ;;  %v663_v34 = vadd.f32 %v662_v28, %v537_v32 }
 0x1a1   : > { %v664_v29 = vpop.f32.mrf.mxu0 }
 0x1a2   : > { %v665_v30 = vadd.f32 %v664_v29, %v541_v24 }
 0x1a4   : > { %790 = vrot.lane.b32.xlu1 %v665_v30, %s3599_s10  ;;  %794 = vrot.lane.b32.xlu0 %v661_v27, %s3601_s5 }
 0x1a8   : > { %796 = vrot.lane.b32.xlu1 %v665_v30, %s3601_s5  ;;  %784 = vrot.lane.b32.xlu0 %v665_v30, %s3600_s30 }
 0x1c6   : > { %667 = vxpose.xlu0.b32.start [1/2] (short) %v659_v33, 128 }
 0x1ca   : > { %668 = vxpose.xlu0.b32.end [2/2] (short) %v663_v34, 128 }
 0x212   : > { %v789_v40 = vpop.permute.xlu1 %788  ;;  %v783_v41 = vpop.permute.xlu0 %782 }
 0x213   : > { %v800_v44 = vcombine.low %v661_v27, %v789_v40  ;;  %v801_v45 = vcombine.high %v661_v27, %v789_v40 }
 0x215   : > { %v808_v51 = vrot.slane %v800_v44, %v807_v43  ;;  %v815_v52 = vrot.slane %v801_v45, %v807_v43 }
 0x216   : > { %v791_v46 = vpop.permute.xlu1 %790  ;;  %v795_v47 = vpop.permute.xlu0 %794 }
 0x217   : > { %v816_v48 = vcombine.low %v783_v41, %v795_v47  ;;  %v817_v49 = vcombine.high %v783_v41, %v795_v47  ;;  %v868_v55 = vcombine.low %v665_v30, %v791_v46  ;;  %v869_v56 = vcombine.high %v665_v30, %v791_v46 }
 0x219   : > { %v824_v53 = vrot.slane %v816_v48, %v807_v43  ;;  %v831_v54 = vrot.slane %v817_v49, %v807_v43  ;;  %v876_v5 = vrot.slane %v868_v55, %v807_v43  ;;  %v883_v6 = vrot.slane %v869_v56, %v807_v43 }
 0x21a   : > { %v797_v57 = vpop.permute.xlu1 %796  ;;  %v785_v58 = vpop.permute.xlu0 %784 }
 0x21b   : > { %v832_v59 = vcombine.low %v808_v51, %v824_v53  ;;  %v833_v60 = vcombine.high %v808_v51, %v824_v53  ;;  %v848_v61 = vcombine.low %v815_v52, %v831_v54  ;;  %v849_v62 = vcombine.high %v815_v52, %v831_v54 }
 0x21c   : > { %v884_v63 = vcombine.low %v785_v58, %v797_v57  ;;  %v885_v0 = vcombine.high %v785_v58, %v797_v57 }
 0x21d   : > { %v840_v1 = vrot.slane %v832_v59, %v3922_v50  ;;  %v847_v2 = vrot.slane %v833_v60, %v3922_v50  ;;  %v856_v3 = vrot.slane %v848_v61, %v3922_v50  ;;  %v863_v4 = vrot.slane %v849_v62, %v3922_v50 }
 0x21e   : > { %v892_v7 = vrot.slane %v884_v63, %v807_v43  ;;  %v899_v8 = vrot.slane %v885_v0, %v807_v43 }
 0x21f   : > { %v936_v9 = vcombine.low %v840_v1, %v847_v2  ;;  %v2737_v10 = vcombine.high %v840_v1, %v847_v2  ;;  %v952_v11 = vcombine.low %v856_v3, %v863_v4  ;;  %v2738_v12 = vcombine.high %v856_v3, %v863_v4 }
 0x220   : > { %v900_v13 = vcombine.low %v876_v5, %v892_v7  ;;  %v901_v14 = vcombine.high %v876_v5, %v892_v7  ;;  %v916_v15 = vcombine.low %v883_v6, %v899_v8  ;;  %v917_v16 = vcombine.high %v883_v6, %v899_v8 }
 0x221   : > { %v943_v17 = vrot.slane %v936_v9, %v807_v43  ;;  %v951_v18 = vrot.slane %v2737_v10, %v807_v43  ;;  %v959_v19 = vrot.slane %v952_v11, %v807_v43  ;;  %v967_v20 = vrot.slane %v2738_v12, %v807_v43 }
 0x222   : > { %v908_v21 = vrot.slane %v900_v13, %v3922_v50  ;;  %v915_v22 = vrot.slane %v901_v14, %v3922_v50  ;;  %v924_v23 = vrot.slane %v916_v15, %v3922_v50  ;;  %v931_v24 = vrot.slane %v917_v16, %v3922_v50 }
 0x223   : > { %v968_v25 = vcombine.low %v943_v17, %v951_v18  ;;  %v969_v26 = vcombine.high %v943_v17, %v951_v18  ;;  %v984_v27 = vcombine.low %v959_v19, %v967_v20  ;;  %v985_v28 = vcombine.high %v959_v19, %v967_v20 }
 0x224   : > { %v1004_v29 = vcombine.low %v908_v21, %v915_v22  ;;  %v2739_v30 = vcombine.high %v908_v21, %v915_v22  ;;  %v1020_v31 = vcombine.low %v924_v23, %v931_v24  ;;  %v2740_v32 = vcombine.high %v924_v23, %v931_v24 }
 0x225   : > { %v976_v33 = vrot.slane %v968_v25, %v3922_v50  ;;  %v983_v34 = vrot.slane %v969_v26, %v3922_v50  ;;  %v992_v35 = vrot.slane %v984_v27, %v3922_v50  ;;  %v999_v36 = vrot.slane %v985_v28, %v3922_v50 }
 0x226   : > { %v1011_v37 = vrot.slane %v1004_v29, %v807_v43  ;;  %v1019_v38 = vrot.slane %v2739_v30, %v807_v43  ;;  %v1027_v39 = vrot.slane %v1020_v31, %v807_v43  ;;  %v1035_v40 = vrot.slane %v2740_v32, %v807_v43 }
 0x227   : > { %v1000_v41 = vcombine.low %v976_v33, %v992_v35  ;;  %v1001_v42 = vcombine.high %v976_v33, %v992_v35  ;;  %v1002_v44 = vcombine.low %v983_v34, %v999_v36  ;;  %v1003_v45 = vcombine.high %v983_v34, %v999_v36 }
 0x228   : > { %v1036_v46 = vcombine.low %v1011_v37, %v1019_v38  ;;  %v1037_v47 = vcombine.high %v1011_v37, %v1019_v38  ;;  %v1052_v48 = vcombine.low %v1027_v39, %v1035_v40  ;;  %v1053_v49 = vcombine.high %v1027_v39, %v1035_v40 }
 0x229   : > { %v2848_v51 = vpack.c.bf16 %v1000_v41, %v1000_v41  ;;  %v2850_v52 = vpack.c.bf16 %v1001_v42, %v1001_v42  ;;  %v2852_v53 = vpack.c.bf16 %v1002_v44, %v1002_v44  ;;  %v2854_v54 = vpack.c.bf16 %v1003_v45, %v1003_v45 }
 0x22a   : > { %v1044_v55 = vrot.slane %v1036_v46, %v3922_v50  ;;  %v1051_v56 = vrot.slane %v1037_v47, %v3922_v50  ;;  %v1060_v57 = vrot.slane %v1052_v48, %v3922_v50  ;;  %v1067_v43 = vrot.slane %v1053_v49, %v3922_v50 }
 0x22b   : > { %1105 = vst.msk [vmem:[#allocation3] sm:$0xf] %vm1104_vm0, %v2848_v51  ;;  %1107 = vst.msk [vmem:[#allocation3 + $0x8] sm:$0xf] %vm1104_vm0, %v2850_v52 }
 0x22c   : > { %1109 = vst.msk [vmem:[#allocation3 + $0x10] sm:$0xf] %vm1104_vm0, %v2852_v53  ;;  %1111 = vst.msk [vmem:[#allocation3 + $0x18] sm:$0xf] %vm1104_vm0, %v2854_v54  ;;  %v1068_v58 = vcombine.low %v1044_v55, %v1060_v57  ;;  %v1069_v59 = vcombine.high %v1044_v55, %v1060_v57  ;;  %v1070_v60 = vcombine.low %v1051_v56, %v1067_v43 }
 0x22d   : > { %v1071_v61 = vcombine.high %v1051_v56, %v1067_v43 }
 0x22e   : > { %v2849_v62 = vpack.c.bf16 %v1068_v58, %v1068_v58  ;;  %v2851_v63 = vpack.c.bf16 %v1069_v59, %v1069_v59  ;;  %v2853_v0 = vpack.c.bf16 %v1070_v60, %v1070_v60 }
 0x22f   : > { %v2855_v1 = vpack.c.bf16 %v1071_v61, %v1071_v61 }
 0x230   : > { %1106 = vst.msk [vmem:[#allocation3 + $0x4] sm:$0xf] %vm1104_vm0, %v2849_v62  ;;  %1108 = vst.msk [vmem:[#allocation3 + $0xc] sm:$0xf] %vm1104_vm0, %v2851_v63 }
 0x231   : > { %1110 = vst.msk [vmem:[#allocation3 + $0x14] sm:$0xf] %vm1104_vm0, %v2853_v0  ;;  %1112 = vst.msk [vmem:[#allocation3 + $0x1c] sm:$0xf] %vm1104_vm0, %v2855_v1 }
 0x242   : > { %v683_v50 = vpop.trf.xlu0 }
 0x243   : > { %v2832_v2 = vpack.c.bf16 %v683_v50, %v683_v50 }
 0x245   : > { %764 = vst.msk [vmem:[#allocation2] sm:$0xf] %vm763_vm1, %v2832_v2 }
 0x246   : > { %v684_v3 = vpop.trf.xlu0 }
 0x247   : > { %v2833_v4 = vpack.c.bf16 %v684_v3, %v684_v3 }
 0x249   : > { %765 = vst.msk [vmem:[#allocation2 + $0x4] sm:$0xf] %vm763_vm1, %v2833_v4 }
 0x24a   : > { %v685_v5 = vpop.trf.xlu0 }
 0x24b   : > { %v2834_v6 = vpack.c.bf16 %v685_v5, %v685_v5 }
 0x24d   : > { %766 = vst.msk [vmem:[#allocation2 + $0x8] sm:$0xf] %vm763_vm1, %v2834_v6 }
 0x24e   : > { %v686_v7 = vpop.trf.xlu0 }
 0x24f   : > { %v2835_v8 = vpack.c.bf16 %v686_v7, %v686_v7 }
 0x251   : > { %767 = vst.msk [vmem:[#allocation2 + $0xc] sm:$0xf] %vm763_vm1, %v2835_v8 }
 0x252   : > { %v687_v9 = vpop.trf.xlu0 }
 0x253   : > { %v2836_v10 = vpack.c.bf16 %v687_v9, %v687_v9 }
 0x255   : > { %768 = vst.msk [vmem:[#allocation2 + $0x10] sm:$0xf] %vm763_vm1, %v2836_v10 }
 0x256   : > { %v688_v11 = vpop.trf.xlu0 }
 0x257   : > { %v2837_v12 = vpack.c.bf16 %v688_v11, %v688_v11 }
 0x259   : > { %769 = vst.msk [vmem:[#allocation2 + $0x14] sm:$0xf] %vm763_vm1, %v2837_v12 }
 0x25a   : > { %v689_v13 = vpop.trf.xlu0 }
 0x25b   : > { %v2838_v14 = vpack.c.bf16 %v689_v13, %v689_v13 }
 0x25d   : > { %770 = vst.msk [vmem:[#allocation2 + $0x18] sm:$0xf] %vm763_vm1, %v2838_v14 }
 0x25e   : > { %v690_v15 = vpop.trf.xlu0 }
 0x25f   : > { %v2839_v16 = vpack.c.bf16 %v690_v15, %v690_v15 }
 0x261   : > { %771 = vst.msk [vmem:[#allocation2 + $0x1c] sm:$0xf] %vm763_vm1, %v2839_v16 }
 0x262   : > { %v691_v17 = vpop.trf.xlu0 }
 0x263   : > { %v2840_v18 = vpack.c.bf16 %v691_v17, %v691_v17 }
 0x265   : > { %772 = vst.msk [vmem:[#allocation2 + $0x20] sm:$0xf] %vm763_vm1, %v2840_v18 }
 0x266   : > { %v692_v19 = vpop.trf.xlu0 }
 0x267   : > { %v2841_v20 = vpack.c.bf16 %v692_v19, %v692_v19 }
 0x269   : > { %773 = vst.msk [vmem:[#allocation2 + $0x24] sm:$0xf] %vm763_vm1, %v2841_v20 }
 0x26a   : > { %v693_v21 = vpop.trf.xlu0 }
 0x26b   : > { %v2842_v22 = vpack.c.bf16 %v693_v21, %v693_v21 }
 0x26d   : > { %774 = vst.msk [vmem:[#allocation2 + $0x28] sm:$0xf] %vm763_vm1, %v2842_v22 }
 0x26e   : > { %v694_v23 = vpop.trf.xlu0 }
 0x26f   : > { %v2843_v24 = vpack.c.bf16 %v694_v23, %v694_v23 }
 0x271   : > { %775 = vst.msk [vmem:[#allocation2 + $0x2c] sm:$0xf] %vm763_vm1, %v2843_v24 }
 0x272   : > { %v695_v25 = vpop.trf.xlu0 }
 0x273   : > { %v2844_v26 = vpack.c.bf16 %v695_v25, %v695_v25 }
 0x275   : > { %776 = vst.msk [vmem:[#allocation2 + $0x30] sm:$0xf] %vm763_vm1, %v2844_v26 }
 0x276   : > { %v696_v27 = vpop.trf.xlu0 }
 0x277   : > { %v2845_v28 = vpack.c.bf16 %v696_v27, %v696_v27 }
 0x279   : > { %777 = vst.msk [vmem:[#allocation2 + $0x34] sm:$0xf] %vm763_vm1, %v2845_v28 }
 0x27a   : > { %v697_v29 = vpop.trf.xlu0 }
 0x27b   : > { %v2846_v30 = vpack.c.bf16 %v697_v29, %v697_v29 }
 0x27d   : > { %778 = vst.msk [vmem:[#allocation2 + $0x38] sm:$0xf] %vm763_vm1, %v2846_v30 }
 0x27e   : > { %v698_v31 = vpop.trf.xlu0 }
 0x27f   : > { %v2847_v32 = vpack.c.bf16 %v698_v31, %v698_v31 }
 0x281   : > { %779 = vst.msk [vmem:[#allocation2 + $0x3c] sm:$0xf] %vm763_vm1, %v2847_v32 }
 0x282 PF: > { %v3604_v33 = vmov 0.0   ;;  %v3200_v34 = vld [vmem:[#allocation10 + $0xe0] ss:$16 sps:$4 sm:$0xff]   ;;  %vm3605_vm2 = vmmov 0   ;;  %s4244_s4 = sld [smem:[#allocation33_spill]]  ;;  %s3607_s18 = smov 96   ;;  %v1242_v57 = vlaneseq }
 0x283   : > { %2916 = vmatprep.subr.bf16.mxu0 %v3604_v33  ;;  %2932 = vmatprep.mubr.msk.bf16.mxu0 %vm3605_vm2, %v3604_v33  ;;  %v3201_v35 = vld [vmem:[#allocation10 + $0xc0] ss:$16 sps:$4 sm:$0xff]   ;;  %v3208_v53 = vld [vmem:[#allocation2 + $0x8] sm:$0xff]   ;;  %s3608_s26 = smov 64   ;;  %v3609_v55 = vmov 1983009808  }
 0x284   : > { %2936 = vmatprep.subr.bf16.mxu1 %v3604_v33  ;;  %2940 = vmatprep.mubr.msk.bf16.mxu1 %vm3605_vm2, %v3604_v33  ;;  %v3202_v36 = vld [vmem:[#allocation10 + $0xa0] ss:$16 sps:$4 sm:$0xff]   ;;  %v1240_v56 = vunpack.c.l.s4 %v3609_v55  ;;  %v3610_v43 = vmov 1934713408   ;;  %v3993_v60 = vshrl.u32 %v1242_v57, 7  ;;  %vm1414_vm3 = vcmask 261120  }
 0x285   : > { %2917 = vmatpush3.bf16.msra.mxu0 %v3200_v34  ;;  %v3203_v37 = vld [vmem:[#allocation10 + $0x80] ss:$16 sps:$4 sm:$0xff]   ;;  %2937 = vmatpush3.bf16.msra.mxu1 %v3208_v53  ;;  %v1272_v58 = vunpack.c.l.s4 %v3610_v43  ;;  %v3210_v31 = vld [vmem:[#allocation2 + $0x18] sm:$0xff]   ;;  %vm1623_vm5 = vcmask 130048   ;;  %vm2025_vm6 = vcmask 523264   ;;  %vm2027_vm7 = vcmask 785408  }
 0x286   : > { %2918 = vmatprep.subr.bf16.mxu0 %v3604_v33  ;;  %v3204_v38 = vld [vmem:[#allocation10 + $0x60] ss:$16 sps:$4 sm:$0xff]   ;;  %2938 = vmatprep.subr.bf16.mxu1 %v3604_v33  ;;  %v1241_v59 = vunpack.c.0.s8 %v1240_v56  ;;  %v1399_v53 = vsub.s32 0, %v3993_v60  ;;  %s4246_s10 = sld [smem:[#allocation35_spill]]  ;;  %s2529_s12 = sshll.u32 %s3912_s25, 4  ;;  %s2530_s12 = int_to_ptr.vmem [resolvable:$true] %s2529_s12 }
 0x287   : > { %v3205_v39 = vld [vmem:[#allocation10 + $0x40] ss:$16 sps:$4 sm:$0xff]   ;;  %v1273_v63 = vunpack.c.0.s8 %v1272_v58  ;;  %s4247_s30 = sld [smem:[#allocation24_spill]]  ;;  %s2514_s28 = scalar_lea.sflag [#allocation6], %s3883_s3 }
 0x288   : > { %v3206_v40 = vld [vmem:[#allocation10 + $0x20] ss:$16 sps:$4 sm:$0xff]   ;;  %v2749_v45 = vld [vmem:[%s4244_s4] ss:$0 sm:$0xff]  ;;  %v3996_v0 = vsub.s32 %v1241_v59, %v3993_v60  ;;  %s4248_s5 = sld [smem:[#allocation23_spill]]  ;;  %s3452_s1 = scalar_lea.vmem %s2530_s12, 128 }
 0x289   : > { %2919 = vmatpush3.bf16.msra.mxu0 %v3201_v35  ;;  %v3207_v41 = vld [vmem:[#allocation10] ss:$16 sps:$4 sm:$0xff]   ;;  %v3999_v5 = vsub.s32 %v1273_v63, %v3993_v60  ;;  %s4250_s16 = sld [smem:[#allocation38_spill]]  ;;  %p3453_p8 = scmp.ne.s32.totalorder %s2530_s12, %s3452_s1 }
 0x28a   : > { %2920 = vmatprep.subr.bf16.mxu0 %v3604_v33  ;;  %v3977_v42 = vld [vmem:[%s3887_s8] sm:$0xff]  ;;  %s3606_s8 = smov 32   ;;  %v3211_v34 = vld [vmem:[#allocation2 + $0x10] sm:$0xff]   ;;  %p4252_p13 = scmp.ne.s32.totalorder %s4227_s13, 0 }
 0x28b   : > { %v1114_v44 = vpack.c.bf16 %v3977_v42, %v3977_v42  ;;  %v3209_v54 = vld [vmem:[#allocation2] sm:$0xff]  }
 0x28c   : > { %2939 = vmatpush3.bf16.msra.mxu1 %v3209_v54  ;;  %p3454_p7 = pnand %p3453_p8, %p4252_p13 }
 0x28d   : > { %2921 = vmatpush3.bf16.msra.mxu0 %v3202_v36  ;;  %2944 = vmatprep.subr.bf16.mxu1 %v3604_v33  ;;  %s2827_s20 = sshll.u32 %s4247_s30, 1 }
 0x28e   : > { %2922 = vmatprep.subr.bf16.mxu0 %v3604_v33  ;;  %s2525_s11 = sadd.s32 %s4248_s5, %s2827_s20  ;;  %p3455_p6 = pneg %p3454_p7 }
 0x28f   : > { %s4251_s24 = smov %s4250_s16 }
 0x291   : > { %2923 = vmatpush3.bf16.msra.mxu0 %v3203_v37 }
 0x292   : > { %2924 = vmatprep.subr.bf16.mxu0 %v3604_v33 }
 0x295   : > { %2925 = vmatpush3.bf16.msra.mxu0 %v3204_v38  ;;  %v3212_v38 = vld [vmem:[#allocation2 + $0x28] sm:$0xff]  }
 0x296   : > { %2926 = vmatprep.subr.bf16.mxu0 %v3604_v33 }
 0x299   : > { %2927 = vmatpush3.bf16.msra.mxu0 %v3205_v39 }
 0x29a   : > { %2928 = vmatprep.subr.bf16.mxu0 %v3604_v33 }
 0x29d   : > { %2929 = vmatpush3.bf16.msra.mxu0 %v3206_v40 }
 0x29e   : > { %2930 = vmatprep.subr.bf16.mxu0 %v3604_v33 }
 0x2a1   : > { %2931 = vmatpush3.bf16.msra.mxu0 %v3207_v41 }
 0x2a2   : > { %2992 = vmatprep.subr.bf16.mxu0 %v3604_v33 }
 0x2a4   : > { %2933 = vmatmul.mubr.bf16.vlgmr.msra.gmra.mxu0 %v1114_v44  ;;  %v3213_v44 = vld [vmem:[#allocation2 + $0x20] sm:$0xff]  }
 0x2a5   : > { %3008 = vmatprep.mubr.msk.bf16.mxu0 %vm3605_vm2, %v3604_v33 }
 0x364   : > { %v1220_v46 = vpop.f32.mrf.mxu0 }
 0x365   : > { %v1221_v47 = vadd.f32 %v2749_v45, %v1220_v46  ;;  %v3214_v46 = vld [vmem:[#allocation2 + $0x38] sm:$0xff]  }
 0x366   : > { %v2934_v48 = vpop.f32.mrf.mxu0 }
 0x367   : > { %v1226_v49 = vmul.f32 0.17677669, %v1221_v47  ;;  %v3215_v48 = vld [vmem:[#allocation2 + $0x30] sm:$0xff]  }
 0x368   : > { %v1223_v51 = vpop.f32.mrf.mxu0 }
 0x369   : > { %1234 = vrot.lane.b32.xlu1 %v1226_v49, %s3606_s8  ;;  %1228 = vrot.lane.b32.xlu0 %v1226_v49, %s3607_s18 }
 0x36a   : > { %v2935_v52 = vpop.f32.mrf.mxu0 }
 0x36b   : > { %v1377_v52 = vld [vmem:[%s3902_s29] sm:$0x1]  ;;  %s4245_s29 = sld [smem:[#allocation31_spill]] }
 0x36c   : > { %vm1378_vm4 = vcmp.gt.f32.partialorder %v1377_v52, 0.5  ;;  %v3218_v52 = vld [vmem:[#allocation3 + $0x10] sm:$0xff]  }
 0x36d   : > { %1231 = vrot.lane.b32.xlu0 %v1226_v49, %s3608_s26  ;;  %v1379_v54 = vsel %vm1378_vm4, -1e+18, %v3604_v33 }
 0x36e   : > { %v1400_v55 = vrot.slane %v1379_v54, %v1399_v53 }
 0x3db   : > { %v1235_v61 = vpop.permute.xlu1 %1234  ;;  %v1229_v62 = vpop.permute.xlu0 %1228 }
 0x3dc   : > { %v1253_v1 = vcombine.low %v1229_v62, %v1235_v61  ;;  %v1254_v50 = vcombine.high %v1229_v62, %v1235_v61 }
 0x3de   : > { %v1261_v6 = vrot.slane %v1253_v1, %v3996_v0  ;;  %v1268_v7 = vrot.slane %v1254_v50, %v3996_v0 }
 0x3df   : > { %v1232_v2 = vpop.permute.xlu0 %1231 }
 0x3e0   : > { %v1237_v3 = vcombine.low %v1226_v49, %v1232_v2  ;;  %v1238_v4 = vcombine.high %v1226_v49, %v1232_v2 }
 0x3e2   : > { %v1245_v8 = vrot.slane %v1237_v3, %v3996_v0  ;;  %v1252_v9 = vrot.slane %v1238_v4, %v3996_v0 }
 0x3e4   : > { %v1269_v10 = vcombine.low %v1245_v8, %v1261_v6  ;;  %v1270_v11 = vcombine.high %v1245_v8, %v1261_v6  ;;  %v1285_v12 = vcombine.low %v1252_v9, %v1268_v7  ;;  %v1286_v13 = vcombine.high %v1252_v9, %v1268_v7 }
 0x3e6   : > { %v1277_v14 = vrot.slane %v1269_v10, %v3999_v5  ;;  %v1284_v15 = vrot.slane %v1270_v11, %v3999_v5  ;;  %v1293_v16 = vrot.slane %v1285_v12, %v3999_v5  ;;  %v1300_v17 = vrot.slane %v1286_v13, %v3999_v5 }
 0x3e8   : > { %v1305_v18 = vcombine.low %v1277_v14, %v1284_v15  ;;  %v2758_v19 = vcombine.high %v1277_v14, %v1284_v15  ;;  %v1321_v20 = vcombine.low %v1293_v16, %v1300_v17  ;;  %v2759_v21 = vcombine.high %v1293_v16, %v1300_v17 }
 0x3ea   : > { %v1312_v22 = vrot.slane %v1305_v18, %v3996_v0  ;;  %v1320_v23 = vrot.slane %v2758_v19, %v3996_v0  ;;  %v1328_v24 = vrot.slane %v1321_v20, %v3996_v0  ;;  %v1336_v25 = vrot.slane %v2759_v21, %v3996_v0 }
 0x3ec   : > { %v1337_v26 = vcombine.low %v1312_v22, %v1320_v23  ;;  %v1353_v27 = vcombine.low %v1328_v24, %v1336_v25  ;;  %v1338_v35 = vcombine.high %v1312_v22, %v1320_v23  ;;  %v1354_v36 = vcombine.high %v1328_v24, %v1336_v25 }
 0x3ee   : > { %v1345_v28 = vrot.slane %v1337_v26, %v3999_v5  ;;  %v1361_v29 = vrot.slane %v1353_v27, %v3999_v5  ;;  %v1352_v40 = vrot.slane %v1338_v35, %v3999_v5  ;;  %v1368_v41 = vrot.slane %v1354_v36, %v3999_v5  ;;  %v3216_v36 = vld [vmem:[#allocation3] sm:$0xff]  }
 0x3f0   : > { %v1369_v30 = vcombine.low %v1345_v28, %v1361_v29  ;;  %v1370_v37 = vcombine.high %v1345_v28, %v1361_v29  ;;  %v1371_v45 = vcombine.low %v1352_v40, %v1368_v41  ;;  %v1372_v49 = vcombine.high %v1352_v40, %v1368_v41 }
 0x3f2   : > { %v1373_v32 = vpack.c.bf16 %v1369_v30, %v1369_v30  ;;  %v1374_v39 = vpack.c.bf16 %v1370_v37, %v1370_v37  ;;  %v1375_v47 = vpack.c.bf16 %v1371_v45, %v1371_v45  ;;  %v1376_v51 = vpack.c.bf16 %v1372_v49, %v1372_v49 }
 0x3f4   : > { %2941 = vmatmul.mubr.msk.bf16.vlgmr.msra.gmra.mxu1 %vm1414_vm3, %v1373_v32 }
 0x3f5   : > { %2945 = vmatpush3.bf16.msra.mxu1 %v3210_v31  ;;  %2948 = vmatprep.mubr.msk.bf16.mxu1 %vm3605_vm2, %v3604_v33 }
 0x3f6   : > { %2946 = vmatprep.subr.bf16.mxu1 %v3604_v33 }
 0x3f9   : > { %2947 = vmatpush3.bf16.msra.mxu1 %v3211_v34 }
 0x3fa   : > { %2952 = vmatprep.subr.bf16.mxu1 %v3604_v33 }
 0x3fc   : > { %2949 = vmatmul.mubr.msk.bf16.vlgmr.msra.gmra.mxu1 %vm1414_vm3, %v1374_v39 }
 0x3fd   : > { %2953 = vmatpush3.bf16.msra.mxu1 %v3212_v38  ;;  %2956 = vmatprep.mubr.msk.bf16.mxu1 %vm3605_vm2, %v3604_v33 }
 0x3fe   : > { %2954 = vmatprep.subr.bf16.mxu1 %v3604_v33 }
 0x401   : > { %2955 = vmatpush3.bf16.msra.mxu1 %v3213_v44 }
 0x402   : > { %2960 = vmatprep.subr.bf16.mxu1 %v3604_v33 }
 0x404   : > { %2957 = vmatmul.mubr.msk.bf16.vlgmr.msra.gmra.mxu1 %vm1414_vm3, %v1375_v47 }
 0x405   : > { %2961 = vmatpush3.bf16.msra.mxu1 %v3214_v46  ;;  %2964 = vmatprep.mubr.msk.bf16.mxu1 %vm3605_vm2, %v3604_v33  ;;  %v3217_v46 = vld [vmem:[#allocation3 + $0x8] sm:$0xff]  }
 0x406   : > { %2962 = vmatprep.subr.bf16.mxu1 %v3604_v33 }
 0x409   : > { %2963 = vmatpush3.bf16.msra.mxu1 %v3215_v48 }
 0x40a   : > { %2968 = vmatprep.subr.bf16.mxu1 %v3604_v33 }
 0x40c   : > { %2965 = vmatmul.mubr.msk.bf16.vlgmr.msra.gmra.mxu1 %vm1414_vm3, %v1376_v51 }
 0x40d   : > { %2970 = vmatprep.mubr.msk.bf16.mxu1 %vm3605_vm2, %v3604_v33  ;;  %2969 = vmatpush3.bf16.msra.mxu1 %v3216_v36 }
 0x40e   : > { %2974 = vmatprep.subr.bf16.mxu1 %v3604_v33 }
 0x4b4   : > { %v1452_v56 = vpop.f32.mrf.mxu1 }
 0x4b5   : > { %v1453_v57 = vadd.f32 %v1452_v56, %v1400_v55 }
 0x4b6   : > { %v2942_v43 = vpop.f32.mrf.mxu1 }
 0x4b7   : > { %v1624_v58 = vsel %vm1623_vm5, %v1453_v57, -inf }
 0x4b8   : > { %1625 = vmax.xlane.f32.xlu1 %v1624_v58  ;;  %v1455_v59 = vpop.f32.mrf.mxu1 }
 0x4ba   : > { %v2943_v61 = vpop.f32.mrf.mxu1 }
 0x4bc   : > { %v1507_v62 = vpop.f32.mrf.mxu1 }
 0x4bd   : > { %v1508_v63 = vadd.f32 %v1507_v62, %v1400_v55  ;;  %v3220_v62 = vld [vmem:[#allocation10 + $0xec] ss:$16 sps:$4 sm:$0xff]  }
 0x4be   : > { %v2950_v1 = vpop.f32.mrf.mxu1  ;;  %2993 = vmatpush3.bf16.msra.mxu0 %v3220_v62 }
 0x4bf   : > { %v1627_v50 = vsel %vm1623_vm5, %v1508_v63, -inf  ;;  %2994 = vmatprep.subr.bf16.mxu0 %v3604_v33  ;;  %v3222_v1 = vld [vmem:[#allocation10 + $0xac] ss:$16 sps:$4 sm:$0xff]  }
 0x4c0   : > { %1628 = vmax.xlane.f32.xlu0 %v1627_v50  ;;  %v1510_v2 = vpop.f32.mrf.mxu1  ;;  %v3223_v50 = vld [vmem:[#allocation10 + $0x8c] ss:$16 sps:$4 sm:$0xff]  }
 0x4c1   : > { %v3224_v2 = vld [vmem:[#allocation10 + $0x6c] ss:$16 sps:$4 sm:$0xff]  }
 0x4c2   : > { %v2951_v3 = vpop.f32.mrf.mxu1 }
 0x4c3   : > { %v3225_v3 = vld [vmem:[#allocation10 + $0x4c] ss:$16 sps:$4 sm:$0xff]  }
 0x4c4   : > { %v1562_v4 = vpop.f32.mrf.mxu1 }
 0x4c5   : > { %v1563_v6 = vadd.f32 %v1562_v4, %v1400_v55 }
 0x4c6   : > { %v2958_v7 = vpop.f32.mrf.mxu1 }
 0x4c7   : > { %v1630_v8 = vsel %vm1623_vm5, %v1563_v6, -inf }
 0x4c8   : > { %1631 = vmax.xlane.f32.xlu0 %v1630_v8  ;;  %v1565_v9 = vpop.f32.mrf.mxu1 }
 0x4ca   : > { %v2959_v10 = vpop.f32.mrf.mxu1 }
 0x4cc   : > { %v1617_v11 = vpop.f32.mrf.mxu1 }
 0x4cd   : > { %v1618_v12 = vadd.f32 %v1617_v11, %v1400_v55 }
 0x4ce   : > { %v2966_v13 = vpop.f32.mrf.mxu1 }
 0x4cf   : > { %v1633_v14 = vsel %vm1623_vm5, %v1618_v12, -inf }
 0x4d0   : > { %1634 = vmax.xlane.f32.xlu1 %v1633_v14  ;;  %v1620_v15 = vpop.f32.mrf.mxu1 }
 0x4d2   : > { %v2967_v16 = vpop.f32.mrf.mxu1 }
 0x541   : > { %v1626_v17 = vpop.xlane.xlu1 %1625 }
 0x542   : > { %v1636_v18 = vsub.f32 %v1453_v57, %v1626_v17  ;;  %v3219_v57 = vld [vmem:[#allocation3 + $0x18] sm:$0xff]  }
 0x544   : > { %v1640_v19 = vmul.f32 1.442695, %v1636_v18 }
 0x546   : > { %3268 = vpow2.f32 %v1640_v19 }
 0x549   : > { %v1629_v20 = vpop.xlane.xlu0 %1628 }
 0x54a   : > { %v1637_v21 = vsub.f32 %v1508_v63, %v1629_v20  ;;  %v3221_v63 = vld [vmem:[#allocation10 + $0xcc] ss:$16 sps:$4 sm:$0xff]  }
 0x54b   : > { %2995 = vmatpush3.bf16.msra.mxu0 %v3221_v63 }
 0x54c   : > { %v1642_v22 = vmul.f32 1.442695, %v1637_v21  ;;  %2996 = vmatprep.subr.bf16.mxu0 %v3604_v33 }
 0x54e   : > { %3270 = vpow2.f32 %v1642_v22 }
 0x54f   : > { %2997 = vmatpush3.bf16.msra.mxu0 %v3222_v1 }
 0x550   : > { %2998 = vmatprep.subr.bf16.mxu0 %v3604_v33 }
 0x551   : > { %v1632_v23 = vpop.xlane.xlu0 %1631 }
 0x552   : > { %v1638_v24 = vsub.f32 %v1563_v6, %v1632_v23 }
 0x553   : > { %v3269_v25 = vpop.eup %3268  ;;  %2999 = vmatpush3.bf16.msra.mxu0 %v3223_v50 }
 0x554   : > { %v1644_v26 = vmul.f32 1.442695, %v1638_v24  ;;  %v1648_v27 = vsel %vm1623_vm5, %v3269_v25, 0.0  ;;  %3000 = vmatprep.subr.bf16.mxu0 %v3604_v33 }
 0x555   : > { %1649 = vadd.xlane.f32.xlu0 %v1648_v27 }
 0x556   : > { %3272 = vpow2.f32 %v1644_v26 }
 0x557   : > { %3001 = vmatpush3.bf16.msra.mxu0 %v3224_v2 }
 0x558   : > { %3002 = vmatprep.subr.bf16.mxu0 %v3604_v33 }
 0x559   : > { %v1635_v28 = vpop.xlane.xlu1 %1634 }
 0x55a   : > { %v1639_v29 = vsub.f32 %v1618_v12, %v1635_v28  ;;  %v3226_v28 = vld [vmem:[#allocation10 + $0x2c] ss:$16 sps:$4 sm:$0xff]  }
 0x55b   : > { %v3271_v30 = vpop.eup %3270  ;;  %3003 = vmatpush3.bf16.msra.mxu0 %v3225_v3 }
 0x55c   : > { %v1646_v31 = vmul.f32 1.442695, %v1639_v29  ;;  %v1651_v32 = vsel %vm1623_vm5, %v3271_v30, 0.0  ;;  %3004 = vmatprep.subr.bf16.mxu0 %v3604_v33 }
 0x55d   : > { %1652 = vadd.xlane.f32.xlu1 %v1651_v32 }
 0x55e   : > { %3274 = vpow2.f32 %v1646_v31 }
 0x55f   : > { %3005 = vmatpush3.bf16.msra.mxu0 %v3226_v28  ;;  %v3248_v28 = vld [vmem:[#allocation12 + $0x14] ss:$8 sps:$4 sm:$0xff]  }
 0x560   : > { %3006 = vmatprep.subr.bf16.mxu0 %v3604_v33 }
 0x563   : > { %v3273_v34 = vpop.eup %3272 }
 0x564   : > { %v1654_v35 = vsel %vm1623_vm5, %v3273_v34, 0.0 }
 0x565   : > { %1655 = vadd.xlane.f32.xlu0 %v1654_v35 }
 0x56b   : > { %v3275_v37 = vpop.eup %3274 }
 0x56c   : > { %v1657_v38 = vsel %vm1623_vm5, %v3275_v37, 0.0 }
 0x56d   : > { %1658 = vadd.xlane.f32.xlu1 %v1657_v38 }
 0x5de   : > { %v1650_v39 = vpop.xlane.xlu0 %1649 }
 0x5df   : > { %3276 = vrcp.f32 %v1650_v39  ;;  %v3227_v39 = vld [vmem:[#allocation10 + $0xc] ss:$16 sps:$4 sm:$0xff]  }
 0x5e0   : > { %3007 = vmatpush3.bf16.msra.mxu0 %v3227_v39  ;;  %v2792_v39 = vld [vmem:[%s4245_s29 + $0x3] ss:$0 sm:$0xff] }
 0x5e6   : > { %v1653_v40 = vpop.xlane.xlu1 %1652 }
 0x5e7   : > { %3278 = vrcp.f32 %v1653_v40 }
 0x5ec   : > { %v3277_v41 = vpop.eup %3276 }
 0x5ed   : > { %v1664_v44 = vmul.f32 %v3277_v41, %v3269_v25 }
 0x5ee   : > { %v1656_v45 = vpop.xlane.xlu0 %1655 }
 0x5ef   : > { %3280 = vrcp.f32 %v1656_v45  ;;  %v1668_v47 = vpack.c.bf16 %v1664_v44, %v1664_v44 }
 0x5f1   : > { %2971 = vmatmul.mubr.msk.bf16.vlgmr.msra.gmra.mxu1 %vm1623_vm5, %v1668_v47 }
 0x5f2   : > { %2975 = vmatpush3.bf16.msra.mxu1 %v3217_v46  ;;  %2976 = vmatprep.mubr.msk.bf16.mxu1 %vm3605_vm2, %v3604_v33 }
 0x5f3   : > { %2980 = vmatprep.subr.bf16.mxu1 %v3604_v33 }
 0x5f4   : > { %v3279_v48 = vpop.eup %3278 }
 0x5f5   : > { %v1665_v49 = vmul.f32 %v3279_v48, %v3271_v30 }
 0x5f6   : > { %v1659_v51 = vpop.xlane.xlu1 %1658 }
 0x5f7   : > { %3282 = vrcp.f32 %v1659_v51  ;;  %v1669_v54 = vpack.c.bf16 %v1665_v49, %v1665_v49 }
 0x5f9   : > { %2977 = vmatmul.mubr.msk.bf16.vlgmr.msra.gmra.mxu1 %vm1623_vm5, %v1669_v54 }
 0x5fa   : > { %2981 = vmatpush3.bf16.msra.mxu1 %v3218_v52  ;;  %2982 = vmatprep.mubr.msk.bf16.mxu1 %vm3605_vm2, %v3604_v33 }
 0x5fb   : > { %2986 = vmatprep.subr.bf16.mxu1 %v3604_v33 }
 0x5fc   : > { %v3281_v55 = vpop.eup %3280 }
 0x5fd   : > { %v1666_v56 = vmul.f32 %v3281_v55, %v3273_v34 }
 0x5ff   : > { %v1670_v43 = vpack.c.bf16 %v1666_v56, %v1666_v56 }
 0x601   : > { %2983 = vmatmul.mubr.msk.bf16.vlgmr.msra.gmra.mxu1 %vm1623_vm5, %v1670_v43 }
 0x602   : > { %2987 = vmatpush3.bf16.msra.mxu1 %v3219_v57  ;;  %2988 = vmatprep.mubr.msk.bf16.mxu1 %vm3605_vm2, %v3604_v33 }
 0x604   : > { %v3283_v58 = vpop.eup %3282 }
 0x605   : > { %v1667_v59 = vmul.f32 %v3283_v58, %v3275_v37 }
 0x607   : > { %v1671_v61 = vpack.c.bf16 %v1667_v59, %v1667_v59 }
 0x609   : > { %2989 = vmatmul.mubr.msk.bf16.vlgmr.msra.gmra.mxu1 %vm1623_vm5, %v1671_v61 }
 0x6b1   : > { %v1723_v4 = vpop.f32.mrf.mxu1 }
 0x6b3   : > { %v2972_v6 = vpop.f32.mrf.mxu1 }
 0x6b5   : > { %v1726_v7 = vpop.f32.mrf.mxu1 }
 0x6b7   : > { %v2973_v8 = vpop.f32.mrf.mxu1 }
 0x6b9   : > { %v1772_v9 = vpop.f32.mrf.mxu1 }
 0x6bb   : > { %v2978_v10 = vpop.f32.mrf.mxu1 }
 0x6bd   : > { %v1775_v11 = vpop.f32.mrf.mxu1 }
 0x6bf   : > { %v2979_v12 = vpop.f32.mrf.mxu1 }
 0x6c0   : > { %v3228_v12 = vld [vmem:[#allocation12 + $0x70] ss:$8 sps:$4 sm:$0xff]  }
 0x6c1   : > { %v1821_v13 = vpop.f32.mrf.mxu1 }
 0x6c2   : > { %v1876_v17 = vcombine.low %v1723_v4, %v1821_v13  ;;  %v1877_v18 = vcombine.high %v1723_v4, %v1821_v13  ;;  %v2782_v4 = vld [vmem:[%s4244_s4 + $0x3] ss:$0 sm:$0xff]  ;;  %v3230_v13 = vld [vmem:[#allocation12 + $0x74] ss:$8 sps:$4 sm:$0xff]  }
 0x6c3   : > { %v2984_v14 = vpop.f32.mrf.mxu1  ;;  %2275 = vmatprep.subr.bf16.mxu1 %v3230_v13 }
 0x6c4   : > { %v1884_v23 = vrot.slane %v1876_v17, %v3996_v0  ;;  %v1891_v24 = vrot.slane %v1877_v18, %v3996_v0  ;;  %v3233_v14 = vld [vmem:[#allocation12 + $0x64] ss:$8 sps:$4 sm:$0xff]   ;;  %2276 = vmatpush1.bf16.msra.mxu1 %v3228_v12 }
 0x6c5   : > { %v1824_v15 = vpop.f32.mrf.mxu1  ;;  %2277 = vmatprep.subr.bf16.mxu1 %v3233_v14 }
 0x6c6   : > { %v3231_v15 = vld [vmem:[#allocation12 + $0x60] ss:$8 sps:$4 sm:$0xff]  }
 0x6c7   : > { %v2985_v16 = vpop.f32.mrf.mxu1 }
 0x6c8   : > { %2278 = vmatpush1.bf16.msra.mxu1 %v3231_v15 }
 0x6c9   : > { %v1870_v19 = vpop.f32.mrf.mxu1 }
 0x6ca   : > { %v1892_v20 = vcombine.low %v1772_v9, %v1870_v19  ;;  %v1893_v21 = vcombine.high %v1772_v9, %v1870_v19 }
 0x6cb   : > { %v2990_v22 = vpop.f32.mrf.mxu1 }
 0x6cc   : > { %v1900_v25 = vrot.slane %v1892_v20, %v3996_v0  ;;  %v1907_v26 = vrot.slane %v1893_v21, %v3996_v0  ;;  %v3234_v20 = vld [vmem:[#allocation12 + $0x50] ss:$8 sps:$4 sm:$0xff]   ;;  %v3237_v21 = vld [vmem:[#allocation12 + $0x40] ss:$8 sps:$4 sm:$0xff]   ;;  %v3239_v22 = vld [vmem:[#allocation12 + $0x44] ss:$8 sps:$4 sm:$0xff]  }
 0x6cd   : > { %v1873_v27 = vpop.f32.mrf.mxu1 }
 0x6ce   : > { %v1908_v29 = vcombine.low %v1884_v23, %v1900_v25  ;;  %v1909_v30 = vcombine.high %v1884_v23, %v1900_v25  ;;  %v1924_v31 = vcombine.low %v1891_v24, %v1907_v26  ;;  %v1925_v32 = vcombine.high %v1891_v24, %v1907_v26  ;;  %v3242_v23 = vld [vmem:[#allocation12 + $0x34] ss:$8 sps:$4 sm:$0xff]   ;;  %v3240_v24 = vld [vmem:[#allocation12 + $0x30] ss:$8 sps:$4 sm:$0xff]   ;;  %v3245_v25 = vld [vmem:[#allocation12 + $0x24] ss:$8 sps:$4 sm:$0xff]  }
 0x6cf   : > { %v2991_v34 = vpop.f32.mrf.mxu1  ;;  %v3611_v26 = vmov 0   ;;  %v3243_v27 = vld [vmem:[#allocation12 + $0x20] ss:$8 sps:$4 sm:$0xff]  }
 0x6d0   : > { %v1916_v35 = vrot.slane %v1908_v29, %v3999_v5  ;;  %v1923_v36 = vrot.slane %v1909_v30, %v3999_v5  ;;  %v1932_v37 = vrot.slane %v1924_v31, %v3999_v5  ;;  %v1939_v38 = vrot.slane %v1925_v32, %v3999_v5  ;;  %2307 = vmatprep.mubr.bf16.mxu1 %v3611_v26  ;;  %v3246_v29 = vld [vmem:[#allocation12 + $0x10] ss:$8 sps:$4 sm:$0xff]   ;;  %v3251_v30 = vld [vmem:[#allocation12 + $0x4] ss:$8 sps:$4 sm:$0xff]   ;;  %v3249_v31 = vld [vmem:[#allocation12] ss:$8 sps:$4 sm:$0xff]  }
 0x6d2   : > { %v1944_v40 = vcombine.low %v1916_v35, %v1923_v36  ;;  %v2780_v41 = vcombine.high %v1916_v35, %v1923_v36  ;;  %v1960_v44 = vcombine.low %v1932_v37, %v1939_v38  ;;  %v2781_v45 = vcombine.high %v1932_v37, %v1939_v38  ;;  %v2791_v37 = vld [vmem:[%s4245_s29 + $0x2] ss:$0 sm:$0xff] }
 0x6d4   : > { %v1951_v46 = vrot.slane %v1944_v40, %v3996_v0  ;;  %v1959_v47 = vrot.slane %v2780_v41, %v3996_v0  ;;  %v1967_v48 = vrot.slane %v1960_v44, %v3996_v0  ;;  %v1975_v49 = vrot.slane %v2781_v45, %v3996_v0  ;;  %v3252_v45 = vld [vmem:[#allocation13 + $0x78] sm:$0xff]  }
 0x6d5   : > { %2894 = vmatprep.subr.bf16.mxu0 %v3252_v45 }
 0x6d6   : > { %v1977_v51 = vcombine.high %v1951_v46, %v1959_v47  ;;  %v1993_v52 = vcombine.high %v1967_v48, %v1975_v49  ;;  %v1976_v54 = vcombine.low %v1951_v46, %v1959_v47  ;;  %v1992_v55 = vcombine.low %v1967_v48, %v1975_v49  ;;  %v3253_v46 = vld [vmem:[#allocation13 + $0x38] sm:$0xff]   ;;  %v3254_v47 = vld [vmem:[#allocation13 + $0x70] sm:$0xff]   ;;  %v3256_v49 = vld [vmem:[#allocation13 + $0x68] sm:$0xff]  }
 0x6d7   : > { %v3255_v48 = vld [vmem:[#allocation13 + $0x30] sm:$0xff]  }
 0x6d8   : > { %v1991_v33 = vrot.slane %v1977_v51, %v3999_v5  ;;  %v2007_v56 = vrot.slane %v1993_v52, %v3999_v5  ;;  %v1984_v57 = vrot.slane %v1976_v54, %v3999_v5  ;;  %v2000_v43 = vrot.slane %v1992_v55, %v3999_v5  ;;  %v3257_v51 = vld [vmem:[#allocation13 + $0x28] sm:$0xff]   ;;  %v3258_v52 = vld [vmem:[#allocation13 + $0x60] sm:$0xff]   ;;  %v3260_v55 = vld [vmem:[#allocation13 + $0x58] sm:$0xff]  }
 0x6d9   : > { %v3259_v54 = vld [vmem:[#allocation13 + $0x20] sm:$0xff]  }
 0x6da   : > { %v2010_v58 = vcombine.low %v1991_v33, %v2007_v56  ;;  %v2009_v59 = vcombine.high %v1984_v57, %v2000_v43  ;;  %v2008_v61 = vcombine.low %v1984_v57, %v2000_v43  ;;  %v2011_v0 = vcombine.high %v1991_v33, %v2007_v56  ;;  %v3261_v33 = vld [vmem:[#allocation13 + $0x18] sm:$0xff]   ;;  %v3262_v56 = vld [vmem:[#allocation13 + $0x50] sm:$0xff]   ;;  %v3264_v43 = vld [vmem:[#allocation13 + $0x48] sm:$0xff]  }
 0x6db   : > { %v3263_v57 = vld [vmem:[#allocation13 + $0x10] sm:$0xff]  }
 0x6dc   : > { %2017 = vrot.lane.b32.xlu1 %v2010_v58, %s3608_s26  ;;  %2013 = vrot.lane.b32.xlu0 %v2009_v59, %s3606_s8  ;;  %v3265_v58 = vld [vmem:[#allocation13 + $0x8] sm:$0xff]   ;;  %v3266_v59 = vld [vmem:[#allocation13 + $0x40] sm:$0xff]   ;;  %s2828_s26 = sshll.u32 %s2525_s11, 7 }
 0x6dd   : > { %s2527_s19 = scalar_lea.hbm %s4250_s16, %s2828_s26 }
 0x6e0   : > { %2021 = vrot.lane.b32.xlu1 %v2011_v0, %s3607_s18  ;;  %v2183_v0 = vld [vmem:[%s4246_s10] sm:$0x3]  ;;  %s4249_s18 = sld [smem:[#allocation37_spill]]  ;;  %s3612_s10 = smov [#allocation15]  }
 0x6e1   : > { %s3456_s30 = sshll.u32 %s3612_s10, 4  ;;  %s3457_s30 = int_to_ptr.vmem [resolvable:$false] %s3456_s30 }
 0x6e2   : > { %s3458_s5 = scalar_lea.vmem %s3457_s30, 256  ;;  %p3459_p1 = scmp.lt.s32.totalorder %s2530_s12, %s3457_s30 }
 0x6e3   : > { %p3460_p10 = scmp.lt.s32.totalorder %s3458_s5, %s3452_s1 }
 0x6e5   : > { %p3461_p2 = por %p3460_p10, %p3459_p1 }
 0x6e6   : > { %v2809_v26 = vld [vmem:[%s4249_s18] ss:$0 sm:$0xff] }
 0x6e7   : > { %p3462_p0 = pnand %p3461_p2, %p3455_p6 }
 0x74e   : > { %v2018_v62 = vpop.permute.xlu1 %2017  ;;  %v2014_v63 = vpop.permute.xlu0 %2013 }
 0x74f   : > { %v2024_v1 = vsel %vm1414_vm3, %v2008_v61, %v2014_v63  ;;  %v3267_v61 = vld [vmem:[#allocation13] sm:$0xff]   ;;  %v2188_v63 = vrot.slane %v2183_v0, %v1399_v53 }
 0x750   : > { %v2026_v2 = vsel %vm2025_vm6, %v2024_v1, %v2018_v62  ;;  %v2191_v62 = vsub.s32 1, %v3993_v60 }
 0x752   : > { %v2022_v50 = vpop.permute.xlu1 %2021  ;;  %v2192_v1 = vrot.slane %v2183_v0, %v2191_v62 }
 0x753   : > { %v2028_v3 = vsel %vm2027_vm7, %v2026_v2, %v2022_v50 }
 0x754   : > { %v2029_v5 = vpack.c.bf16 %v2028_v3, %v2028_v3 }
 0x756   : > { %3009 = vmatmul.mubr.bf16.vlgmr.msra.gmra.mxu0 %v2029_v5 }
 0x757   : > { %2895 = vmatpush3.bf16.msra.mxu0 %v3253_v46 }
 0x758   : > { %2896 = vmatprep.subr.bf16.mxu0 %v3254_v47 }
 0x75b   : > { %2897 = vmatpush3.bf16.msra.mxu0 %v3255_v48 }
 0x75c   : > { %2898 = vmatprep.subr.bf16.mxu0 %v3256_v49 }
 0x75f   : > { %2899 = vmatpush3.bf16.msra.mxu0 %v3257_v51 }
 0x760   : > { %2900 = vmatprep.subr.bf16.mxu0 %v3258_v52 }
 0x763   : > { %2901 = vmatpush3.bf16.msra.mxu0 %v3259_v54 }
 0x764   : > { %2902 = vmatprep.subr.bf16.mxu0 %v3260_v55 }
 0x767   : > { %2903 = vmatpush3.bf16.msra.mxu0 %v3261_v33 }
 0x768   : > { %2904 = vmatprep.subr.bf16.mxu0 %v3262_v56 }
 0x76b   : > { %2905 = vmatpush3.bf16.msra.mxu0 %v3263_v57 }
 0x76c   : > { %2906 = vmatprep.subr.bf16.mxu0 %v3264_v43 }
 0x76f   : > { %2907 = vmatpush3.bf16.msra.mxu0 %v3265_v58 }
 0x770   : > { %2908 = vmatprep.subr.bf16.mxu0 %v3266_v59 }
 0x773   : > { %2909 = vmatpush3.bf16.msra.mxu0 %v3267_v61 }
 0x816   : > { %v2135_v6 = vpop.f32.mrf.mxu0 }
 0x817   : > { %v2136_v7 = vadd.f32 %v2782_v4, %v2135_v6 }
 0x818   : > { %v3010_v8 = vpop.f32.mrf.mxu0 }
 0x819   : > { %v4092_v9 = vadd.f32 %v2136_v7, %v3977_v42  ;;  %v3236_v42 = vld [vmem:[#allocation12 + $0x54] ss:$8 sps:$4 sm:$0xff]  }
 0x81a   : > { %v2138_v10 = vpop.f32.mrf.mxu0  ;;  %2279 = vmatprep.subr.bf16.mxu1 %v3236_v42 }
 0x81b   : > { %2144 = vadd.xlane.f32.xlu0 %v4092_v9  ;;  %2280 = vmatpush1.bf16.msra.mxu1 %v3234_v20 }
 0x81c   : > { %v3011_v11 = vpop.f32.mrf.mxu0  ;;  %2281 = vmatprep.subr.bf16.mxu1 %v3239_v22 }
 0x81f   : > { %2282 = vmatpush1.bf16.msra.mxu1 %v3237_v21 }
 0x820   : > { %2283 = vmatprep.subr.bf16.mxu1 %v3242_v23 }
 0x823   : > { %2284 = vmatpush1.bf16.msra.mxu1 %v3240_v24 }
 0x824   : > { %2285 = vmatprep.subr.bf16.mxu1 %v3245_v25 }
 0x827   : > { %2286 = vmatpush1.bf16.msra.mxu1 %v3243_v27 }
 0x828   : > { %2287 = vmatprep.subr.bf16.mxu1 %v3248_v28 }
 0x82b   : > { %2288 = vmatpush1.bf16.msra.mxu1 %v3246_v29 }
 0x82c   : > { %2289 = vmatprep.subr.bf16.mxu1 %v3251_v30 }
 0x82f   : > { %2290 = vmatpush1.bf16.msra.mxu1 %v3249_v31 }
 0x8a4   : > { %v2145_v16 = vpop.xlane.xlu0 %2144 }
 0x8a5   : > { %v2147_v17 = vmul.f32 0.0078125, %v2145_v16 }
 0x8a7   : > { %v2148_v18 = vsub.f32 %v4092_v9, %v2147_v17 }
 0x8a9   : > { %v2149_v19 = vmul.f32 %v2148_v18, %v2148_v18 }
 0x8ab   : > { %2150 = vadd.xlane.f32.xlu1 %v2149_v19 }
 0x934   : > { %v2151_v32 = vpop.xlane.xlu1 %2150 }
 0x935   : > { %v2152_v34 = vmul.f32 0.0078125, %v2151_v32 }
 0x937   : > { %v2153_v35 = vadd.f32 1e-06, %v2152_v34 }
 0x939   : > { %3284 = vrsqrt.f32 %v2153_v35 }
 0x946   : > { %v3285_v36 = vpop.eup %3284 }
 0x947   : > { %v2155_v38 = vmul.f32 %v3285_v36, %v2148_v18 }
 0x949   : > { %v2160_v40 = vmul.f32 %v2791_v37, %v2155_v38 }
 0x94b   : > { %v2165_v41 = vadd.f32 %v2792_v39, %v2160_v40 }
 0x94d   : > { %v2166_v44 = vpack.c.bf16 %v2165_v41, %v2165_v41 }
 0x94f   : > { %2308 = vmatmul.mubr.bf16.vlgmr.msra.gmra.mxu1 %v2166_v44 }
 0xa0f   : > { %v2309_v50 = vpop.f32.mrf.mxu1 }
 0xa10   : > { %v2310_v2 = vadd.f32 %v2309_v50, %v2188_v63 }
 0xa11   : > { %v2311_v3 = vpop.f32.mrf.mxu1 }
 0xa12   : > { %v2318_v5 = vmul.f32 0.044715, %v2310_v2  ;;  %v2312_v4 = vadd.f32 %v2311_v3, %v2192_v1  ;;  %v2316_v19 = vmul.f32 0.5, %v2310_v2 }
 0xa13   : > { %v2313_v6 = vpop.f32.mrf.mxu1 }
 0xa14   : > { %v2320_v7 = vmul.f32 %v2318_v5, %v2310_v2  ;;  %v2319_v8 = vmul.f32 0.044715, %v2312_v4  ;;  %v2317_v42 = vmul.f32 0.5, %v2312_v4 }
 0xa15   : > { %v2314_v10 = vpop.f32.mrf.mxu1 }
 0xa16   : > { %v2322_v11 = vmul.f32 %v2320_v7, %v2310_v2  ;;  %v2321_v12 = vmul.f32 %v2319_v8, %v2312_v4 }
 0xa18   : > { %v2324_v13 = vadd.f32 %v2322_v11, %v2310_v2  ;;  %v2323_v14 = vmul.f32 %v2321_v12, %v2312_v4 }
 0xa1a   : > { %v2326_v15 = vmul.f32 0.7978846, %v2324_v13  ;;  %v2325_v16 = vadd.f32 %v2323_v14, %v2312_v4 }
 0xa1c   : > { %v2327_v17 = vmul.f32 0.7978846, %v2325_v16  ;;  %3286 = vtanh.f32 %v2326_v15 }
 0xa1e   : > { %3288 = vtanh.f32 %v2327_v17 }
 0xa29   : > { %v3287_v60 = vpop.eup %3286 }
 0xa2a   : > { %v2330_v53 = vadd.f32 1.0, %v3287_v60 }
 0xa2b   : > { %v3289_v18 = vpop.eup %3288 }
 0xa2c   : > { %v2331_v20 = vadd.f32 1.0, %v3289_v18  ;;  %v2332_v21 = vmul.f32 %v2330_v53, %v2316_v19 }
 0xa2e   : > { %v2333_v22 = vmul.f32 %v2331_v20, %v2317_v42  ;;  %v2334_v24 = vpack.c.bf16 %v2332_v21, %v2332_v21 }
 0xa30   : > { %v2335_v23 = vpack.c.bf16 %v2333_v22, %v2333_v22 }
 0xa32   : > { %2503 = vmatprep.mubr.bf16.mxu0 %v2335_v23 }
 0xa33   : > { %2504 = vmatmul.mubr.bf16.vlgmr.msra.gmra.mxu0 %v2334_v24 }
 0xaf3   : > { %v2910_v25 = vpop.f32.mrf.mxu0 }
 0xaf5   : > { %v2911_v27 = vpop.f32.mrf.mxu0 }
 0xaf6   : > { %v2912_v28 = vadd.f32 %v2911_v27, %v2910_v25 }
 0xaf7   : > { %v2913_v29 = vpop.f32.mrf.mxu0 }
 0xaf8   : > { %v2506_v30 = vadd.f32 %v2912_v28, %v2809_v26 }
 0xaf9   : > { %v2914_v31 = vpop.f32.mrf.mxu0 }
 0xafa   : > { %v2511_v32 = vadd.f32 %v2506_v30, %v4092_v9 }
 0xafc   : > { %2512 = vst [vmem:[%s3912_s25] sm:$0xff] %v2511_v32 }
 0xafd   : > { %3465 = shalt.err (!%p3462_p0)
}
 0xafe   : > { %s3466_s20 = scalar_lea.hbm %s2527_s19, 128  ;;  %s3470_s11 = scalar_lea.hbm %s4251_s24, 512 }
 0xaff   : > { %p3467_p12 = scmp.ne.s32.totalorder %s2527_s19, %s3466_s20  ;;  %p3471_p9 = scmp.lt.s32.totalorder %s2527_s19, %s4251_s24 }
 0xb00   : > { %p3472_p4 = scmp.lt.s32.totalorder %s3470_s11, %s3466_s20 }
 0xb01   : > { %p3468_p11 = pnand %p3467_p12, %p4252_p13 }
 0xb02   : > { %p3473_p5 = por %p3472_p4, %p3471_p9 }
 0xb03   : > { %p3469_p3 = pneg %p3468_p11 }
 0xb05   : > { %p3474_p8 = pnand %p3473_p5, %p3469_p3 }
 0xb07   : > { %3477 = shalt.err (!%p3474_p8)
}
 0xb08   : > { %3030 = dma.vmem_to_hbm [thread:$0]  (%p4252_p13), %s2530_s12, 128, %s2527_s19, %s2514_s28  }
 0xb09 PF: > { %s4253_s18 = sld [smem:[#allocation21_spill]]  ;;  %p3063_p7 = scmp.ge.s32.totalorder %s3584_s23, 2 }
 0xb0a   : > { %p4254_p6 = scmp.ne.s32.totalorder %s4228_s7, 0 }
 0xb0c   : > { %p3053_p1 = pnand %p3063_p7, %p4254_p6 }
 0xb0e   : > { %p3054_p10 = pneg %p3053_p1 }
 0xb0f   : > { %s2541_s26 = sand.u32 1, %s4253_s18  }
 0xb10   : > { %s2542_s6 = scalar_lea.sflag [#allocation6], %s2541_s26 }
 0xb11   : > { %3539 = dma.done.wait (%p3054_p10), %s2542_s6, 128  }
 0xb12   : > { %3541 = vsyncadd (%p3054_p10), %s2542_s6, 4294967168  ;;  %s31_s23 = sadd.s32 1, %s3584_s23   ;;  %s4255_s12 = sld [smem:[#allocation22_spill]] }
 0xb13   : > { %p28_p2 = scmp.ge.s32.totalorder %s31_s23, 6   ;;  %s4256_s18 = sld [smem:[#allocation29_spill]] }
 0xb14   : > { %s4257_s27 = sld [smem:[#allocation27_spill]]  ;;  %s4259_s13 = smov %s3548_s14 }
 0xb15   : > { %s4258_s28 = sld [smem:[#allocation28_spill]]  ;;  %s4260_s14 = smov %s3552_s15 }
 0xb16   : > { %s4261_s15 = smov %s3842_s9  ;;  %s4262_s16 = smov %s3560_s17 }
 0xb17   : > { %s4264_s19 = smov %s3576_s21  ;;  %s4265_s20 = smov %s3580_s22 }
 0xb18   : > { %s4263_s17 = smov %s4255_s12  ;;  %30 = sbr.rel (!%p28_p2) target bundleno = 23 (0x17), region = 145 }
 0xb1a   : > { %s4266_s21 = smov %s4257_s27 }
 0xb1b   : > { %s4267_s22 = smov %s4258_s28 }
 0xb1d   :  { %2547 = vsyncpa [#allocation5], 1 }
 0xb1e   :  { %2549 = vsyncpa [#allocation5 + $0x1], 1 }
 0xb1f   :  { %2550 = vsyncpa [#allocation8], 1 }
 0xb20   :  { %2552 = vsyncpa [#allocation8 + $0x1], 1 }
 0xb21   :  { %2553 = vsyncpa [#allocation11], 1 }
 0xb22   :  { %2554 = vsyncpa [#allocation14], 1 }
 0xb23   :  { %2555 = vsyncpa [#allocation6], 1 }
 0xb24   :  { %2557 = vsyncpa [#allocation6 + $0x1], 1 }

</bundles_post_ra>
